<compile_context>
chip_gen: v7x
topology: tpu7x:2x2x1
jax: 0.10.0
libtpu: 0.0.40
codegen_flags: <defaults>
</compile_context>

<pallas_src>
import functools

import jax
import jax.numpy as jnp
from jax.experimental import pallas as pl
from jax.experimental.pallas import tpu as pltpu


def _round_up(x, m):
    return (x + m - 1) // m * m


# ----------------------------------------------------------------------------
# Kernels
# ----------------------------------------------------------------------------
def _bneck_s1_kernel(x_ref, w1_ref, wd_ref, b2_ref, w3_ref, b3_ref, o_ref, *,
                     tile_h, add_residual, cin, compute_dtype):
    """stride == 1 path. x_ref holds the whole spatially padded image."""
    _, _, Wp, Cx = x_ref.shape            # (1, H+2, W+2, Cin+1)
    _, TH, Wo, Cout_p = o_ref.shape       # TH == tile_h, Wo == W
    Ce_p = w1_ref.shape[1]

    ht = pl.program_id(1)
    r0 = pl.multiple_of(ht * tile_h, tile_h)
    rows = tile_h + 2                     # output rows + 1-row halo on each side

    # Rows [r0, r0+TH+2) of the padded image (padded row r0 <-> output row r0-1).
    x_tile = x_ref[0, pl.ds(r0, rows), :, :]            # (rows, W+2, Cx)

    # ---- 1x1 expand (+ folded BN, bias via indicator channel) + ReLU6 ------
    # Padded border positions are all-zero (incl. indicator) -> expand == 0.
    y1 = jnp.dot(x_tile.reshape(rows * Wp, Cx).astype(compute_dtype),
                 w1_ref[...], preferred_element_type=jnp.float32)
    y1 = jnp.clip(y1, 0.0, 6.0).reshape(rows, Wp, Ce_p)  # f32

    # ---- 3x3 depthwise (+ folded BN) + ReLU6 --------------------------------
    wd = wd_ref[...]                                      # (9, 1, Ce_p), loaded once
    acc = jnp.broadcast_to(b2_ref[...].reshape(1, 1, Ce_p), (TH, Wo, Ce_p))
    for kh in range(3):
        for kw in range(3):
            acc = acc + y1[kh:kh + TH, kw:kw + Wo, :] * wd[kh * 3 + kw]
    acc = jnp.clip(acc, 0.0, 6.0)

    # ---- 1x1 project (+ folded BN) ------------------------------------------
    y3 = jnp.dot(acc.reshape(TH * Wo, Ce_p).astype(compute_dtype),
                 w3_ref[...], preferred_element_type=jnp.float32) + b3_ref[...]
    y3 = y3.reshape(TH, Wo, Cout_p)

    # Lane-dense store of the full padded-channel block.
    o_ref[0] = y3.astype(o_ref.dtype)

    if add_residual:   # stride == 1 and Cin == Cout (static)
        # Interior of the x tile (drop halo + indicator channel), added in f32.
        xr = x_tile[1:TH + 1, 1:Wo + 1, :cin].astype(jnp.float32)
        o_ref[0, :, :, :cin] = (y3[:, :, :cin] + xr).astype(o_ref.dtype)


def _bneck_s2_kernel(xee_ref, xeo_ref, xoe_ref, xoo_ref,
                     w1_ref, wd_ref, b2_ref, w3_ref, b3_ref, o_ref, *,
                     tile_h, compute_dtype):
    """stride == 2 path. Input arrives as 4 space-to-depth phase tensors of the
    spatially padded image, so every slice below is contiguous (no strided
    slices on sublane/lane dims)."""
    _, TH, Wo, Cout_p = o_ref.shape
    Ce_p = w1_ref.shape[1]
    Ws = xee_ref.shape[2]                 # == Wo + 1
    Cx = xee_ref.shape[3]

    ht = pl.program_id(1)
    r0 = pl.multiple_of(ht * tile_h, tile_h)

    def expand(ref, rows):
        xt = ref[0, pl.ds(r0, rows), :, :]
        y = jnp.dot(xt.reshape(rows * Ws, Cx).astype(compute_dtype),
                    w1_ref[...], preferred_element_type=jnp.float32)
        return jnp.clip(y, 0.0, 6.0).reshape(rows, Ws, Ce_p)

    # Even-row phases need TH+1 rows (taps kh=0 and kh=2), odd-row phases TH.
    yee = expand(xee_ref, tile_h + 1)
    yeo = expand(xeo_ref, tile_h + 1)
    yoe = expand(xoe_ref, tile_h)
    yoo = expand(xoo_ref, tile_h)

    wd = wd_ref[...]                      # (9, 1, Ce_p)
    acc = jnp.broadcast_to(b2_ref[...].reshape(1, 1, Ce_p), (TH, Wo, Ce_p))
    # out[ho,wo] taps (padded coords 2ho+kh, 2wo+kw) expressed on the phases:
    acc = acc + yee[0:TH, 0:Wo, :] * wd[0]          # kh=0, kw=0
    acc = acc + yeo[0:TH, 0:Wo, :] * wd[1]          # kh=0, kw=1
    acc = acc + yee[0:TH, 1:Wo + 1, :] * wd[2]      # kh=0, kw=2
    acc = acc + yoe[:, 0:Wo, :] * wd[3]             # kh=1, kw=0
    acc = acc + yoo[:, 0:Wo, :] * wd[4]             # kh=1, kw=1
    acc = acc + yoe[:, 1:Wo + 1, :] * wd[5]         # kh=1, kw=2
    acc = acc + yee[1:TH + 1, 0:Wo, :] * wd[6]      # kh=2, kw=0
    acc = acc + yeo[1:TH + 1, 0:Wo, :] * wd[7]      # kh=2, kw=1
    acc = acc + yee[1:TH + 1, 1:Wo + 1, :] * wd[8]  # kh=2, kw=2
    acc = jnp.clip(acc, 0.0, 6.0)

    y3 = jnp.dot(acc.reshape(TH * Wo, Ce_p).astype(compute_dtype),
                 w3_ref[...], preferred_element_type=jnp.float32) + b3_ref[...]
    o_ref[0] = y3.reshape(TH, Wo, Cout_p).astype(o_ref.dtype)


# ----------------------------------------------------------------------------
# Wrapper
# ----------------------------------------------------------------------------
def _prepare_padded_params(p, cin, cout, compute_dtype):
    """Zero-pad the BN-folded params to lane-dense (multiple of 128) widths and
    fold the expand bias into an extra weight row (indicator-channel trick)."""
    Ce = p["w1"].shape[1]
    Ce_p = _round_up(Ce, 128)
    Cout_p = _round_up(cout, 128)
    Cx = cin + 1                           # + indicator channel

    w1 = jnp.zeros((Cx, Ce_p), jnp.float32)
    w1 = w1.at[:cin, :Ce].set(p["w1"])
    w1 = w1.at[cin, :Ce].set(p["b1"])      # bias row, multiplied by the indicator
    wd = jnp.zeros((9, 1, Ce_p), jnp.float32).at[:, 0, :Ce].set(
        p["wd"].reshape(9, Ce))
    b2 = jnp.zeros((1, Ce_p), jnp.float32).at[0, :Ce].set(p["b2"])
    w3 = jnp.zeros((Ce_p, Cout_p), jnp.float32).at[:Ce, :cout].set(p["w3"])
    b3 = jnp.zeros((1, Cout_p), jnp.float32).at[0, :cout].set(p["b3"])
    return (w1.astype(compute_dtype), wd, b2, w3.astype(compute_dtype), b3,
            Ce_p, Cout_p, Cx)


def _pick_tile_h(Ho, Wo, Ce_p, budget_bytes=4 * 1024 * 1024):
    """Largest divisor of Ho whose Ce-wide intermediates fit a conservative
    per-step VMEM budget (safe on v7x's 64 MiB as well as v5e/v6e)."""
    per_row = (Wo + 2) * Ce_p * 4 * 4
    cap = max(1, budget_bytes // per_row)
    best = 1
    for d in range(1, Ho + 1):
        if Ho % d == 0 and d <= cap:
            best = d
    return best


def linear_bottleneck_pallas(x_nchw, params, *, stride, in_channels,
                             out_channels, tile_h=None, use_bf16_matmul=True):
    assert stride in (1, 2)
    N, Cin, H, W = x_nchw.shape
    assert Cin == in_channels
    if stride == 2:
        assert H % 2 == 0 and W % 2 == 0, "stride-2 path assumes even H, W"

    compute_dtype = jnp.bfloat16 if use_bf16_matmul else jnp.float32
    (w1, wd, b2, w3, b3, Ce_p, Cout_p, Cx) = _prepare_padded_params(
        params, Cin, out_channels, compute_dtype)

    Ho = (H - 1) // stride + 1
    Wo = (W - 1) // stride + 1
    if tile_h is None:
        tile_h = _pick_tile_h(Ho, Wo, Ce_p)
    assert Ho % tile_h == 0, f"tile_h={tile_h} must divide Ho={Ho}"
    n_ht = Ho // tile_h

    # NHWC, native dtype (no forced f32), spatial zero-pad of 1, plus an
    # indicator channel (1 inside the image, 0 in the pad ring).
    x_nhwc = jnp.transpose(x_nchw, (0, 2, 3, 1))
    ind = jnp.ones((N, H, W, 1), x_nhwc.dtype)
    xa = jnp.pad(jnp.concatenate([x_nhwc, ind], axis=-1),
                 ((0, 0), (1, 1), (1, 1), (0, 0)))        # (N, H+2, W+2, Cx)

    w_specs = [
        pl.BlockSpec((Cx, Ce_p), lambda n, h: (0, 0)),        # w1 (+bias row)
        pl.BlockSpec((9, 1, Ce_p), lambda n, h: (0, 0, 0)),   # depthwise taps
        pl.BlockSpec((1, Ce_p), lambda n, h: (0, 0)),         # b2
        pl.BlockSpec((Ce_p, Cout_p), lambda n, h: (0, 0)),    # w3
        pl.BlockSpec((1, Cout_p), lambda n, h: (0, 0)),       # b3
    ]
    out_spec = pl.BlockSpec((1, tile_h, Wo, Cout_p), lambda n, h: (n, h, 0, 0))
    out_shape = jax.ShapeDtypeStruct((N, Ho, Wo, Cout_p), x_nhwc.dtype)
    cparams = pltpu.CompilerParams(
        dimension_semantics=("parallel", "parallel"),
        vmem_limit_bytes=48 * 1024 * 1024)

    if stride == 1:
        add_residual = (in_channels == out_channels)
        kernel = functools.partial(_bneck_s1_kernel, tile_h=tile_h,
                                   add_residual=add_residual, cin=Cin,
                                   compute_dtype=compute_dtype)
        grid_spec = pltpu.PrefetchScalarGridSpec(
            num_scalar_prefetch=0,
            grid=(N, n_ht),
            in_specs=[pl.BlockSpec((1, H + 2, W + 2, Cx),
                                   lambda n, h: (n, 0, 0, 0))] + w_specs,
            out_specs=out_spec)
        out = pl.pallas_call(kernel, out_shape=out_shape, grid_spec=grid_spec,
                             compiler_params=cparams)(xa, w1, wd, b2, w3, b3)
    else:
        # Space-to-depth split of the padded image into 4 even/odd phases so the
        # stride-2 depthwise uses only contiguous slices inside the kernel.
        Hs, Ws = (H + 2) // 2, (W + 2) // 2
        xr = xa.reshape(N, Hs, 2, Ws, 2, Cx)
        xee = xr[:, :, 0, :, 0, :]
        xeo = xr[:, :, 0, :, 1, :]
        xoe = xr[:, :, 1, :, 0, :]
        xoo = xr[:, :, 1, :, 1, :]
        kernel = functools.partial(_bneck_s2_kernel, tile_h=tile_h,
                                   compute_dtype=compute_dtype)
        xspec = pl.BlockSpec((1, Hs, Ws, Cx), lambda n, h: (n, 0, 0, 0))
        grid_spec = pltpu.PrefetchScalarGridSpec(
            num_scalar_prefetch=0,
            grid=(N, n_ht),
            in_specs=[xspec, xspec, xspec, xspec] + w_specs,
            out_specs=out_spec)
        out = pl.pallas_call(kernel, out_shape=out_shape, grid_spec=grid_spec,
                             compiler_params=cparams)(
                                 xee, xeo, xoe, xoo, w1, wd, b2, w3, b3)

    out = out[..., :out_channels]          # drop lane padding
    return jnp.transpose(out, (0, 3, 1, 2))


# ----------------------------------------------------------------------------
# Synthetic parameters (BN folded in eval mode) and a pure-JAX reference
# ----------------------------------------------------------------------------
def init_params(key, in_channels, out_channels, t=6):
    Ce = in_channels * t
    eps = 1e-5
    ks = jax.random.split(key, 18)

    def nrm(k, shape, s=0.1):
        return s * jax.random.normal(k, shape, jnp.float32)

    w1 = nrm(ks[0], (in_channels, Ce))
    cb1 = nrm(ks[1], (Ce,))
    wd = nrm(ks[2], (3, 3, Ce))
    cbd = nrm(ks[3], (Ce,))
    w3 = nrm(ks[4], (Ce, out_channels))
    cb3 = nrm(ks[5], (out_channels,))

    def bn(kg, kb, km, kv, C):
        gamma = 1.0 + 0.1 * jax.random.normal(kg, (C,), jnp.float32)
        beta = 0.1 * jax.random.normal(kb, (C,), jnp.float32)
        mean = 0.1 * jax.random.normal(km, (C,), jnp.float32)
        var = jax.random.uniform(kv, (C,), jnp.float32, 0.5, 1.5)
        return gamma, beta, mean, var

    g1, be1, m1, v1 = bn(ks[6], ks[7], ks[8], ks[9], Ce)
    g2, be2, m2, v2 = bn(ks[10], ks[11], ks[12], ks[13], Ce)
    g3, be3, m3, v3 = bn(ks[14], ks[15], ks[16], ks[17], out_channels)

    s1 = g1 / jnp.sqrt(v1 + eps)
    s2 = g2 / jnp.sqrt(v2 + eps)
    s3 = g3 / jnp.sqrt(v3 + eps)

    return {
        "w1": w1 * s1[None, :], "b1": (cb1 - m1) * s1 + be1,
        "wd": wd * s2[None, None, :], "b2": (cbd - m2) * s2 + be2,
        "w3": w3 * s3[None, :], "b3": (cb3 - m3) * s3 + be3,
    }


def ref_forward(x_nchw, p, *, stride, in_channels, out_channels,
                use_bf16_matmul=False):
    """Pure-JAX reference of the BN-folded forward (mirrors the matmul dtype)."""
    cd = jnp.bfloat16 if use_bf16_matmul else jnp.float32
    x = jnp.transpose(x_nchw, (0, 2, 3, 1)).astype(jnp.float32)
    N, H, W, _ = x.shape
    Ce = p["w1"].shape[1]
    Ho = (H - 1) // stride + 1
    Wo = (W - 1) // stride + 1

    b1 = p["b1"].astype(cd).astype(jnp.float32)
    y1 = jnp.einsum("nhwc,ce->nhwe", x.astype(cd), p["w1"].astype(cd),
                    preferred_element_type=jnp.float32) + b1
    y1 = jnp.clip(y1, 0.0, 6.0)
    y1p = jnp.pad(y1, ((0, 0), (1, 1), (1, 1), (0, 0)))
    y2 = jnp.zeros((N, Ho, Wo, Ce), jnp.float32)
    for kh in range(3):
        for kw in range(3):
            patch = y1p[:, kh:kh + (Ho - 1) * stride + 1:stride,
                        kw:kw + (Wo - 1) * stride + 1:stride, :]
            y2 = y2 + patch * p["wd"][kh, kw]
    y2 = jnp.clip(y2 + p["b2"], 0.0, 6.0)
    y3 = jnp.einsum("nhwc,co->nhwo", y2.astype(cd), p["w3"].astype(cd),
                    preferred_element_type=jnp.float32) + p["b3"]
    if stride == 1 and in_channels == out_channels:
        y3 = y3 + x
    return jnp.transpose(y3, (0, 3, 1, 2))


# ----------------------------------------------------------------------------
if __name__ == "__main__":
    key = jax.random.PRNGKey(0)
    kx, kp1, kp2 = jax.random.split(key, 3)

    N, Cin, H, W, t = 2, 4, 16, 16, 6
    x = jax.random.normal(kx, (N, Cin, H, W), jnp.float32)

    # 1) stride=1, Cin==Cout (residual branch), exact f32 matmuls, 2 row tiles.
    p1 = init_params(kp1, Cin, Cin, t=t)
    out = linear_bottleneck_pallas(x, p1, stride=1, in_channels=Cin,
                                   out_channels=Cin, tile_h=8,
                                   use_bf16_matmul=False)
    out = jax.block_until_ready(out)
    ref = ref_forward(x, p1, stride=1, in_channels=Cin, out_channels=Cin,
                      use_bf16_matmul=False)
    err = float(jnp.max(jnp.abs(out - ref)))
    assert err < 2e-3, f"stride1/f32 max abs err {err}"

    # 2) stride=1, bf16 MXU operands (default fast path), 4 row tiles.
    out = linear_bottleneck_pallas(x, p1, stride=1, in_channels=Cin,
                                   out_channels=Cin, tile_h=4,
                                   use_bf16_matmul=True)
    out = jax.block_until_ready(out)
    ref = ref_forward(x, p1, stride=1, in_channels=Cin, out_channels=Cin,
                      use_bf16_matmul=True)
    err = float(jnp.max(jnp.abs(out - ref)))
    assert err < 2e-2, f"stride1/bf16 max abs err {err}"

    # 3) stride=2, Cin != Cout (no residual), f32, 2 row tiles.
    Cout2 = 8
    p2 = init_params(kp2, Cin, Cout2, t=t)
    out = linear_bottleneck_pallas(x, p2, stride=2, in_channels=Cin,
                                   out_channels=Cout2, tile_h=4,
                                   use_bf16_matmul=False)
    out = jax.block_until_ready(out)
    ref = ref_forward(x, p2, stride=2, in_channels=Cin, out_channels=Cout2,
                      use_bf16_matmul=False)
    err = float(jnp.max(jnp.abs(out - ref)))
    assert err < 2e-3, f"stride2/f32 max abs err {err}"

    print("KERNEL_OK")
</pallas_src>

<mosaic_0001>
module attributes {stable_mosaic.version = 11 : i64} {
  func.func @_bneck_s1_kernel(%arg0: i32, %arg1: i32, %arg2: memref<1x18x18x5xf32, #tpu.memory_space<vmem>>, %arg3: memref<5x128xf32, #tpu.memory_space<vmem>>, %arg4: memref<9x1x128xf32, #tpu.memory_space<vmem>>, %arg5: memref<1x128xf32, #tpu.memory_space<vmem>>, %arg6: memref<128x128xf32, #tpu.memory_space<vmem>>, %arg7: memref<1x128xf32, #tpu.memory_space<vmem>>, %arg8: memref<1x8x16x128xf32, #tpu.memory_space<vmem>>) attributes {dimension_semantics = [#tpu.dimension_semantics<parallel>, #tpu.dimension_semantics<parallel>], iteration_bounds = array<i64: 2, 2>, scalar_prefetch = 0 : i64, scratch_operands = 0 : i64, tpu.core_type = #tpu.core_type<tc>, window_params = [{transform_indices = @transform_0, window_bounds = array<i64: 1, 18, 18, 5>}, {pipeline_mode = #tpu.pipeline_mode<synchronous>, transform_indices = @transform_1, window_bounds = array<i64: 5, 128>}, {pipeline_mode = #tpu.pipeline_mode<synchronous>, transform_indices = @transform_2, window_bounds = array<i64: 9, 1, 128>}, {pipeline_mode = #tpu.pipeline_mode<synchronous>, transform_indices = @transform_3, window_bounds = array<i64: 1, 128>}, {pipeline_mode = #tpu.pipeline_mode<synchronous>, transform_indices = @transform_4, window_bounds = array<i64: 128, 128>}, {pipeline_mode = #tpu.pipeline_mode<synchronous>, transform_indices = @transform_5, window_bounds = array<i64: 1, 128>}, {transform_indices = @transform_6, window_bounds = array<i64: 1, 8, 16, 128>}]} {
    %c8_i32 = arith.constant 8 : i32
    %0 = arith.muli %arg1, %c8_i32 : i32
    %1 = tpu.assume_multiple %0, 8 : i32
    %c0 = arith.constant 0 : index
    %2 = arith.index_cast %1 : i32 to index
    %c0_0 = arith.constant 0 : index
    %c0_1 = arith.constant 0 : index
    %3 = vector.load %arg2[%c0, %2, %c0_0, %c0_1] : memref<1x18x18x5xf32, #tpu.memory_space<vmem>>, vector<1x10x18x5xf32>
    %4 = vector.shape_cast %3 : vector<1x10x18x5xf32> to vector<10x18x5xf32>
    %5 = vector.shape_cast %4 : vector<10x18x5xf32> to vector<180x5xf32>
    %c0_2 = arith.constant 0 : index
    %c0_3 = arith.constant 0 : index
    %6 = vector.load %arg3[%c0_2, %c0_3] : memref<5x128xf32, #tpu.memory_space<vmem>>, vector<5x128xf32>
    %cst = arith.constant dense<0.000000e+00> : vector<180x128xf32>
    %7 = tpu.matmul %5, %6, %cst {dimension_numbers = #tpu.dot_dimension_numbers<[1], [0], [0], [1], [0, 0, 1, 1], [], []>} : vector<180x5xf32>, vector<5x128xf32>, vector<180x128xf32> -> vector<180x128xf32>
    %cst_4 = arith.constant 0.000000e+00 : f32
    %cst_5 = arith.constant 6.000000e+00 : f32
    %8 = vector.broadcast %cst_4 : f32 to vector<180x128xf32>
    %9 = arith.maximumf %8, %7 : vector<180x128xf32>
    %10 = vector.broadcast %cst_5 : f32 to vector<180x128xf32>
    %11 = arith.minimumf %10, %9 : vector<180x128xf32>
    %12 = vector.shape_cast %11 : vector<180x128xf32> to vector<10x18x128xf32>
    %c0_6 = arith.constant 0 : index
    %c0_7 = arith.constant 0 : index
    %c0_8 = arith.constant 0 : index
    %13 = vector.load %arg4[%c0_6, %c0_7, %c0_8] : memref<9x1x128xf32, #tpu.memory_space<vmem>>, vector<9x1x128xf32>
    %c0_9 = arith.constant 0 : index
    %c0_10 = arith.constant 0 : index
    %14 = vector.load %arg5[%c0_9, %c0_10] : memref<1x128xf32, #tpu.memory_space<vmem>>, vector<1x128xf32>
    %15 = vector.shape_cast %14 : vector<1x128xf32> to vector<1x1x128xf32>
    %16 = vector.shape_cast %15 : vector<1x1x128xf32> to vector<1x1x128xf32>
    %17 = vector.broadcast %16 : vector<1x1x128xf32> to vector<8x16x128xf32>
    %18 = vector.extract_strided_slice %12 {offsets = [0, 0, 0], sizes = [8, 16, 128], strides = [1, 1, 1]} : vector<10x18x128xf32> to vector<8x16x128xf32>
    %19 = vector.extract_strided_slice %13 {offsets = [0, 0, 0], sizes = [1, 1, 128], strides = [1, 1, 1]} : vector<9x1x128xf32> to vector<1x1x128xf32>
    %20 = vector.shape_cast %19 : vector<1x1x128xf32> to vector<1x128xf32>
    %21 = vector.shape_cast %20 : vector<1x128xf32> to vector<1x1x128xf32>
    %22 = vector.broadcast %21 : vector<1x1x128xf32> to vector<8x16x128xf32>
    %23 = arith.mulf %18, %22 : vector<8x16x128xf32>
    %24 = arith.addf %17, %23 : vector<8x16x128xf32>
    %25 = vector.extract_strided_slice %12 {offsets = [0, 1, 0], sizes = [8, 16, 128], strides = [1, 1, 1]} : vector<10x18x128xf32> to vector<8x16x128xf32>
    %26 = vector.extract_strided_slice %13 {offsets = [1, 0, 0], sizes = [1, 1, 128], strides = [1, 1, 1]} : vector<9x1x128xf32> to vector<1x1x128xf32>
    %27 = vector.shape_cast %26 : vector<1x1x128xf32> to vector<1x128xf32>
    %28 = vector.shape_cast %27 : vector<1x128xf32> to vector<1x1x128xf32>
    %29 = vector.broadcast %28 : vector<1x1x128xf32> to vector<8x16x128xf32>
    %30 = arith.mulf %25, %29 : vector<8x16x128xf32>
    %31 = arith.addf %24, %30 : vector<8x16x128xf32>
    %32 = vector.extract_strided_slice %12 {offsets = [0, 2, 0], sizes = [8, 16, 128], strides = [1, 1, 1]} : vector<10x18x128xf32> to vector<8x16x128xf32>
    %33 = vector.extract_strided_slice %13 {offsets = [2, 0, 0], sizes = [1, 1, 128], strides = [1, 1, 1]} : vector<9x1x128xf32> to vector<1x1x128xf32>
    %34 = vector.shape_cast %33 : vector<1x1x128xf32> to vector<1x128xf32>
    %35 = vector.shape_cast %34 : vector<1x128xf32> to vector<1x1x128xf32>
    %36 = vector.broadcast %35 : vector<1x1x128xf32> to vector<8x16x128xf32>
    %37 = arith.mulf %32, %36 : vector<8x16x128xf32>
    %38 = arith.addf %31, %37 : vector<8x16x128xf32>
    %39 = vector.extract_strided_slice %12 {offsets = [1, 0, 0], sizes = [8, 16, 128], strides = [1, 1, 1]} : vector<10x18x128xf32> to vector<8x16x128xf32>
    %40 = vector.extract_strided_slice %13 {offsets = [3, 0, 0], sizes = [1, 1, 128], strides = [1, 1, 1]} : vector<9x1x128xf32> to vector<1x1x128xf32>
    %41 = vector.shape_cast %40 : vector<1x1x128xf32> to vector<1x128xf32>
    %42 = vector.shape_cast %41 : vector<1x128xf32> to vector<1x1x128xf32>
    %43 = vector.broadcast %42 : vector<1x1x128xf32> to vector<8x16x128xf32>
    %44 = arith.mulf %39, %43 : vector<8x16x128xf32>
    %45 = arith.addf %38, %44 : vector<8x16x128xf32>
    %46 = vector.extract_strided_slice %12 {offsets = [1, 1, 0], sizes = [8, 16, 128], strides = [1, 1, 1]} : vector<10x18x128xf32> to vector<8x16x128xf32>
    %47 = vector.extract_strided_slice %13 {offsets = [4, 0, 0], sizes = [1, 1, 128], strides = [1, 1, 1]} : vector<9x1x128xf32> to vector<1x1x128xf32>
    %48 = vector.shape_cast %47 : vector<1x1x128xf32> to vector<1x128xf32>
    %49 = vector.shape_cast %48 : vector<1x128xf32> to vector<1x1x128xf32>
    %50 = vector.broadcast %49 : vector<1x1x128xf32> to vector<8x16x128xf32>
    %51 = arith.mulf %46, %50 : vector<8x16x128xf32>
    %52 = arith.addf %45, %51 : vector<8x16x128xf32>
    %53 = vector.extract_strided_slice %12 {offsets = [1, 2, 0], sizes = [8, 16, 128], strides = [1, 1, 1]} : vector<10x18x128xf32> to vector<8x16x128xf32>
    %54 = vector.extract_strided_slice %13 {offsets = [5, 0, 0], sizes = [1, 1, 128], strides = [1, 1, 1]} : vector<9x1x128xf32> to vector<1x1x128xf32>
    %55 = vector.shape_cast %54 : vector<1x1x128xf32> to vector<1x128xf32>
    %56 = vector.shape_cast %55 : vector<1x128xf32> to vector<1x1x128xf32>
    %57 = vector.broadcast %56 : vector<1x1x128xf32> to vector<8x16x128xf32>
    %58 = arith.mulf %53, %57 : vector<8x16x128xf32>
    %59 = arith.addf %52, %58 : vector<8x16x128xf32>
    %60 = vector.extract_strided_slice %12 {offsets = [2, 0, 0], sizes = [8, 16, 128], strides = [1, 1, 1]} : vector<10x18x128xf32> to vector<8x16x128xf32>
    %61 = vector.extract_strided_slice %13 {offsets = [6, 0, 0], sizes = [1, 1, 128], strides = [1, 1, 1]} : vector<9x1x128xf32> to vector<1x1x128xf32>
    %62 = vector.shape_cast %61 : vector<1x1x128xf32> to vector<1x128xf32>
    %63 = vector.shape_cast %62 : vector<1x128xf32> to vector<1x1x128xf32>
    %64 = vector.broadcast %63 : vector<1x1x128xf32> to vector<8x16x128xf32>
    %65 = arith.mulf %60, %64 : vector<8x16x128xf32>
    %66 = arith.addf %59, %65 : vector<8x16x128xf32>
    %67 = vector.extract_strided_slice %12 {offsets = [2, 1, 0], sizes = [8, 16, 128], strides = [1, 1, 1]} : vector<10x18x128xf32> to vector<8x16x128xf32>
    %68 = vector.extract_strided_slice %13 {offsets = [7, 0, 0], sizes = [1, 1, 128], strides = [1, 1, 1]} : vector<9x1x128xf32> to vector<1x1x128xf32>
    %69 = vector.shape_cast %68 : vector<1x1x128xf32> to vector<1x128xf32>
    %70 = vector.shape_cast %69 : vector<1x128xf32> to vector<1x1x128xf32>
    %71 = vector.broadcast %70 : vector<1x1x128xf32> to vector<8x16x128xf32>
    %72 = arith.mulf %67, %71 : vector<8x16x128xf32>
    %73 = arith.addf %66, %72 : vector<8x16x128xf32>
    %74 = vector.extract_strided_slice %12 {offsets = [2, 2, 0], sizes = [8, 16, 128], strides = [1, 1, 1]} : vector<10x18x128xf32> to vector<8x16x128xf32>
    %75 = vector.extract_strided_slice %13 {offsets = [8, 0, 0], sizes = [1, 1, 128], strides = [1, 1, 1]} : vector<9x1x128xf32> to vector<1x1x128xf32>
    %76 = vector.shape_cast %75 : vector<1x1x128xf32> to vector<1x128xf32>
    %77 = vector.shape_cast %76 : vector<1x128xf32> to vector<1x1x128xf32>
    %78 = vector.broadcast %77 : vector<1x1x128xf32> to vector<8x16x128xf32>
    %79 = arith.mulf %74, %78 : vector<8x16x128xf32>
    %80 = arith.addf %73, %79 : vector<8x16x128xf32>
    %cst_11 = arith.constant 0.000000e+00 : f32
    %cst_12 = arith.constant 6.000000e+00 : f32
    %81 = vector.broadcast %cst_11 : f32 to vector<8x16x128xf32>
    %82 = arith.maximumf %81, %80 : vector<8x16x128xf32>
    %83 = vector.broadcast %cst_12 : f32 to vector<8x16x128xf32>
    %84 = arith.minimumf %83, %82 : vector<8x16x128xf32>
    %85 = vector.shape_cast %84 : vector<8x16x128xf32> to vector<128x128xf32>
    %c0_13 = arith.constant 0 : index
    %c0_14 = arith.constant 0 : index
    %86 = vector.load %arg6[%c0_13, %c0_14] : memref<128x128xf32, #tpu.memory_space<vmem>>, vector<128x128xf32>
    %cst_15 = arith.constant dense<0.000000e+00> : vector<128x128xf32>
    %87 = tpu.matmul %85, %86, %cst_15 {dimension_numbers = #tpu.dot_dimension_numbers<[1], [0], [0], [1], [0, 0, 1, 1], [], []>} : vector<128x128xf32>, vector<128x128xf32>, vector<128x128xf32> -> vector<128x128xf32>
    %c0_16 = arith.constant 0 : index
    %c0_17 = arith.constant 0 : index
    %88 = vector.load %arg7[%c0_16, %c0_17] : memref<1x128xf32, #tpu.memory_space<vmem>>, vector<1x128xf32>
    %89 = vector.broadcast %88 : vector<1x128xf32> to vector<128x128xf32>
    %90 = arith.addf %87, %89 : vector<128x128xf32>
    %91 = vector.shape_cast %90 : vector<128x128xf32> to vector<8x16x128xf32>
    %c0_18 = arith.constant 0 : index
    %c0_19 = arith.constant 0 : index
    %c0_20 = arith.constant 0 : index
    %c0_21 = arith.constant 0 : index
    %92 = vector.load %arg8[%c0_18, %c0_19, %c0_20, %c0_21] : memref<1x8x16x128xf32, #tpu.memory_space<vmem>>, vector<1x8x16x128xf32>
    %93 = vector.shape_cast %92 : vector<1x8x16x128xf32> to vector<8x16x128xf32>
    %94 = vector.shape_cast %91 : vector<8x16x128xf32> to vector<1x8x16x128xf32>
    tpu.vector_store %arg8[%c0_18, %c0_19, %c0_20, %c0_21], %94 {strides = array<i32>} : memref<1x8x16x128xf32, #tpu.memory_space<vmem>>, vector<1x8x16x128xf32>,
    %95 = vector.extract_strided_slice %4 {offsets = [1, 1, 0], sizes = [8, 16, 4], strides = [1, 1, 1]} : vector<10x18x5xf32> to vector<8x16x4xf32>
    %96 = vector.extract_strided_slice %91 {offsets = [0, 0, 0], sizes = [8, 16, 4], strides = [1, 1, 1]} : vector<8x16x128xf32> to vector<8x16x4xf32>
    %97 = arith.addf %96, %95 : vector<8x16x4xf32>
    %c0_22 = arith.constant 0 : index
    %c0_23 = arith.constant 0 : index
    %c0_24 = arith.constant 0 : index
    %c0_25 = arith.constant 0 : index
    %98 = vector.load %arg8[%c0_22, %c0_23, %c0_24, %c0_25] : memref<1x8x16x128xf32, #tpu.memory_space<vmem>>, vector<1x8x16x4xf32>
    %99 = vector.shape_cast %98 : vector<1x8x16x4xf32> to vector<8x16x4xf32>
    %100 = vector.shape_cast %97 : vector<8x16x4xf32> to vector<1x8x16x4xf32>
    tpu.vector_store %arg8[%c0_22, %c0_23, %c0_24, %c0_25], %100 {strides = array<i32>} : memref<1x8x16x128xf32, #tpu.memory_space<vmem>>, vector<1x8x16x4xf32>,
    return
  }
  func.func @transform_0(%arg0: i32, %arg1: i32) -> (i32, i32, i32, i32) {
    %c0_i32 = arith.constant 0 : i32
    %c0_i32_0 = arith.constant 0 : i32
    %c0_i32_1 = arith.constant 0 : i32
    %c0_i32_2 = arith.constant 0 : i32
    return %arg0, %c0_i32, %c0_i32_0, %c0_i32_1 : i32, i32, i32, i32
  }
  func.func @transform_1(%arg0: i32, %arg1: i32) -> (i32, i32) {
    %c0_i32 = arith.constant 0 : i32
    %c0_i32_0 = arith.constant 0 : i32
    %c0_i32_1 = arith.constant 0 : i32
    return %c0_i32, %c0_i32_0 : i32, i32
  }
  func.func @transform_2(%arg0: i32, %arg1: i32) -> (i32, i32, i32) {
    %c0_i32 = arith.constant 0 : i32
    %c0_i32_0 = arith.constant 0 : i32
    %c0_i32_1 = arith.constant 0 : i32
    %c0_i32_2 = arith.constant 0 : i32
    return %c0_i32, %c0_i32_0, %c0_i32_1 : i32, i32, i32
  }
  func.func @transform_3(%arg0: i32, %arg1: i32) -> (i32, i32) {
    %c0_i32 = arith.constant 0 : i32
    %c0_i32_0 = arith.constant 0 : i32
    %c0_i32_1 = arith.constant 0 : i32
    return %c0_i32, %c0_i32_0 : i32, i32
  }
  func.func @transform_4(%arg0: i32, %arg1: i32) -> (i32, i32) {
    %c0_i32 = arith.constant 0 : i32
    %c0_i32_0 = arith.constant 0 : i32
    %c0_i32_1 = arith.constant 0 : i32
    return %c0_i32, %c0_i32_0 : i32, i32
  }
  func.func @transform_5(%arg0: i32, %arg1: i32) -> (i32, i32) {
    %c0_i32 = arith.constant 0 : i32
    %c0_i32_0 = arith.constant 0 : i32
    %c0_i32_1 = arith.constant 0 : i32
    return %c0_i32, %c0_i32_0 : i32, i32
  }
  func.func @transform_6(%arg0: i32, %arg1: i32) -> (i32, i32, i32, i32) {
    %c0_i32 = arith.constant 0 : i32
    %c0_i32_0 = arith.constant 0 : i32
    %c0_i32_1 = arith.constant 0 : i32
    return %arg0, %arg1, %c0_i32, %c0_i32_0 : i32, i32, i32, i32
  }
}

</mosaic_0001>

<bundles_post_ra>
// kernel: tpu_custom_call.1
= control target key start
LH: loop header
LB: loop body
LE: loop exit
PB: predicated region body
PF: predicated region fallthrough
CT: control target
= control target key end

     0   :  { %11 = vsyncpa [#allocation3], 0  ;;  %s10163_s0 = inlined_call_operand.vmem [shape: f32[2,18,18,5], index: 0, kind: input, shape index: {}]   ;;  %s10164_s1 = inlined_call_operand.vmem [shape: f32[5,128], index: 1, kind: input, shape index: {}]   ;;  %s10165_s2 = inlined_call_operand.vmem [shape: f32[9,1,128], index: 2, kind: input, shape index: {}]   ;;  %s10166_s3 = inlined_call_operand.vmem [shape: f32[1,128], index: 3, kind: input, shape index: {}]   ;;  %s10167_s4 = inlined_call_operand.vmem [shape: f32[128,128], index: 4, kind: input, shape index: {}]   ;;  %s10168_s5 = inlined_call_operand.vmem [shape: f32[1,128], index: 5, kind: input, shape index: {}]   ;;  %s10169_s6 = inlined_call_operand.hbm [shape: f32[2,16,16,128], index: 6, kind: output, shape index: {}]  }
   0x1   :  { %13 = vsyncpa [#allocation3 + $0x1], 0  ;;  %s7355_s21 = smov 0   ;;  %s7357_s22 = smov 0  }
   0x2   :  { %s7359_s23 = smov 0   ;;  %s7361_s24 = smov 0  }
   0x3   :  { %s7363_s25 = smov 0   ;;  %s7365_s26 = smov 0  }
   0x4   :  { %s7367_s27 = smov 0   ;;  %s7369_s28 = smov 0  }
   0x5 LB: > { %s6817_s29 = sadd.s32 4294967295, %s7312_s28   ;;  %s6818_s30 = sadd.s32 4294967294, %s7312_s28   ;;  %s7312_s28 = sphi %s7369_s28, %s19_s28   ;;  %s7308_s27 = sphi %s7367_s27, %s10902_s27   ;;  %s7304_s26 = sphi %s7365_s26, %s10901_s26   ;;  %s7300_s25 = sphi %s7363_s25, %s10900_s25   ;;  %s7296_s24 = sphi %s7361_s24, %s10899_s24   ;;  %s7292_s23 = sphi %s7359_s23, %s10898_s23   ;;  %s7288_s22 = sphi %s7357_s22, %s10897_s22   ;;  %s7284_s21 = sphi %s7355_s21, %s10896_s21  }
   0x6   : > { %s28_s7 = sadd.s32 1, %s7304_s26  ;;  %s31_s8 = sadd.s32 1, %s7308_s27 }
   0x7   : > { %p29_p0 = scmp.ge.s32.totalorder %s28_s7, 2  ;;  %p181_p1 = scmp.ne.s32.totalorder %s7292_s23, %s7288_s22 }
   0x8   : > { %p182_p2 = scmp.eq.s32.totalorder %s6817_s29, 3  ;;  %p187_p5 = scmp.ne.s32.totalorder %s7288_s22, %s7284_s21 }
   0x9   : > { %s10904_s7 = smov (%p29_p0, %s28_s7), 0  ;;  %s10906_s8 = smov (!%p29_p0, %s31_s8), %s7308_s27 }
   0xa   : > { %s167_s9 = ssub.s32 %s7304_s26, %s10904_s7  ;;  %p7406_p3 = por %p182_p2, %p181_p1 }
   0xb   : > { %p33_p4 = scmp.ge.s32.totalorder %s10906_s8, 2  ;;  %p188_p6 = scmp.eq.s32.totalorder %s6818_s30, 3 }
   0xc   : > { %p6821_p7 = scmp.ge.s32.totalorder %s7312_s28, 1  ;;  %p229_p9 = scmp.lt.s32.totalorder %s7312_s28, 5 }
   0xd   : > { %s10908_s8 = smov (%p33_p4, %s10906_s8), 0  ;;  %p7415_p8 = por %p188_p6, %p187_p5 }
   0xe   : > { %s166_s12 = ssub.s32 %s7308_s27, %s10908_s8  ;;  %s171_s13 = sadd.s32 1, %s7292_s23 }
   0xf   : > { %s168_s14 = sor.u32 %s167_s9, %s166_s12  ;;  %p230_p10 = pnand %p6821_p7, %p229_p9 }
  0x10   : > { %p169_p11 = scmp.eq.s32.totalorder %s168_s14, 0 }
  0x11   : > { %233 = sbr.rel (%p230_p10) target bundleno = 964 (0x3c4), region = 44 }
  0x12   : > { %s7424_s15 = scalar_select %p169_p11, %s7292_s23, %s171_s13  }
  0x18   : > { %v738_v0 = vld [vmem:[%s10164_s1] sm:$0x1f]  ;;  %vm1168_vm0 = vcmask 1044480   ;;  %p259_p12 = scmp.lt.s32.totalorder %s7300_s25, 1  ;;  %v332_v1 = vlaneseq  ;;  %v7314_v2 = vmov 0.0   ;;  %vm7315_vm1 = vmmov 0  }
  0x19   : > { %6927 = vmatprep.subr.mxu0 %v7314_v2  ;;  %6929 = vmatprep.mubr.msk.f32.mxu0 %vm7315_vm1, %v7314_v2  ;;  %v7316_v3 = vmov 1983009808   ;;  %s6825_s19 = smul.u32 192, %s7296_s24  ;;  %vm1121_vm2 = vcmask 39936   ;;  %vm2389_vm3 = vcmask 1040384   ;;  %vm2390_vm4 = vcmask 1042434  }
  0x1a   : > { %6928 = vmatpush3.msk.msra.mxu0 %vm1168_vm0, %v738_v0  ;;  %s260_s18 = scalar_select %p259_p12, %s7300_s25, 1  ;;  %v330_v4 = vunpack.c.l.s4 %v7316_v3  ;;  %v333_v5 = vshrl.u32 %v332_v1, 7  ;;  %vm2391_vm5 = vmor %vm2389_vm3, %vm2390_vm4  ;;  %vm2392_vm6 = vcmask 1044484   ;;  %vm2394_vm8 = vcmask 1046534  }
  0x1b   : > { %vm2393_vm7 = vmor %vm2391_vm5, %vm2392_vm6  ;;  %vm2886_vm10 = vcmask 1046528   ;;  %s256_s30 = sand.u32 1, %s7288_s22   ;;  %vm6705_vm11 = vcmask 31744   ;;  %s6870_s17 = sshll.u32 %s7296_s24, 4 }
  0x1c   : > { %s7086_s20 = smul.u32 432, %s260_s18  ;;  %v331_v6 = vunpack.c.0.s8 %v330_v4  ;;  %vm7703_vm9 = vmor %vm2393_vm7, %vm2394_vm8  ;;  %s6866_s18 = sshll.u32 %s7300_s25, 5 }
  0x1d   : > { %s7317_s14 = smov [#allocation2]  }
  0x1e   : > { %s263_s9 = scalar_lea.vmem %s10163_s0, %s7086_s20  ;;  %v7438_v7 = vsub.s32 %v331_v6, %v333_v5 }
  0x1f   : > { %s7440_s12 = scalar_lea.vmem %s263_s9, %s6825_s19  ;;  %s6822_s9 = sshll.u32 %s256_s30, 7 }
  0x20   : > { %v268_v8 = vld [vmem:[%s7440_s12] sm:$0xff]  ;;  %v269_v9 = vld [vmem:[%s7440_s12 + $0x8] sm:$0xff]  ;;  %v271_v14 = vld [vmem:[%s7440_s12 + $0x18] sm:$0xff]  ;;  %s9988_s16 = scalar_lea.vmem [#allocation2], %s6822_s9  ;;  %s6736_s19 = sadd.s32 %s6870_s17, %s6866_s18 }
  0x21   : > { %v328_v10 = vcombine.high %v268_v8, %v268_v8  ;;  %v335_v11 = vrot.slane %v268_v8, %v7438_v7  ;;  %v345_v12 = vcombine.high %v269_v9, %v269_v9  ;;  %v352_v13 = vrot.slane %v269_v9, %v7438_v7  ;;  %v272_v15 = vld [vmem:[%s7440_s12 + $0x20] sm:$0xff]  ;;  %v6826_v24 = vld.sshfl [vmem:[%s7440_s12 + $0x10] sm:$0x3 pattern:$0x76325410]  ;;  %v275_v45 = vld [vmem:[%s7440_s12 + $0x38] sm:$0xff] }
  0x22   : > { %v369_v16 = vcombine.high %v271_v14, %v271_v14  ;;  %v376_v17 = vrot.slane %v271_v14, %v7438_v7  ;;  %v386_v18 = vcombine.high %v272_v15, %v272_v15  ;;  %v393_v19 = vrot.slane %v272_v15, %v7438_v7  ;;  %v274_v34 = vld [vmem:[%s7440_s12 + $0x30] sm:$0xff]  ;;  %v7210_v43 = vld.sshfl [vmem:[%s7440_s12 + $0x28] sm:$0x3 pattern:$0x76325410]  ;;  %s6739_s20 = sshll.u32 %s9988_s16, 4  ;;  %s10097_s20 = int_to_ptr.vmem [resolvable:$true] %s6739_s20 }
  0x23   : > { %v342_v20 = vrot.slane %v328_v10, %v7438_v7  ;;  %v343_v21 = vcombine.high %v335_v11, %v335_v11  ;;  %v359_v22 = vrot.slane %v345_v12, %v7438_v7  ;;  %v360_v23 = vcombine.high %v352_v13, %v352_v13  ;;  %v277_v58 = vld [vmem:[%s7440_s12 + $0x48] sm:$0xff]  ;;  %v7211_v0 = vld.sshfl [vmem:[%s7440_s12 + $0x40] sm:$0x3 pattern:$0x76325410]  ;;  %v278_v6 = vld [vmem:[%s7440_s12 + $0x50] sm:$0xff] }
  0x24   : > { %v383_v25 = vrot.slane %v369_v16, %v7438_v7  ;;  %v384_v26 = vcombine.high %v376_v17, %v376_v17  ;;  %v773_v31 = vcombine.low %v6826_v24, %v376_v17  ;;  %v400_v33 = vrot.slane %v386_v18, %v7438_v7  ;;  %v280_v17 = vld [vmem:[%s7440_s12 + $0x60] sm:$0xff]  ;;  %s6867_s24 = sshll.u32 %s6736_s19, 7  ;;  %s10111_s9 = scalar_lea.sflag [#allocation3], %s256_s30 }
  0x25   : > { %v344_v27 = vcombine.high %v342_v20, %v342_v20  ;;  %v739_v28 = vcombine.low %v335_v11, %v343_v21  ;;  %v361_v29 = vcombine.high %v359_v22, %v359_v22  ;;  %v756_v30 = vcombine.low %v352_v13, %v360_v23  ;;  %s10103_s29 = scalar_lea.hbm %s10169_s6, %s6867_s24  ;;  %s7218_s13 = scalar_lea.vmem %s10097_s20, 2048 }
  0x26   : > { %v385_v32 = vcombine.high %v383_v25, %v383_v25  ;;  %v401_v38 = vcombine.high %v393_v19, %v393_v19  ;;  %v774_v39 = vcombine.low %v384_v26, %v383_v25  ;;  %v417_v44 = vrot.slane %v274_v34, %v7438_v7  ;;  %p7219_p13 = scmp.ne.s32.totalorder %s10097_s20, %s7218_s13  ;;  %s7222_s17 = sshll.u32 %s7317_s14, 4  ;;  %s7223_s17 = int_to_ptr.vmem [resolvable:$false] %s7222_s17 }
  0x27   : > { %v740_v35 = vcombine.low %v342_v20, %v344_v27  ;;  %v747_v36 = vrot.slane %v739_v28, %v7438_v7  ;;  %v757_v37 = vcombine.low %v359_v22, %v361_v29  ;;  %v764_v41 = vrot.slane %v756_v30, %v7438_v7  ;;  %v7212_v27 = vld.sshfl [vmem:[%s7440_s12 + $0x58] sm:$0x3 pattern:$0x76325410]  ;;  %v281_v29 = vld [vmem:[%s7440_s12 + $0x68] sm:$0xff]  ;;  %s7224_s18 = scalar_lea.vmem %s7223_s17, 4096  ;;  %p7225_p2 = scmp.lt.s32.totalorder %s10097_s20, %s7223_s17 }
  0x28   : > { %v410_v46 = vcombine.high %v274_v34, %v274_v34  ;;  %v781_v48 = vrot.slane %v773_v31, %v7438_v7  ;;  %v790_v49 = vcombine.low %v385_v32, %v393_v19  ;;  %v791_v50 = vcombine.low %v401_v38, %v400_v33  ;;  %p7220_p0 = pnand %p7219_p13, %p7406_p3  ;;  %p7226_p4 = scmp.lt.s32.totalorder %s7224_s18, %s7218_s13 }
  0x29   : > { %v754_v40 = vrot.slane %v740_v35, %v7438_v7  ;;  %v771_v42 = vrot.slane %v757_v37, %v7438_v7  ;;  %v402_v51 = vcombine.high %v400_v33, %v400_v33  ;;  %v434_v53 = vrot.slane %v275_v45, %v7438_v7 }
  0x2a   : > { %v424_v52 = vrot.slane %v410_v46, %v7438_v7  ;;  %v788_v55 = vrot.slane %v774_v39, %v7438_v7  ;;  %v425_v56 = vcombine.high %v417_v44, %v417_v44  ;;  %v427_v57 = vcombine.high %v275_v45, %v275_v45  ;;  %p7221_p1 = pneg %p7220_p0  ;;  %p7227_p5 = por %p7226_p4, %p7225_p2 }
  0x2b   : > { %v755_v47 = vcombine.low %v747_v36, %v754_v40  ;;  %v772_v54 = vcombine.low %v764_v41, %v771_v42  ;;  %v798_v59 = vrot.slane %v790_v49, %v7438_v7  ;;  %v805_v60 = vrot.slane %v791_v50, %v7438_v7  ;;  %v283_v49 = vld [vmem:[%s7440_s12 + $0x78] sm:$0xff] }
  0x2c   : > { %v807_v61 = vcombine.low %v402_v51, %v7210_v43  ;;  %v426_v62 = vcombine.high %v424_v52, %v424_v52  ;;  %v442_v63 = vcombine.high %v434_v53, %v434_v53  ;;  %v789_v1 = vcombine.low %v781_v48, %v788_v55  ;;  %p7228_p6 = pnand %p7227_p5, %p7221_p1 }
  0x2d   : > { %6930 = vmatmul.mubr.msk.f32.vlgmr.msra.gmra.mrb[0].mxu0 %vm1121_vm2, %v755_v47  ;;  %v808_v3 = vcombine.low %v417_v44, %v425_v56  ;;  %v441_v4 = vrot.slane %v427_v57, %v7438_v7  ;;  %v451_v5 = vcombine.high %v277_v58, %v277_v58  ;;  %v458_v8 = vrot.slane %v277_v58, %v7438_v7 }
  0x2e   : > { %6932 = vmatprep.mubr.msk.f32.mxu0 %vm7315_vm1, %v7314_v2  ;;  %v806_v9 = vcombine.low %v798_v59, %v805_v60  ;;  %v815_v10 = vrot.slane %v807_v61, %v7438_v7  ;;  %v824_v11 = vcombine.low %v424_v52, %v426_v62  ;;  %v825_v12 = vcombine.low %v434_v53, %v442_v63  ;;  %v7213_v53 = vld.sshfl [vmem:[%s7440_s12 + $0x70] sm:$0x3 pattern:$0x76325410]  ;;  %v284_v60 = vld [vmem:[%s7440_s12 + $0x80] sm:$0xff] }
  0x2f   : > { %v822_v13 = vrot.slane %v808_v3, %v7438_v7  ;;  %v443_v14 = vcombine.high %v441_v4, %v441_v4  ;;  %v465_v15 = vrot.slane %v451_v5, %v7438_v7  ;;  %v468_v16 = vcombine.high %v278_v6, %v278_v6 }
  0x30   : > { %v842_v18 = vcombine.low %v7211_v0, %v458_v8  ;;  %v466_v19 = vcombine.high %v458_v8, %v458_v8  ;;  %v832_v20 = vrot.slane %v824_v11, %v7438_v7  ;;  %v839_v21 = vrot.slane %v825_v12, %v7438_v7  ;;  %v286_v8 = vld [vmem:[%s7440_s12 + $0x90] sm:$0xff] }
  0x31   : > { %6933 = vmatmul.mubr.msk.f32.gmra.mrb[2].mxu0 %vm1121_vm2, %v772_v54  ;;  %v475_v22 = vrot.slane %v278_v6, %v7438_v7  ;;  %v492_v23 = vcombine.high %v280_v17, %v280_v17  ;;  %v823_v24 = vcombine.low %v815_v10, %v822_v13  ;;  %v841_v25 = vcombine.low %v441_v4, %v443_v14 }
  0x32   : > { %6935 = vmatprep.mubr.msk.f32.mxu0 %vm7315_vm1, %v7314_v2  ;;  %v467_v26 = vcombine.high %v465_v15, %v465_v15  ;;  %v482_v28 = vrot.slane %v468_v16, %v7438_v7  ;;  %v856_v30 = vrot.slane %v842_v18, %v7438_v7  ;;  %v499_v32 = vrot.slane %v280_v17, %v7438_v7  ;;  %v7214_v18 = vld.sshfl [vmem:[%s7440_s12 + $0x88] sm:$0x3 pattern:$0x76325410] }
  0x33   : > { %v483_v31 = vcombine.high %v475_v22, %v475_v22  ;;  %v840_v33 = vcombine.low %v832_v20, %v839_v21  ;;  %v858_v34 = vcombine.low %v466_v19, %v465_v15  ;;  %v506_v35 = vrot.slane %v492_v23, %v7438_v7  ;;  %v287_v20 = vld [vmem:[%s7440_s12 + $0x98] sm:$0xff] }
  0x34   : > { %v849_v36 = vrot.slane %v841_v25, %v7438_v7  ;;  %v859_v37 = vcombine.low %v467_v26, %v475_v22  ;;  %v484_v38 = vcombine.high %v482_v28, %v482_v28  ;;  %v509_v39 = vcombine.high %v281_v29, %v281_v29 }
  0x35   : > { %6936 = vmatmul.mubr.msk.f32.gmra.mrb[4].mxu0 %vm1121_vm2, %v789_v1  ;;  %v507_v40 = vcombine.high %v499_v32, %v499_v32  ;;  %v866_v41 = vrot.slane %v858_v34, %v7438_v7  ;;  %v875_v42 = vcombine.low %v483_v31, %v482_v28  ;;  %v508_v43 = vcombine.high %v506_v35, %v506_v35  ;;  %v289_v31 = vld [vmem:[%s7440_s12 + $0xa8] sm:$0xff] }
  0x36   : > { %6938 = vmatprep.mubr.msk.f32.mxu0 %vm7315_vm1, %v7314_v2  ;;  %v516_v44 = vrot.slane %v281_v29, %v7438_v7  ;;  %v857_v45 = vcombine.low %v849_v36, %v856_v30  ;;  %v873_v46 = vrot.slane %v859_v37, %v7438_v7  ;;  %v876_v47 = vcombine.low %v484_v38, %v7212_v27  ;;  %v7215_v37 = vld.sshfl [vmem:[%s7440_s12 + $0xa0] sm:$0x3 pattern:$0x76325410] }
  0x37   : > { %v523_v48 = vrot.slane %v509_v39, %v7438_v7  ;;  %v892_v50 = vcombine.low %v499_v32, %v507_v40  ;;  %v893_v51 = vcombine.low %v506_v35, %v508_v43  ;;  %v533_v54 = vcombine.high %v283_v49, %v283_v49 }
  0x38   : > { %v524_v52 = vcombine.high %v516_v44, %v516_v44  ;;  %v540_v55 = vrot.slane %v283_v49, %v7438_v7  ;;  %v874_v56 = vcombine.low %v866_v41, %v873_v46  ;;  %v883_v57 = vrot.slane %v875_v42, %v7438_v7  ;;  %v290_v41 = vld [vmem:[%s7440_s12 + $0xb0] sm:$0xff] }
  0x39   : > { %6939 = vmatmul.mubr.msk.f32.gmra.mrb[6].mxu0 %vm1121_vm2, %v806_v9  ;;  %v890_v58 = vrot.slane %v876_v47, %v7438_v7  ;;  %v525_v59 = vcombine.high %v523_v48, %v523_v48  ;;  %v900_v61 = vrot.slane %v892_v50, %v7438_v7  ;;  %v907_v62 = vrot.slane %v893_v51, %v7438_v7 }
  0x3a   : > { %6941 = vmatprep.mubr.msk.f32.mxu0 %vm7315_vm1, %v7314_v2  ;;  %v909_v63 = vcombine.low %v516_v44, %v524_v52  ;;  %v547_v0 = vrot.slane %v533_v54, %v7438_v7  ;;  %v548_v1 = vcombine.high %v540_v55, %v540_v55  ;;  %v550_v5 = vcombine.high %v284_v60, %v284_v60  ;;  %v292_v52 = vld [vmem:[%s7440_s12 + $0xc0] sm:$0xff] }
  0x3b   : > { %v891_v3 = vcombine.low %v883_v57, %v890_v58  ;;  %v910_v4 = vcombine.low %v523_v48, %v525_v59  ;;  %v557_v6 = vrot.slane %v284_v60, %v7438_v7  ;;  %v926_v9 = vcombine.low %v7213_v53, %v540_v55 }
  0x3c   : > { %v549_v10 = vcombine.high %v547_v0, %v547_v0  ;;  %v908_v11 = vcombine.low %v900_v61, %v907_v62  ;;  %v917_v12 = vrot.slane %v909_v63, %v7438_v7  ;;  %v927_v13 = vcombine.low %v548_v1, %v547_v0  ;;  %v7216_v62 = vld.sshfl [vmem:[%s7440_s12 + $0xb8] sm:$0x3 pattern:$0x76325410]  ;;  %v293_v0 = vld [vmem:[%s7440_s12 + $0xc8] sm:$0xff] }
  0x3d   : > { %6942 = vmatmul.mubr.msk.f32.gmra.mrb[8].mxu0 %vm1121_vm2, %v823_v24  ;;  %v574_v14 = vcombine.high %v286_v8, %v286_v8  ;;  %v924_v15 = vrot.slane %v910_v4, %v7438_v7  ;;  %v564_v16 = vrot.slane %v550_v5, %v7438_v7  ;;  %v565_v17 = vcombine.high %v557_v6, %v557_v6 }
  0x3e   : > { %6944 = vmatprep.mubr.msk.f32.mxu0 %vm7315_vm1, %v7314_v2  ;;  %v581_v19 = vrot.slane %v286_v8, %v7438_v7  ;;  %v934_v21 = vrot.slane %v926_v9, %v7438_v7  ;;  %v943_v22 = vcombine.low %v549_v10, %v557_v6  ;;  %v941_v24 = vrot.slane %v927_v13, %v7438_v7 }
  0x3f   : > { %v566_v23 = vcombine.high %v564_v16, %v564_v16  ;;  %v588_v25 = vrot.slane %v574_v14, %v7438_v7  ;;  %v598_v26 = vrot.slane %v287_v20, %v7438_v7  ;;  %v925_v27 = vcombine.low %v917_v12, %v924_v15 }
  0x40   : > { %v944_v28 = vcombine.low %v565_v17, %v564_v16  ;;  %v589_v29 = vcombine.high %v581_v19, %v581_v19  ;;  %v591_v30 = vcombine.high %v287_v20, %v287_v20  ;;  %v951_v32 = vrot.slane %v943_v22, %v7438_v7  ;;  %v295_v22 = vld [vmem:[%s7440_s12 + $0xd8] sm:$0xff] }
  0x41   : > { %6945 = vmatmul.mubr.msk.f32.gmra.mrb[10].mxu0 %vm1121_vm2, %v840_v33  ;;  %v942_v33 = vcombine.low %v934_v21, %v941_v24  ;;  %v960_v34 = vcombine.low %v566_v23, %v7214_v18  ;;  %v590_v35 = vcombine.high %v588_v25, %v588_v25  ;;  %v606_v36 = vcombine.high %v598_v26, %v598_v26 }
  0x42   : > { %6947 = vmatprep.mubr.msk.f32.mxu0 %vm7315_vm1, %v7314_v2  ;;  %v958_v38 = vrot.slane %v944_v28, %v7438_v7  ;;  %v961_v39 = vcombine.low %v581_v19, %v589_v29  ;;  %v605_v40 = vrot.slane %v591_v30, %v7438_v7  ;;  %v615_v42 = vcombine.high %v289_v31, %v289_v31 }
  0x43   : > { %v622_v43 = vrot.slane %v289_v31, %v7438_v7  ;;  %v968_v44 = vrot.slane %v960_v34, %v7438_v7  ;;  %v978_v46 = vcombine.low %v598_v26, %v606_v36  ;;  %v632_v47 = vcombine.high %v290_v41, %v290_v41 }
  0x44   : > { %v959_v48 = vcombine.low %v951_v32, %v958_v38  ;;  %v975_v49 = vrot.slane %v961_v39, %v7438_v7  ;;  %v607_v50 = vcombine.high %v605_v40, %v605_v40  ;;  %v629_v51 = vrot.slane %v615_v42, %v7438_v7 }
  0x45   : > { %6948 = vmatmul.mubr.msk.f32.gmra.mrb[12].mxu0 %vm1121_vm2, %v857_v45  ;;  %v977_v45 = vcombine.low %v588_v25, %v590_v35  ;;  %v995_v53 = vcombine.low %v7215_v37, %v622_v43  ;;  %v639_v54 = vrot.slane %v290_v41, %v7438_v7  ;;  %v630_v57 = vcombine.high %v622_v43, %v622_v43 }
  0x46   : > { %6950 = vmatprep.mubr.msk.f32.mxu0 %vm7315_vm1, %v7314_v2  ;;  %v646_v58 = vrot.slane %v632_v47, %v7438_v7  ;;  %v976_v59 = vcombine.low %v968_v44, %v975_v49  ;;  %v994_v60 = vcombine.low %v605_v40, %v607_v50  ;;  %v631_v61 = vcombine.high %v629_v51, %v629_v51 }
  0x47   : > { %v985_v55 = vrot.slane %v977_v45, %v7438_v7  ;;  %v656_v63 = vcombine.high %v292_v52, %v292_v52  ;;  %v1009_v1 = vrot.slane %v995_v53, %v7438_v7  ;;  %v663_v4 = vrot.slane %v292_v52, %v7438_v7 }
  0x48   : > { %v1011_v6 = vcombine.low %v630_v57, %v629_v51  ;;  %v648_v8 = vcombine.high %v646_v58, %v646_v58  ;;  %v1002_v9 = vrot.slane %v994_v60, %v7438_v7  ;;  %v1012_v10 = vcombine.low %v631_v61, %v639_v54  ;;  %v6827_v60 = vld.sshfl [vmem:[%s7440_s12 + $0xe8] sm:$0x3 pattern:$0x76325410] }
  0x49   : > { %6951 = vmatmul.mubr.msk.f32.gmra.mrb[14].mxu0 %vm1121_vm2, %v874_v56  ;;  %v992_v56 = vrot.slane %v978_v46, %v7438_v7  ;;  %v673_v12 = vcombine.high %v293_v0, %v293_v0  ;;  %v671_v13 = vcombine.high %v663_v4, %v663_v4  ;;  %v680_v17 = vrot.slane %v293_v0, %v7438_v7  ;;  %v6449_v0 = vld [vmem:[%s10167_s4] sm:$0xff] }
  0x4a   : > { %6953 = vmatprep.mubr.msk.f32.mxu0 %vm7315_vm1, %v7314_v2  ;;  %v1019_v14 = vrot.slane %v1011_v6, %v7438_v7  ;;  %v1029_v16 = vcombine.low %v648_v8, %v7216_v62  ;;  %v1010_v18 = vcombine.low %v1002_v9, %v1009_v1  ;;  %v1026_v19 = vrot.slane %v1012_v10, %v7438_v7  ;;  %v6450_v1 = vld [vmem:[%s10167_s4 + $0x8] sm:$0xff]  ;;  %v6453_v6 = vld [vmem:[%s10167_s4 + $0x20] sm:$0xff]  ;;  %v6455_v10 = vld [vmem:[%s10167_s4 + $0x30] sm:$0xff] }
  0x4b   : > { %v993_v5 = vcombine.low %v985_v55, %v992_v56  ;;  %v687_v21 = vrot.slane %v673_v12, %v7438_v7  ;;  %v1045_v23 = vcombine.low %v663_v4, %v671_v13  ;;  %v688_v26 = vcombine.high %v680_v17, %v680_v17  ;;  %v6451_v4 = vld [vmem:[%s10167_s4 + $0x10] sm:$0xff]  ;;  %v6454_v8 = vld [vmem:[%s10167_s4 + $0x28] sm:$0xff]  ;;  %v6457_v12 = vld [vmem:[%s10167_s4 + $0x40] sm:$0xff] }
  0x4c   : > { %v1043_v25 = vrot.slane %v1029_v16, %v7438_v7  ;;  %v697_v28 = vcombine.high %v295_v22, %v295_v22  ;;  %v1027_v29 = vcombine.low %v1019_v14, %v1026_v19  ;;  %v704_v32 = vrot.slane %v295_v22, %v7438_v7  ;;  %v6458_v14 = vld [vmem:[%s10167_s4 + $0x48] sm:$0xff]  ;;  %v6459_v16 = vld [vmem:[%s10167_s4 + $0x50] sm:$0xff] }
  0x4d   : > { %6954 = vmatmul.mubr.msk.f32.gmra.mrb[16].mxu0 %vm1121_vm2, %v891_v3  ;;  %v647_v3 = vcombine.high %v639_v54, %v639_v54  ;;  %v689_v31 = vcombine.high %v687_v21, %v687_v21  ;;  %v1053_v34 = vrot.slane %v1045_v23, %v7438_v7  ;;  %v1062_v36 = vcombine.low %v680_v17, %v688_v26  ;;  %v6460_v17 = vld [vmem:[%s10167_s4 + $0x58] sm:$0xff]  ;;  %v6463_v22 = vld [vmem:[%s10167_s4 + $0x70] sm:$0xff] }
  0x4e   : > { %6956 = vmatprep.mubr.msk.f32.mxu0 %vm7315_vm1, %v7314_v2  ;;  %v711_v37 = vrot.slane %v697_v28, %v7438_v7  ;;  %v712_v41 = vcombine.high %v704_v32, %v704_v32  ;;  %v7062_v9 = vpack.c.bf16 %v6454_v8, %v6453_v6  ;;  %v7074_v19 = vpack.c.bf16 %v6460_v17, %v6459_v16  ;;  %v6464_v23 = vld [vmem:[%s10167_s4 + $0x78] sm:$0xff]  ;;  %v6857_v28 = vld [vmem:[%s10165_s2 + $0x4] ss:$0 sm:$0xff] }
  0x4f   : > { %v1028_v15 = vcombine.low %v647_v3, %v646_v58  ;;  %v1063_v40 = vcombine.low %v687_v21, %v689_v31  ;;  %v1070_v43 = vrot.slane %v1062_v36, %v7438_v7  ;;  %v7054_v3 = vpack.c.bf16 %v6450_v1, %v6449_v0  ;;  %v6855_v36 = vld [vmem:[%s10165_s2 + $0x2] ss:$0 sm:$0xff] }
  0x50   : > { %v713_v45 = vcombine.high %v711_v37, %v711_v37  ;;  %v1080_v49 = vcombine.low %v712_v41, %v711_v37 }
  0x51   : > { %6957 = vmatmul.mubr.msk.f32.gmra.mrb[18].mxu0 %vm1121_vm2, %v908_v11  ;;  %v670_v11 = vrot.slane %v656_v63, %v7438_v7  ;;  %v1036_v24 = vrot.slane %v1028_v15, %v7438_v7  ;;  %7055 = vmatprep.subr.bf16.mxu1 %v7054_v3  ;;  %v7070_v15 = vpack.c.bf16 %v6458_v14, %v6457_v12  ;;  %v6861_v12 = vld [vmem:[%s10165_s2 + $0x8] ss:$0 sm:$0xff] }
  0x52   : > { %6959 = vmatprep.mubr.msk.f32.mxu0 %vm7315_vm1, %v7314_v2  ;;  %v1094_v53 = vrot.slane %v1080_v49, %v7438_v7  ;;  %7057 = vmatpush3.bf16.msra.mxu1 %v7054_v3 }
  0x53   : > { %v672_v20 = vcombine.high %v670_v11, %v670_v11  ;;  %v1044_v35 = vcombine.low %v1036_v24, %v1043_v25  ;;  %v7082_v24 = vpack.c.bf16 %v6464_v23, %v6463_v22  ;;  %v6854_v25 = vld [vmem:[%s10165_s2 + $0x1] ss:$0 sm:$0xff] }
  0x54   : > { %v2372_v26 = vcombine.high %v6854_v25, %v6854_v25 }
  0x55   : > { %6960 = vmatmul.mubr.msk.f32.gmra.mrb[20].mxu0 %vm1121_vm2, %v925_v27  ;;  %v7217_v27 = vld.sshfl [vmem:[%s7440_s12 + $0xd0] sm:$0x3 pattern:$0x76325410]  ;;  %v1046_v30 = vcombine.low %v670_v11, %v672_v20  ;;  %v6456_v11 = vld [vmem:[%s10167_s4 + $0x38] sm:$0xff]  ;;  %v6462_v20 = vld [vmem:[%s10167_s4 + $0x68] sm:$0xff] }
  0x56   : > { %6962 = vmatprep.mubr.msk.f32.mxu0 %vm7315_vm1, %v7314_v2  ;;  %v1079_v44 = vcombine.low %v7217_v27, %v704_v32  ;;  %v7066_v13 = vpack.c.bf16 %v6456_v11, %v6455_v10  ;;  %v2379_v27 = vrot.slane %v6854_v25, %v7438_v7  ;;  %v3887_v32 = vrot.slane %v6857_v28, %v7438_v7 }
  0x57   : > { %v1060_v39 = vrot.slane %v1046_v30, %v7438_v7  ;;  %v6853_v30 = vld [vmem:[%s10165_s2] ss:$0 sm:$0xff] }
  0x58   : > { %v1087_v51 = vrot.slane %v1079_v44, %v7438_v7  ;;  %v2387_v31 = vcombine.high %v2379_v27, %v2379_v27  ;;  %v1914_v37 = vcombine.high %v6853_v30, %v6853_v30  ;;  %v3895_v41 = vcombine.high %v3887_v32, %v3887_v32 }
  0x59   : > { %6963 = vmatmul.mubr.msk.f32.gmra.mrb[22].mxu0 %vm1121_vm2, %v942_v33  ;;  %v296_v33 = vld [vmem:[%s7440_s12 + $0xe0] sm:$0xff]  ;;  %v1061_v47 = vcombine.low %v1053_v34, %v1060_v39  ;;  %v7694_v44 = vrot.slane %v6853_v30, %v7438_v7  ;;  %v7700_v49 = vrot.slane %v3887_v32, 7 }
  0x5a   : > { %6965 = vmatprep.mubr.msk.f32.mxu0 %vm7315_vm1, %v7314_v2  ;;  %v714_v38 = vcombine.high %v296_v33, %v296_v33  ;;  %v721_v42 = vrot.slane %v296_v33, %v7438_v7  ;;  %v1095_v56 = vcombine.low %v1087_v51, %v1094_v53  ;;  %v3880_v33 = vcombine.high %v6857_v28, %v6857_v28 }
  0x5b   : > { %v2398_v39 = vrot.slane %v2387_v31, 7  ;;  %10450 = vst [vmem:[#allocation6_spill] sm:$0xff] %v7694_v44  ;;  %10452 = vst [vmem:[#allocation8_spill] sm:$0xff] %v7700_v49  ;;  %v3898_v3 = vrot.slane %v7700_v49, 2 }
  0x5c   : > { %v728_v46 = vrot.slane %v714_v38, %v7438_v7  ;;  %v729_v50 = vcombine.high %v721_v42, %v721_v42  ;;  %v1096_v54 = vcombine.low %v713_v45, %v721_v42  ;;  %v7690_v38 = vrot.slane %v2379_v27, 7 }
  0x5d   : > { %6966 = vmatmul.mubr.msk.f32.gmra.mrb[24].mxu0 %vm1121_vm2, %v959_v48  ;;  %v1077_v48 = vrot.slane %v1063_v40, %v7438_v7  ;;  %v3894_v42 = vrot.slane %v3880_v33, %v7438_v7 }
  0x5e   : > { %6968 = vmatprep.mubr.msk.f32.mxu0 %vm7315_vm1, %v7314_v2  ;;  %v1097_v55 = vcombine.low %v729_v50, %v728_v46  ;;  %v1104_v57 = vrot.slane %v1096_v54, %v7438_v7  ;;  %10449 = vst [vmem:[#allocation5_spill] sm:$0xff] %v7690_v38  ;;  %v3899_v54 = vrot.slane %v3895_v41, 7  ;;  %v7808_v41 = vrot.slane %v6861_v12, %v7438_v7 }
  0x5f   : > { %v1078_v52 = vcombine.low %v1070_v43, %v1077_v48  ;;  %v2397_v48 = vrot.slane %v7690_v38, 2 }
  0x60   : > { %v1111_v58 = vrot.slane %v1097_v55, %v7438_v7  ;;  %v7708_v55 = vrot.slane %v6855_v36, %v7438_v7  ;;  %v3901_v8 = vrot.slane %v3899_v54, 2  ;;  %10472 = vst [vmem:[#allocation26_spill] sm:$0xff] %v7808_v41 }
  0x61   : > { %6969 = vmatmul.mubr.msk.f32.gmra.mrb[26].mxu0 %vm1121_vm2, %v976_v59  ;;  %v730_v59 = vcombine.high %v728_v46, %v728_v46  ;;  %v2964_v46 = vcombine.high %v6855_v36, %v6855_v36  ;;  %v7734_v1 = vsel %vm7703_vm9, %v2397_v48, %v2398_v39 }
  0x62   : > { %6971 = vmatprep.mubr.msk.f32.mxu0 %vm7315_vm1, %v7314_v2  ;;  %v1112_v61 = vcombine.low %v1104_v57, %v1111_v58  ;;  %v3896_v57 = vcombine.high %v3894_v42, %v3894_v42  ;;  %10459 = vst [vmem:[#allocation13_spill] sm:$0xff] %v7734_v1  ;;  %v7750_v10 = vcombine.high %v7708_v55, %v7708_v55 }
  0x63   : > { %v1113_v62 = vcombine.low %v730_v59, %v6827_v60  ;;  %v7718_v59 = vcombine.high %v7694_v44, %v7694_v44 }
  0x64   : > { %10462 = vst [vmem:[#allocation16_spill] sm:$0xff] %v7750_v10  ;;  %v3905_v11 = vrot.slane %v3896_v57, 7 }
  0x65   : > { %6972 = vmatmul.mubr.msk.f32.gmra.mrb[28].mxu0 %vm1121_vm2, %v993_v5  ;;  %v1120_v63 = vrot.slane %v1113_v62, %v7438_v7  ;;  %10455 = vst [vmem:[#allocation9_spill] sm:$0xff] %v7718_v59  ;;  %v3902_v62 = vrot.slane %v3894_v42, 7 }
  0x66   : > { %6974 = vmatprep.mubr.msk.f32.mxu0 %vm7315_vm1, %v7314_v2  ;;  %v7784_v28 = vrot.slane %v3905_v11, 2 }
  0x67   : > { %v7778_v23 = vsel %vm7703_vm9, %v3901_v8, %v3902_v62  ;;  %v7852_v8 = vcombine.high %v7808_v41, %v7808_v41 }
  0x68   : > { %10467 = vst [vmem:[#allocation21_spill] sm:$0xff] %v7778_v23  ;;  %10468 = vst [vmem:[#allocation22_spill] sm:$0xff] %v7784_v28 }
  0x69   : > { %6975 = vmatmul.mubr.msk.f32.gmra.mrb[30].mxu0 %vm1121_vm2, %v1010_v18  ;;  %v6461_v18 = vld [vmem:[%s10167_s4 + $0x60] sm:$0xff]  ;;  %10481 = vst [vmem:[#allocation35_spill] sm:$0xff] %v7852_v8 }
  0x6a   : > { %6977 = vmatprep.mubr.msk.f32.mxu0 %vm7315_vm1, %v7314_v2  ;;  %v7078_v21 = vpack.c.bf16 %v6462_v20, %v6461_v18  ;;  %v3904_v18 = vrot.slane %v3902_v62, 2 }
  0x6d   : > { %6978 = vmatmul.mubr.msk.f32.gmra.mrb[32].mxu0 %vm1121_vm2, %v1027_v29  ;;  %v2386_v29 = vrot.slane %v2372_v26, %v7438_v7  ;;  %v5964_v26 = vcombine.high %v6861_v12, %v6861_v12 }
  0x6e   : > { %6980 = vmatprep.mubr.msk.f32.mxu0 %vm7315_vm1, %v7314_v2 }
  0x6f   : > { %v2388_v34 = vcombine.high %v2386_v29, %v2386_v29  ;;  %v2401_v40 = vrot.slane %v2386_v29, 7 }
  0x71   : > { %6981 = vmatmul.mubr.msk.f32.gmra.mrb[34].mxu0 %vm1121_vm2, %v1044_v35  ;;  %v6860_v35 = vld [vmem:[%s10165_s2 + $0x7] ss:$0 sm:$0xff]  ;;  %v2404_v45 = vrot.slane %v2388_v34, 7  ;;  %v2403_v53 = vrot.slane %v2401_v40, 2  ;;  %v7794_v34 = vsel %vm7703_vm9, %v3904_v18, %v3905_v11 }
  0x72   : > { %6983 = vmatprep.mubr.msk.f32.mxu0 %vm7315_vm1, %v7314_v2  ;;  %v5380_v43 = vcombine.high %v6860_v35, %v6860_v35  ;;  %v5387_v50 = vrot.slane %v6860_v35, %v7438_v7  ;;  %10469 = vst [vmem:[#allocation23_spill] sm:$0xff] %v7794_v34 }
  0x73   : > { %v7720_v60 = vrot.slane %v2404_v45, 2 }
  0x74   : > { %v7714_v58 = vrot.slane %v5380_v43, %v7438_v7 }
  0x75   : > { %6984 = vmatmul.mubr.msk.f32.gmra.mrb[36].mxu0 %vm1121_vm2, %v1061_v47  ;;  %v7697_v47 = vrot.slane %v1914_v37, %v7438_v7  ;;  %10456 = vst [vmem:[#allocation10_spill] sm:$0xff] %v7720_v60 }
  0x76   : > { %6986 = vmatprep.mubr.msk.f32.mxu0 %vm7315_vm1, %v7314_v2  ;;  %v5396_v14 = vcombine.high %v7714_v58, %v7714_v58  ;;  %v5402_v25 = vrot.slane %v7714_v58, 7 }
  0x77   : > { %10451 = vst [vmem:[#allocation7_spill] sm:$0xff] %v7697_v47  ;;  %v7730_v0 = vcombine.high %v7697_v47, %v7697_v47 }
  0x78   : > { %v5405_v31 = vrot.slane %v5396_v14, 7 }
  0x79   : > { %6987 = vmatmul.mubr.msk.f32.gmra.mrb[38].mxu0 %vm1121_vm2, %v1078_v52  ;;  %v2400_v52 = vrot.slane %v2398_v39, 2  ;;  %10458 = vst [vmem:[#allocation12_spill] sm:$0xff] %v7730_v0 }
  0x7a   : > { %6989 = vmatprep.mubr.msk.f32.mxu0 %vm7315_vm1, %v7314_v2 }
  0x7d   : > { %6990 = vmatmul.mubr.msk.f32.gmra.mrb[40].mxu0 %vm1121_vm2, %v1095_v56  ;;  %v6856_v56 = vld [vmem:[%s10165_s2 + $0x3] ss:$0 sm:$0xff] }
  0x7e   : > { %6992 = vmatprep.mubr.msk.f32.mxu0 %vm7315_vm1, %v7314_v2  ;;  %v3422_v6 = vcombine.high %v6856_v56, %v6856_v56  ;;  %v7768_v17 = vrot.slane %v6856_v56, %v7438_v7 }
  0x80   : > { %v7798_v35 = vcombine.high %v7768_v17, %v7768_v17 }
  0x81   : > { %6993 = vmatmul.mubr.msk.f32.gmra.mrb[42].mxu0 %vm1121_vm2, %v1112_v61  ;;  %v7723_v61 = vrot.slane %v2964_v46, %v7438_v7  ;;  %v7815_v46 = vrot.slane %v5964_v26, %v7438_v7 }
  0x82   : > { %6995 = vmatprep.mubr.msk.f32.mxu0 %vm7315_vm1, %v7314_v2  ;;  %v6452_v2 = vld [vmem:[%s10167_s4 + $0x18] sm:$0xff] }
  0x83   : > { %v7058_v5 = vpack.c.bf16 %v6452_v2, %v6451_v4  ;;  %10457 = vst [vmem:[#allocation11_spill] sm:$0xff] %v7723_v61  ;;  %v5395_v4 = vcombine.high %v5387_v50, %v5387_v50  ;;  %v7739_v2 = vsel %vm7703_vm9, %v2400_v52, %v2401_v40  ;;  %v7765_v16 = vcombine.high %v7723_v61, %v7723_v61 }
  0x84   : > { %10460 = vst [vmem:[#allocation14_spill] sm:$0xff] %v7739_v2  ;;  %10474 = vst [vmem:[#allocation28_spill] sm:$0xff] %v7815_v46 }
  0x85   : > { %6996 = vmatmul.mubr.msk.f32.gmra.mrb[44].mxu0 %vm1121_vm2, %v1120_v63  ;;  %7059 = vmatprep.subr.bf16.mxu1 %v7058_v5  ;;  %v6858_v63 = vld [vmem:[%s10165_s2 + $0x5] ss:$0 sm:$0xff]  ;;  %10464 = vst [vmem:[#allocation18_spill] sm:$0xff] %v7765_v16  ;;  %v5399_v22 = vrot.slane %v5395_v4, 7 }
  0x86   : > { %7061 = vmatpush3.bf16.msra.mxu1 %v7058_v5  ;;  %v7743_v5 = vsel %vm7703_vm9, %v2403_v53, %v2404_v45  ;;  %v7787_v29 = vrot.slane %v6858_v63, %v7438_v7  ;;  %v5404_v45 = vrot.slane %v5402_v25, 2 }
  0x87   : > { %7063 = vmatprep.subr.bf16.mxu1 %v7062_v9  ;;  %10461 = vst [vmem:[#allocation15_spill] sm:$0xff] %v7743_v5  ;;  %v5401_v40 = vrot.slane %v5399_v22, 2 }
  0x88   : > { %v7825_v52 = vcombine.high %v7787_v29, %v7787_v29  ;;  %v7857_v12 = vsel %vm7703_vm9, %v5404_v45, %v5405_v31 }
  0x89   : > { %10482 = vst [vmem:[#allocation36_spill] sm:$0xff] %v7857_v12 }
  0x8a   : > { %7065 = vmatpush3.bf16.msra.mxu1 %v7062_v9  ;;  %v6859_v9 = vld [vmem:[%s10165_s2 + $0x6] ss:$0 sm:$0xff] }
  0x8b   : > { %7067 = vmatprep.subr.bf16.mxu1 %v7066_v13  ;;  %v4922_v20 = vcombine.high %v6859_v9, %v6859_v9  ;;  %v7801_v36 = vrot.slane %v6859_v9, %v7438_v7 }
  0x8d   : > { %10470 = vst [vmem:[#allocation24_spill] sm:$0xff] %v7801_v36  ;;  %v7804_v37 = vrot.slane %v4922_v20, %v7438_v7 }
  0x8e   : > { %7069 = vmatpush3.bf16.msra.mxu1 %v7066_v13  ;;  %v4464_v13 = vcombine.high %v6858_v63, %v6858_v63  ;;  %v7836_v63 = vcombine.high %v7801_v36, %v7801_v36 }
  0x8f   : > { %7071 = vmatprep.subr.bf16.mxu1 %v7070_v15  ;;  %10471 = vst [vmem:[#allocation25_spill] sm:$0xff] %v7804_v37 }
  0x90   : > { %v7790_v30 = vrot.slane %v4464_v13, %v7438_v7  ;;  %10477 = vst [vmem:[#allocation31_spill] sm:$0xff] %v7836_v63  ;;  %v7861_v13 = vcombine.high %v7815_v46, %v7815_v46 }
  0x92   : > { %7073 = vmatpush3.bf16.msra.mxu1 %v7070_v15  ;;  %v7761_v15 = vsel %vm7703_vm9, %v7720_v60, %v7690_v38  ;;  %v7829_v53 = vcombine.high %v7790_v30, %v7790_v30  ;;  %10483 = vst [vmem:[#allocation37_spill] sm:$0xff] %v7861_v13 }
  0x93   : > { %7075 = vmatprep.subr.bf16.mxu1 %v7074_v19  ;;  %10463 = vst [vmem:[#allocation17_spill] sm:$0xff] %v7761_v15 }
  0x96   : > { %7077 = vmatpush3.bf16.msra.mxu1 %v7074_v19  ;;  %v7772_v19 = vsel %vm7703_vm9, %v3898_v3, %v3899_v54  ;;  %v7831_v54 = vrot.slane %v5405_v31, 2  ;;  %v7840_v3 = vcombine.high %v7804_v37, %v7804_v37 }
  0x97   : > { %7079 = vmatprep.subr.bf16.mxu1 %v7078_v21  ;;  %10465 = vst [vmem:[#allocation19_spill] sm:$0xff] %v7772_v19 }
  0x98   : > { %10476 = vst [vmem:[#allocation30_spill] sm:$0xff] %v7831_v54  ;;  %10478 = vst [vmem:[#allocation32_spill] sm:$0xff] %v7840_v3 }
  0x9a   : > { %7081 = vmatpush3.bf16.msra.mxu1 %v7078_v21  ;;  %v7774_v21 = vrot.slane %v5387_v50, 7  ;;  %v7821_v50 = vsel %vm7703_vm9, %v7784_v28, %v7700_v49 }
  0x9b   : > { %7083 = vmatprep.subr.bf16.mxu1 %v7082_v24  ;;  %10475 = vst [vmem:[#allocation29_spill] sm:$0xff] %v7821_v50 }
  0x9c   : > { %10466 = vst [vmem:[#allocation20_spill] sm:$0xff] %v7774_v21  ;;  %v5398_v39 = vrot.slane %v7774_v21, 2 }
  0x9e   : > { %7085 = vmatpush3.bf16.msra.mxu1 %v7082_v24  ;;  %v7781_v24 = vrot.slane %v3422_v6, %v7438_v7  ;;  %v7844_v4 = vsel %vm7703_vm9, %v5398_v39, %v5399_v22  ;;  %v7848_v6 = vsel %vm7703_vm9, %v5401_v40, %v5402_v25  ;;  %v7871_v25 = vsel %vm7703_vm9, %v7831_v54, %v7774_v21 }
  0x9f   : > { %10479 = vst [vmem:[#allocation33_spill] sm:$0xff] %v7844_v4  ;;  %10480 = vst [vmem:[#allocation34_spill] sm:$0xff] %v7848_v6 }
  0xa0   : > { %v7812_v43 = vcombine.high %v7781_v24, %v7781_v24  ;;  %10484 = vst [vmem:[#allocation38_spill] sm:$0xff] %v7871_v25 }
  0xa2   : > { %10473 = vst [vmem:[#allocation27_spill] sm:$0xff] %v7812_v43 }
 0x100   : > { %v1238_v27 = vpop.f32.mrb[0].mxu0 }
 0x101   : > { %v1352_v32 = vmax.f32 %v1238_v27, 0.0  ;;  %v6931_v33 = vpop.f32.mrb[1].mxu0 }
 0x103   : > { %v1375_v42 = vmin.f32 %v1352_v32, 6.0 }
 0x104   : > { %v1243_v48 = vpop.f32.mrb[2].mxu0 }
 0x105   : > { %v1421_v56 = vcombine.high %v1375_v42, %v1375_v42  ;;  %v1428_v57 = vrot.slane %v1375_v42, %v7438_v7  ;;  %v1353_v58 = vmax.f32 %v1243_v48, 0.0  ;;  %v6934_v62 = vpop.f32.mrb[3].mxu0 }
 0x107   : > { %v1435_v9 = vrot.slane %v1421_v56, %v7438_v7  ;;  %v1436_v11 = vcombine.high %v1428_v57, %v1428_v57  ;;  %v1935_v14 = vmul.f32 %v7694_v44, %v1428_v57  ;;  %v2414_v18 = vmul.f32 %v7690_v38, %v1428_v57 }
 0x108   : > { %v1376_v20 = vmin.f32 %v1353_v58, 6.0  ;;  %v7865_v22 = vpop.f32.mrb[4].mxu0 }
 0x109   : > { %v1437_v26 = vcombine.high %v1435_v9, %v1435_v9  ;;  %v1936_v27 = vmul.f32 %v7718_v59, %v1436_v11  ;;  %v1937_v31 = vmul.f32 %v7697_v47, %v1435_v9  ;;  %v2415_v32 = vmul.f32 %v7734_v1, %v1436_v11  ;;  %v6937_v33 = vpop.f32.mrb[5].mxu0 }
 0x10a   : > { %v2416_v39 = vmul.f32 %v7739_v2, %v1435_v9  ;;  %v2985_v40 = vmul.f32 %v7708_v55, %v1436_v11  ;;  %v2986_v42 = vmul.f32 %v7750_v10, %v1435_v9  ;;  %v1438_v45 = vcombine.high %v1376_v20, %v1376_v20 }
 0x10b   : > { %v1938_v48 = vmul.f32 %v7730_v0, %v1437_v26  ;;  %v2063_v51 = vcombine.low %v1935_v14, %v1936_v27  ;;  %v2417_v56 = vmul.f32 %v7743_v5, %v1437_v26  ;;  %v2558_v57 = vcombine.low %v2414_v18, %v2415_v32 }
 0x10c   : > { %v3113_v58 = vcombine.low %v2985_v40, %v2986_v42  ;;  %v1445_v62 = vrot.slane %v1376_v20, %v7438_v7  ;;  %v1452_v54 = vrot.slane %v1438_v45, %v7438_v7  ;;  %v2987_v33 = vmul.f32 %v7723_v61, %v1437_v26  ;;  %v1253_v28 = vpop.f32.mrb[6].mxu0 }
 0x10d   : > { %v2064_v13 = vcombine.low %v1937_v31, %v1938_v48  ;;  %v2071_v11 = vrot.slane %v2063_v51, %v7438_v7  ;;  %v2559_v46 = vcombine.low %v2416_v39, %v2417_v56  ;;  %v2566_v9 = vrot.slane %v2558_v57, %v7438_v7  ;;  %v6940_v8 = vpop.f32.mrb[7].mxu0  ;;  %v7897_v39 = vld [vmem:[%s10166_s3] ss:$0 sm:$0xff] }
 0x10e   : > { %v7887_v14 = vrot.slane %v3113_v58, %v7438_v7  ;;  %v1453_v27 = vcombine.high %v1445_v62, %v1445_v62  ;;  %v1454_v18 = vcombine.high %v1452_v54, %v1452_v54  ;;  %v1939_v32 = vmul.f32 %v7694_v44, %v1445_v62  ;;  %10485 = vst [vmem:[#allocation39_spill] sm:$0xff] %v7897_v39 }
 0x10f   : > { %v2078_v20 = vrot.slane %v2064_v13, %v7438_v7  ;;  %v2573_v40 = vrot.slane %v2559_v46, %v7438_v7  ;;  %v1941_v26 = vmul.f32 %v7697_v47, %v1452_v54  ;;  %v2418_v31 = vmul.f32 %v7761_v15, %v1445_v62 }
 0x110   : > { %v1940_v8 = vmul.f32 %v7718_v59, %v1453_v27  ;;  %v1942_v42 = vmul.f32 %v7730_v0, %v1454_v18  ;;  %v2419_v45 = vmul.f32 %v7734_v1, %v1453_v27  ;;  %v2420_v48 = vmul.f32 %v7739_v2, %v1452_v54  ;;  %v1258_v13 = vpop.f32.mrb[8].mxu0 }
 0x111   : > { %v2079_v51 = vcombine.low %v2071_v11, %v2078_v20  ;;  %v2574_v46 = vcombine.low %v2566_v9, %v2573_v40  ;;  %v2421_v56 = vmul.f32 %v7743_v5, %v1454_v18  ;;  %v2988_v57 = vmul.f32 %v7765_v16, %v1445_v62  ;;  %v6943_v58 = vpop.f32.mrb[9].mxu0 }
 0x112   : > { %v2080_v15 = vcombine.low %v1939_v32, %v1940_v8  ;;  %v2081_v47 = vcombine.low %v1941_v26, %v1942_v42  ;;  %v2575_v41 = vcombine.low %v2418_v31, %v2419_v45  ;;  %v2989_v25 = vmul.f32 %v7708_v55, %v1453_v27 }
 0x113   : > { %v7907_v12 = vadd.f32 %v7897_v39, %v2079_v51  ;;  %v7909_v6 = vrot.slane %v2574_v46, 1  ;;  %v2576_v4 = vcombine.low %v2420_v48, %v2421_v56  ;;  %v2990_v2 = vmul.f32 %v7750_v10, %v1452_v54 }
 0x114   : > { %v2088_v11 = vrot.slane %v2080_v15, %v7438_v7  ;;  %v2095_v9 = vrot.slane %v2081_v47, %v7438_v7  ;;  %v2583_v62 = vrot.slane %v2575_v41, %v7438_v7  ;;  %v3114_v20 = vcombine.low %v2987_v33, %v2988_v57  ;;  %v1263_v32 = vpop.f32.mrb[10].mxu0 }
 0x115   : > { %v2590_v40 = vrot.slane %v2576_v4, %v7438_v7  ;;  %v3130_v26 = vcombine.low %v2989_v25, %v2990_v2  ;;  %v1354_v27 = vmax.f32 %v7865_v22, 0.0  ;;  %v2991_v31 = vmul.f32 %v7723_v61, %v1454_v18  ;;  %v6946_v8 = vpop.f32.mrb[11].mxu0 }
 0x116   : > { %v2096_v42 = vcombine.low %v2088_v11, %v2095_v9  ;;  %v7919_v45 = vrot.slane %v3114_v20, %v7438_v7  ;;  %v1355_v54 = vmax.f32 %v1253_v28, 0.0  ;;  %v1356_v15 = vmax.f32 %v1258_v13, 0.0 }
 0x117   : > { %v2591_v48 = vcombine.low %v2583_v62, %v2590_v40  ;;  %v1377_v47 = vmin.f32 %v1354_v27, 6.0  ;;  %v3138_v41 = vrot.slane %v3130_v26, %v7438_v7  ;;  %v1357_v33 = vmax.f32 %v1263_v32, 0.0 }
 0x118   : > { %v2352_v4 = vadd.f32 %v7897_v39, %v2096_v42  ;;  %v1378_v2 = vmin.f32 %v1355_v54, 6.0  ;;  %v1379_v25 = vmin.f32 %v1356_v15, 6.0  ;;  %v1268_v22 = vpop.f32.mrb[12].mxu0 }
 0x119   : > { %v2888_v51 = vrot.slane %v2591_v48, 1  ;;  %v1455_v46 = vcombine.high %v1377_v47, %v1377_v47  ;;  %v1462_v56 = vrot.slane %v1377_v47, %v7438_v7  ;;  %v1380_v28 = vmin.f32 %v1357_v33, 6.0  ;;  %v6949_v13 = vpop.f32.mrb[13].mxu0 }
 0x11a   : > { %v1472_v57 = vcombine.high %v1378_v2, %v1378_v2  ;;  %v7927_v58 = vrot.slane %v1378_v2, %v7438_v7  ;;  %v1489_v11 = vcombine.high %v1379_v25, %v1379_v25  ;;  %v7930_v9 = vrot.slane %v1379_v25, %v7438_v7 }
 0x11b   : > { %v7933_v62 = vrot.slane %v1455_v46, %v7438_v7  ;;  %v1470_v20 = vcombine.high %v1462_v56, %v1462_v56  ;;  %v2422_v32 = vmul.f32 %v7720_v60, %v1462_v56  ;;  %v2992_v40 = vmul.f32 %v7765_v16, %v1462_v56 }
 0x11c   : > { %10486 = vst [vmem:[#allocation40_spill] sm:$0xff] %v7927_v58  ;;  %10487 = vst [vmem:[#allocation41_spill] sm:$0xff] %v7930_v9  ;;  %v7938_v26 = vrot.slane %v1472_v57, %v7438_v7  ;;  %v7942_v27 = vcombine.high %v7927_v58, %v7927_v58  ;;  %v7946_v8 = vmul.f32 %v7730_v0, %v7927_v58  ;;  %v1273_v54 = vpop.f32.mrb[14].mxu0 }
 0x11d   : > { %v7950_v42 = vmul.f32 %v7743_v5, %v7927_v58  ;;  %v7954_v15 = vcombine.high %v7933_v62, %v7933_v62  ;;  %v1943_v48 = vmul.f32 %v7694_v44, %v1470_v20  ;;  %v1944_v47 = vmul.f32 %v7718_v59, %v7933_v62  ;;  %v6952_v2 = vpop.f32.mrb[15].mxu0 }
 0x11e   : > { %v2423_v33 = vmul.f32 %v7690_v38, %v1470_v20  ;;  %v2424_v25 = vmul.f32 %v7734_v1, %v7933_v62  ;;  %v2598_v46 = vrot.slane %v2422_v32, %v7438_v7  ;;  %v3131_v56 = vcombine.low %v2991_v31, %v2992_v40 }
 0x11f   : > { %v7964_v13 = vmul.f32 %v7768_v17, %v1470_v20  ;;  %v2097_v57 = vcombine.low %v1943_v48, %v1944_v47  ;;  %v7967_v18 = vmul.f32 %v7700_v49, %v1470_v20  ;;  %v7971_v60 = vmul.f32 %v7772_v19, %v7933_v62 }
 0x120   : > { %v7975_v2 = vcombine.high %v7938_v26, %v7938_v26  ;;  %v2599_v59 = vcombine.low %v2423_v33, %v2424_v25  ;;  %v2890_v39 = vrot.slane %v2598_v46, 1  ;;  %v3145_v32 = vrot.slane %v3131_v56, %v7438_v7  ;;  %v1278_v40 = vpop.f32.mrb[16].mxu0 }
 0x121   : > { %v7980_v31 = vmul.f32 %v7734_v1, %v7938_v26  ;;  %v7983_v20 = vrot.slane %v2097_v57, %v7438_v7  ;;  %v7988_v47 = vrot.slane %v1489_v11, %v7438_v7  ;;  %v7992_v33 = vmul.f32 %v7730_v0, %v7930_v9  ;;  %v6955_v25 = vpop.f32.mrb[17].mxu0 }
 0x122   : > { %v7995_v46 = vrot.slane %v2599_v59, %v7438_v7  ;;  %v2891_v56 = vsel %vm2886_vm10, %v2888_v51, %v2890_v39  ;;  %v3146_v1 = vcombine.low %v3138_v41, %v3145_v32  ;;  %v8000_v57 = vmul.f32 %v7743_v5, %v7930_v9 }
 0x123   : > { %10488 = vst [vmem:[#allocation42_spill] sm:$0xff] %v7983_v20  ;;  %10489 = vst [vmem:[#allocation43_spill] sm:$0xff] %v7988_v47  ;;  %v2944_v49 = vadd.f32 %v2891_v56, %v2352_v4  ;;  %v8004_v11 = vcombine.high %v7988_v47, %v7988_v47  ;;  %v8008_v48 = vmul.f32 %v7690_v38, %v7988_v47  ;;  %v1358_v0 = vmax.f32 %v1268_v22, 0.0 }
 0x124   : > { %10490 = vst [vmem:[#allocation44_spill] sm:$0xff] %v7992_v33  ;;  %10491 = vst [vmem:[#allocation45_spill] sm:$0xff] %v7995_v46  ;;  %v1506_v25 = vcombine.high %v1380_v28, %v1380_v28  ;;  %v8011_v59 = vrot.slane %v1380_v28, %v7438_v7  ;;  %v1359_v39 = vmax.f32 %v1273_v54, 0.0  ;;  %v1360_v41 = vmax.f32 %v1278_v40, 0.0  ;;  %v1283_v32 = vpop.f32.mrb[18].mxu0 }
 0x125   : > { %10492 = vst [vmem:[#allocation46_spill] sm:$0xff] %v8004_v11  ;;  %10493 = vst [vmem:[#allocation47_spill] sm:$0xff] %v8008_v48  ;;  %v8013_v33 = vadd.f32 %v3146_v1, %v2944_v49  ;;  %v1361_v56 = vmax.f32 %v1283_v32, 0.0  ;;  %v6958_v5 = vpop.f32.mrb[19].mxu0  ;;  %v2889_v46 = vsel %vm2886_vm10, %v7909_v6, %v2888_v51  ;;  %v1381_v16 = vmin.f32 %v1358_v0, 6.0 }
 0x126   : > { %10494 = vst [vmem:[#allocation48_spill] sm:$0xff] %v8011_v59  ;;  %v8016_v4 = vrot.slane %v1506_v25, %v7438_v7  ;;  %v1382_v48 = vmin.f32 %v1359_v39, 6.0  ;;  %v1383_v61 = vmin.f32 %v1360_v41, 6.0  ;;  %v8022_v28 = vcombine.high %v8011_v59, %v8011_v59 }
 0x127   : > { %v1384_v49 = vmin.f32 %v1361_v56, 6.0  ;;  %v2943_v1 = vadd.f32 %v2889_v46, %v7907_v12  ;;  %v3444_v5 = vmul.f32 %v7798_v35, %v7933_v62  ;;  %v1523_v54 = vcombine.high %v1381_v16, %v1381_v16 }
 0x128   : > { %10495 = vst [vmem:[#allocation49_spill] sm:$0xff] %v8022_v28  ;;  %v8026_v22 = vcombine.high %v8016_v4, %v8016_v4  ;;  %v8032_v6 = vrot.slane %v1381_v16, %v7438_v7  ;;  %v1540_v0 = vcombine.high %v1382_v48, %v1382_v48  ;;  %v8035_v51 = vrot.slane %v1382_v48, %v7438_v7  ;;  %v1288_v40 = vpop.f32.mrb[20].mxu0 }
 0x129   : > { %v1557_v25 = vcombine.high %v1383_v61, %v1383_v61  ;;  %v8038_v39 = vrot.slane %v1383_v61, %v7438_v7  ;;  %v1574_v41 = vcombine.high %v1384_v49, %v1384_v49  ;;  %v8041_v32 = vrot.slane %v1384_v49, %v7438_v7  ;;  %v6961_v12 = vpop.f32.mrb[21].mxu0 }
 0x12a   : > { %10496 = vst [vmem:[#allocation50_spill] sm:$0xff] %v8035_v51  ;;  %v8044_v46 = vrot.slane %v1523_v54, %v7438_v7  ;;  %v8048_v16 = vcombine.high %v8032_v6, %v8032_v6  ;;  %v8051_v48 = vrot.slane %v1540_v0, %v7438_v7  ;;  %v8055_v56 = vcombine.high %v8035_v51, %v8035_v51 }
 0x12b   : > { %10497 = vst [vmem:[#allocation51_spill] sm:$0xff] %v8038_v39  ;;  %10498 = vst [vmem:[#allocation52_spill] sm:$0xff] %v8041_v32  ;;  %v8058_v61 = vrot.slane %v1557_v25, %v7438_v7  ;;  %v8062_v49 = vcombine.high %v8038_v39, %v8038_v39  ;;  %v8065_v54 = vrot.slane %v1574_v41, %v7438_v7 }
 0x12c   : > { %10499 = vst [vmem:[#allocation53_spill] sm:$0xff] %v8044_v46  ;;  %10500 = vst [vmem:[#allocation54_spill] sm:$0xff] %v8051_v48  ;;  %v8069_v12 = vcombine.high %v8041_v32, %v8041_v32  ;;  %v8073_v0 = vcombine.high %v8044_v46, %v8044_v46  ;;  %v8081_v25 = vmul.f32 %v7690_v38, %v8041_v32 }
 0x12d   : > { %10501 = vst [vmem:[#allocation55_spill] sm:$0xff] %v8055_v56  ;;  %10502 = vst [vmem:[#allocation56_spill] sm:$0xff] %v8058_v61  ;;  %v8077_v56 = vmul.f32 %v7694_v44, %v8041_v32  ;;  %v1362_v61 = vmax.f32 %v1288_v40, 0.0  ;;  %v10509_v39 = vcombine.low %v7887_v14, %v7919_v45  ;;  %v3445_v51 = vmul.f32 %v7781_v24, %v7954_v15 }
 0x12e   : > { %10503 = vst [vmem:[#allocation57_spill] sm:$0xff] %v8062_v49  ;;  %10504 = vst [vmem:[#allocation58_spill] sm:$0xff] %v8065_v54  ;;  %v1293_v49 = vpop.f32.mrb[22].mxu0  ;;  %v3918_v40 = vmul.f32 %v7794_v34, %v7927_v58  ;;  %v3919_v14 = vmul.f32 %v7821_v50, %v7942_v27  ;;  %v3920_v45 = vmul.f32 %v7772_v19, %v7938_v26 }
 0x12f   : > { %10505 = vst [vmem:[#allocation59_spill] sm:$0xff] %v8069_v12  ;;  %10506 = vst [vmem:[#allocation60_spill] sm:$0xff] %v8073_v0  ;;  %v1363_v41 = vmax.f32 %v1293_v49, 0.0  ;;  %v6964_v54 = vpop.f32.mrb[23].mxu0  ;;  %v3401_v12 = vadd.f32 %v10509_v39, %v2943_v1  ;;  %v3446_v0 = vmul.f32 %v7812_v43, %v7927_v58  ;;  %v1385_v44 = vmin.f32 %v1362_v61, 6.0 }
 0x130   : > { %10507 = vst [vmem:[#allocation61_spill] sm:$0xff] %v8077_v56  ;;  %10508 = vst [vmem:[#allocation62_spill] sm:$0xff] %v8081_v25  ;;  %v3571_v56 = vcombine.low %v7964_v13, %v3444_v5  ;;  %v3917_v25 = vmul.f32 %v7778_v23, %v7954_v15  ;;  %v1298_v61 = vpop.f32.mrb[24].mxu0  ;;  %v3921_v5 = vmul.f32 %v7778_v23, %v7975_v2 }
 0x131   : > { %v1386_v49 = vmin.f32 %v1363_v41, 6.0  ;;  %v3572_v54 = vcombine.low %v3445_v51, %v3446_v0  ;;  %v1591_v1 = vcombine.high %v1385_v44, %v1385_v44  ;;  %v8100_v39 = vrot.slane %v1385_v44, %v7438_v7  ;;  %v6967_v0 = vpop.f32.mrb[25].mxu0 }
 0x132   : > { %v3579_v13 = vrot.slane %v3571_v56, %v7438_v7  ;;  %v1364_v51 = vmax.f32 %v1298_v61, 0.0  ;;  %v3922_v56 = vmul.f32 %v7794_v34, %v7930_v9  ;;  %v4060_v10 = vcombine.low %v3917_v25, %v3918_v40 }
 0x133   : > { %10510 = vst [vmem:[#allocation63_spill] sm:$0xff] %v8100_v39  ;;  %v1608_v32 = vcombine.high %v1386_v49, %v1386_v49  ;;  %v8106_v41 = vrot.slane %v1386_v49, %v7438_v7  ;;  %v3586_v50 = vrot.slane %v3572_v54, %v7438_v7  ;;  %v8110_v19 = vrot.slane %v1591_v1, %v7438_v7 }
 0x134   : > { %v8114_v44 = vcombine.high %v8100_v39, %v8100_v39  ;;  %v1387_v61 = vmin.f32 %v1364_v51, 6.0  ;;  %v1303_v0 = vpop.f32.mrb[26].mxu0  ;;  %v4074_v25 = vrot.slane %v4060_v10, %v7438_v7 }
 0x135   : > { %10511 = vst [vmem:[#allocation64_spill] sm:$0xff] %v8106_v41  ;;  %10512 = vst [vmem:[#allocation65_spill] sm:$0xff] %v8110_v19  ;;  %v8119_v23 = vrot.slane %v1608_v32, %v7438_v7  ;;  %v8123_v49 = vcombine.high %v8106_v41, %v8106_v41  ;;  %v3587_v54 = vcombine.low %v3579_v13, %v3586_v50  ;;  %v6970_v50 = vpop.f32.mrb[27].mxu0 }
 0x136   : > { %10513 = vst [vmem:[#allocation66_spill] sm:$0xff] %v8114_v44  ;;  %v8127_v1 = vcombine.high %v8110_v19, %v8110_v19  ;;  %v10517_v44 = vcombine.low %v7967_v18, %v7971_v60  ;;  %v4076_v32 = vcombine.low %v3919_v14, %v3920_v45  ;;  %v1625_v40 = vcombine.high %v1387_v61, %v1387_v61 }
 0x137   : > { %10514 = vst [vmem:[#allocation67_spill] sm:$0xff] %v8119_v23  ;;  %10515 = vst [vmem:[#allocation68_spill] sm:$0xff] %v8123_v49  ;;  %v8135_v23 = vrot.slane %v1387_v61, %v7438_v7  ;;  %v1365_v49 = vmax.f32 %v1303_v0, 0.0  ;;  %v3859_v51 = vadd.f32 %v3587_v54, %v3401_v12  ;;  %v4077_v41 = vcombine.low %v3921_v5, %v3922_v56 }
 0x138   : > { %10516 = vst [vmem:[#allocation69_spill] sm:$0xff] %v8127_v1  ;;  %v4067_v39 = vrot.slane %v10517_v44, %v7438_v7  ;;  %v4084_v1 = vrot.slane %v4076_v32, %v7438_v7  ;;  %v4485_v19 = vmul.f32 %v7787_v29, %v7933_v62  ;;  %v8141_v60 = vrot.slane %v1625_v40, %v7438_v7  ;;  %v8154_v44 = vpop.f32.mrb[28].mxu0 }
 0x139   : > { %10518 = vst [vmem:[#allocation70_spill] sm:$0xff] %v8135_v23  ;;  %v8145_v10 = vcombine.high %v8135_v23, %v8135_v23  ;;  %v1388_v18 = vmin.f32 %v1365_v49, 6.0  ;;  %v4486_v14 = vmul.f32 %v7825_v52, %v7954_v15  ;;  %v4091_v12 = vrot.slane %v4077_v41, %v7438_v7  ;;  %v6973_v0 = vpop.f32.mrb[29].mxu0 }
 0x13a   : > { %v4075_v13 = vcombine.low %v4067_v39, %v4074_v25  ;;  %10519 = vst [vmem:[#allocation71_spill] sm:$0xff] %v8141_v60  ;;  %v4487_v39 = vmul.f32 %v7790_v30, %v7927_v58  ;;  %v4488_v5 = vmul.f32 %v7829_v53, %v7942_v27  ;;  %v8158_v56 = vcombine.high %v8141_v60, %v8141_v60  ;;  %v10526_v0 = vld [vmem:[#allocation33_spill] sm:$0xff]  ;;  %v10527_v60 = vld [vmem:[#allocation34_spill] sm:$0xff]  ;;  %v10532_v58 = vld [vmem:[#allocation35_spill] sm:$0xff] }
 0x13b   : > { %10520 = vst [vmem:[#allocation72_spill] sm:$0xff] %v8145_v10  ;;  %v1642_v61 = vcombine.high %v1388_v18, %v1388_v18  ;;  %v8161_v49 = vrot.slane %v1388_v18, %v7438_v7  ;;  %v4613_v54 = vcombine.low %v4485_v19, %v4486_v14  ;;  %v4092_v41 = vcombine.low %v4084_v1, %v4091_v12 }
 0x13c   : > { %v4387_v45 = vrot.slane %v4075_v13, 1  ;;  %10521 = vst [vmem:[#allocation73_spill] sm:$0xff] %v8158_v56  ;;  %v4614_v25 = vcombine.low %v4487_v39, %v4488_v5  ;;  %v4943_v32 = vmul.f32 %v7801_v36, %v7988_v47  ;;  %v4944_v40 = vmul.f32 %v7836_v63, %v8004_v11  ;;  %v8180_v39 = vpop.f32.mrb[30].mxu0 }
 0x13d   : > { %10522 = vst [vmem:[#allocation74_spill] sm:$0xff] %v8161_v49  ;;  %v8168_v50 = vrot.slane %v1642_v61, %v7438_v7  ;;  %v4621_v13 = vrot.slane %v4613_v54, %v7438_v7  ;;  %v4945_v56 = vmul.f32 %v7804_v37, %v8011_v59  ;;  %v4946_v19 = vmul.f32 %v7840_v3, %v8022_v28  ;;  %v6976_v49 = vpop.f32.mrb[31].mxu0 }
 0x13e   : > { %v8175_v18 = vrot.slane %v4092_v41, 1  ;;  %v4628_v1 = vrot.slane %v4614_v25, %v7438_v7  ;;  %v5071_v14 = vcombine.low %v4943_v32, %v4944_v40  ;;  %v5415_v12 = vmul.f32 %v7774_v21, %v7988_v47 }
 0x13f   : > { %10523 = vst [vmem:[#allocation75_spill] sm:$0xff] %v8168_v50  ;;  %v8184_v5 = vcombine.high %v8168_v50, %v8168_v50  ;;  %v8188_v61 = vmul.f32 %v7690_v38, %v8168_v50  ;;  %v5072_v54 = vcombine.low %v4945_v56, %v4946_v19  ;;  %v5416_v41 = vmul.f32 %v10526_v0, %v8004_v11  ;;  %v10528_v50 = vld [vmem:[#allocation36_spill] sm:$0xff]  ;;  %v10529_v56 = vld [vmem:[#allocation38_spill] sm:$0xff] }
 0x140   : > { %v4389_v25 = vsel %vm2886_vm10, %v4387_v45, %v8175_v18  ;;  %v4629_v32 = vcombine.low %v4621_v13, %v4628_v1  ;;  %v5079_v40 = vrot.slane %v5071_v14, %v7438_v7  ;;  %v5417_v10 = vmul.f32 %v10527_v60, %v8011_v59  ;;  %v8208_v14 = vpop.f32.mrb[32].mxu0  ;;  %v10531_v38 = vld [vmem:[#allocation26_spill] sm:$0xff] }
 0x141   : > { %10524 = vst [vmem:[#allocation76_spill] sm:$0xff] %v8184_v5  ;;  %10525 = vst [vmem:[#allocation77_spill] sm:$0xff] %v8188_v61  ;;  %v4443_v23 = vadd.f32 %v4389_v25, %v3859_v51  ;;  %v5086_v5 = vrot.slane %v5072_v54, %v7438_v7  ;;  %v5418_v61 = vmul.f32 %v10528_v50, %v8022_v28  ;;  %v6979_v34 = vpop.f32.mrb[33].mxu0 }
 0x142   : > { %v5419_v19 = vmul.f32 %v10529_v56, %v8016_v4  ;;  %v5420_v49 = vmul.f32 %v10526_v0, %v8026_v22  ;;  %v5421_v45 = vmul.f32 %v10527_v60, %v8032_v6  ;;  %v5422_v13 = vmul.f32 %v10528_v50, %v8048_v16  ;;  %10530 = vst [vmem:[#allocation78_spill] sm:$0xff] %v8208_v14 }
 0x143   : > { %v5559_v1 = vcombine.low %v5415_v12, %v5416_v41  ;;  %v4901_v51 = vadd.f32 %v4629_v32, %v4443_v23  ;;  %v5087_v54 = vcombine.low %v5079_v40, %v5086_v5  ;;  %v5560_v25 = vcombine.low %v5417_v10, %v5418_v61  ;;  %v10533_v12 = vld [vmem:[#allocation28_spill] sm:$0xff]  ;;  %v10534_v23 = vld [vmem:[#allocation37_spill] sm:$0xff] }
 0x144   : > { %v5985_v21 = vmul.f32 %v10531_v38, %v8004_v11  ;;  %v5576_v47 = vcombine.low %v5419_v19, %v5420_v49  ;;  %v5577_v0 = vcombine.low %v5421_v45, %v5422_v13  ;;  %v5986_v60 = vmul.f32 %v10532_v58, %v8011_v59  ;;  %v8226_v40 = vpop.f32.mrb[34].mxu0 }
 0x145   : > { %v5567_v56 = vrot.slane %v5559_v1, %v7438_v7  ;;  %v5359_v20 = vadd.f32 %v5087_v54, %v4901_v51  ;;  %v5574_v50 = vrot.slane %v5560_v25, %v7438_v7  ;;  %v5987_v41 = vmul.f32 %v10533_v12, %v8022_v28  ;;  %10535 = vst [vmem:[#allocation37_spill] sm:$0xff] %v8226_v40  ;;  %v6982_v1 = vpop.f32.mrb[35].mxu0  ;;  %v10536_v54 = vld [vmem:[#allocation22_spill] sm:$0xff] }
 0x146   : > { %v5988_v10 = vmul.f32 %v10534_v23, %v8016_v4  ;;  %v5584_v5 = vrot.slane %v5576_v47, %v7438_v7  ;;  %v5591_v34 = vrot.slane %v5577_v0, %v7438_v7  ;;  %v6113_v61 = vcombine.low %v5985_v21, %v5986_v60 }
 0x147   : > { %v8224_v32 = vcombine.high %v7930_v9, %v7930_v9  ;;  %v5575_v19 = vcombine.low %v5567_v56, %v5574_v50  ;;  %v3447_v45 = vmul.f32 %v7768_v17, %v7942_v27  ;;  %v3448_v13 = vmul.f32 %v7798_v35, %v7938_v26 }
 0x148   : > { %v6114_v49 = vcombine.low %v5987_v41, %v5988_v10  ;;  %v5592_v51 = vcombine.low %v5584_v5, %v5591_v34  ;;  %v6121_v47 = vrot.slane %v6113_v61, %v7438_v7  ;;  %v3449_v21 = vmul.f32 %v7781_v24, %v7975_v2 }
 0x149   : > { %v3450_v60 = vmul.f32 %v7812_v43, %v7930_v9  ;;  %v5887_v0 = vrot.slane %v5575_v19, 1  ;;  %v3588_v56 = vcombine.low %v3447_v45, %v3448_v13  ;;  %v3923_v25 = vmul.f32 %v10536_v54, %v8224_v32 }
 0x14a   : > { %v6128_v50 = vrot.slane %v6114_v49, %v7438_v7  ;;  %v5888_v41 = vrot.slane %v5592_v51, 1  ;;  %v4489_v5 = vmul.f32 %v7787_v29, %v7938_v26  ;;  %v4490_v34 = vmul.f32 %v7825_v52, %v7975_v2 }
 0x14b   : > { %v3589_v10 = vcombine.low %v3449_v21, %v3450_v60  ;;  %v3596_v1 = vrot.slane %v3588_v56, %v7438_v7  ;;  %v4099_v40 = vrot.slane %v3923_v25, %v7438_v7  ;;  %v4491_v19 = vmul.f32 %v7790_v30, %v7930_v9  ;;  %v8252_v21 = vpop.f32.mrb[36].mxu0 }
 0x14c   : > { %v6129_v61 = vcombine.low %v6121_v47, %v6128_v50  ;;  %v5889_v49 = vsel %vm2886_vm10, %v5887_v0, %v5888_v41  ;;  %v4492_v13 = vmul.f32 %v7829_v53, %v8224_v32  ;;  %v4630_v51 = vcombine.low %v4489_v5, %v4490_v34  ;;  %10537 = vst [vmem:[#allocation79_spill] sm:$0xff] %v8252_v21  ;;  %v6985_v56 = vpop.f32.mrb[37].mxu0 }
 0x14d   : > { %v3603_v45 = vrot.slane %v3589_v10, %v7438_v7  ;;  %v5943_v60 = vadd.f32 %v5889_v49, %v5359_v20  ;;  %v4390_v14 = vrot.slane %v4099_v40, 1  ;;  %v4947_v47 = vmul.f32 %v7801_v36, %v8016_v4  ;;  %v8261_v9 = vpop.f32.mrb[38].mxu0 }
 0x14e   : > { %v4948_v50 = vmul.f32 %v7836_v63, %v8026_v22  ;;  %v4631_v54 = vcombine.low %v4491_v19, %v4492_v13  ;;  %v4638_v0 = vrot.slane %v4630_v51, %v7438_v7  ;;  %v4949_v10 = vmul.f32 %v7804_v37, %v8032_v6  ;;  %10538 = vst [vmem:[#allocation80_spill] sm:$0xff] %v8261_v9  ;;  %v6988_v49 = vpop.f32.mrb[39].mxu0  ;;  %v10539_v19 = vld [vmem:[#allocation30_spill] sm:$0xff] }
 0x14f   : > { %v3604_v25 = vcombine.low %v3596_v1, %v3603_v45  ;;  %v6401_v5 = vadd.f32 %v6129_v61, %v5943_v60  ;;  %v4391_v20 = vsel %vm2886_vm10, %v8175_v18, %v4390_v14  ;;  %v4950_v40 = vmul.f32 %v7840_v3, %v8048_v16 }
 0x150   : > { %v5088_v34 = vcombine.low %v4947_v47, %v4948_v50  ;;  %v4645_v1 = vrot.slane %v4631_v54, %v7438_v7  ;;  %v5423_v45 = vmul.f32 %v10539_v19, %v8044_v46  ;;  %v5989_v13 = vmul.f32 %v10531_v38, %v8026_v22 }
 0x151   : > { %v3860_v56 = vadd.f32 %v3604_v25, %v8013_v33  ;;  %v6417_v51 = vmax.f32 %v6401_v5, 0.0  ;;  %v5089_v61 = vcombine.low %v4949_v10, %v4950_v40  ;;  %v5990_v18 = vmul.f32 %v10532_v58, %v8032_v6 }
 0x152   : > { %v5096_v60 = vrot.slane %v5088_v34, %v7438_v7  ;;  %v4646_v47 = vcombine.low %v4638_v0, %v4645_v1  ;;  %v5599_v50 = vrot.slane %v5423_v45, %v7438_v7  ;;  %v5991_v33 = vmul.f32 %v10533_v12, %v8048_v16 }
 0x153   : > { %v4444_v14 = vadd.f32 %v4391_v20, %v3860_v56  ;;  %v6433_v54 = vmin.f32 %v6417_v51, 6.0  ;;  %v5103_v25 = vrot.slane %v5089_v61, %v7438_v7  ;;  %v5992_v49 = vmul.f32 %v10534_v23, %v8044_v46 }
 0x154   : > { %v6130_v5 = vcombine.low %v5989_v13, %v5990_v18  ;;  %v5890_v40 = vrot.slane %v5599_v50, 1  ;;  %v1366_v34 = vmax.f32 %v8154_v44, 0.0  ;;  %v1367_v9 = vmax.f32 %v8180_v39, 0.0  ;;  %v10540_v13 = vld [vmem:[#allocation7_spill] sm:$0xff]  ;;  %v10541_v39 = vld [vmem:[#allocation14_spill] sm:$0xff] }
 0x155   : > { %v4902_v10 = vadd.f32 %v4646_v47, %v4444_v14  ;;  %7030 = vmatprep.mubr.f32.mxu1 %v6433_v54  ;;  %v5104_v0 = vcombine.low %v5096_v60, %v5103_v25  ;;  %v6131_v20 = vcombine.low %v5991_v33, %v5992_v49  ;;  %v8287_v1 = vcombine.high %v8051_v48, %v8051_v48  ;;  %v10542_v47 = vld [vmem:[#allocation17_spill] sm:$0xff] }
 0x156   : > { %v6138_v56 = vrot.slane %v6130_v5, %v7438_v7  ;;  %v5891_v45 = vsel %vm2886_vm10, %v5888_v41, %v5890_v40  ;;  %v1389_v51 = vmin.f32 %v1366_v34, 6.0  ;;  %v1390_v61 = vmin.f32 %v1367_v9, 6.0 }
 0x157   : > { %v1945_v18 = vmul.f32 %v10540_v13, %v7954_v15  ;;  %v5360_v14 = vadd.f32 %v5104_v0, %v4902_v10  ;;  %v6145_v44 = vrot.slane %v6131_v20, %v7438_v7  ;;  %v2425_v60 = vmul.f32 %v10541_v39, %v7954_v15 }
 0x158   : > { %v2427_v50 = vmul.f32 %v10542_v47, %v7942_v27  ;;  %v1659_v33 = vcombine.high %v1389_v51, %v1389_v51  ;;  %v8298_v54 = vrot.slane %v1389_v51, %v7438_v7  ;;  %v1676_v25 = vcombine.high %v1390_v61, %v1390_v61 }
 0x159   : > { %v8301_v41 = vrot.slane %v1390_v61, %v7438_v7  ;;  %v5944_v9 = vadd.f32 %v5891_v45, %v5360_v14  ;;  %v6146_v49 = vcombine.low %v6138_v56, %v6145_v44  ;;  %v2098_v5 = vcombine.low %v1945_v18, %v7946_v8 }
 0x15a   : > { %10543 = vst [vmem:[#allocation81_spill] sm:$0xff] %v8298_v54  ;;  %v2429_v10 = vmul.f32 %v10541_v39, %v7975_v2  ;;  %v8307_v40 = vrot.slane %v1659_v33, %v7438_v7  ;;  %v8311_v34 = vcombine.high %v8298_v54, %v8298_v54  ;;  %v8314_v0 = vrot.slane %v1676_v25, %v7438_v7  ;;  %v10551_v25 = vld [vmem:[#allocation42_spill] sm:$0xff] }
 0x15b   : > { %10544 = vst [vmem:[#allocation82_spill] sm:$0xff] %v8301_v41  ;;  %v8318_v20 = vcombine.high %v8301_v41, %v8301_v41  ;;  %v6402_v56 = vadd.f32 %v6146_v49, %v5944_v9  ;;  %v2112_v8 = vrot.slane %v2098_v5, %v7438_v7  ;;  %v2600_v45 = vcombine.low %v2425_v60, %v7950_v42  ;;  %v10553_v5 = vld [vmem:[#allocation40_spill] sm:$0xff]  ;;  %v10557_v41 = vld [vmem:[#allocation45_spill] sm:$0xff] }
 0x15c   : > { %10545 = vst [vmem:[#allocation83_spill] sm:$0xff] %v8307_v40  ;;  %10546 = vst [vmem:[#allocation84_spill] sm:$0xff] %v8311_v34  ;;  %v2616_v51 = vcombine.low %v2427_v50, %v7980_v31  ;;  %v8325_v61 = vcombine.high %v8307_v40, %v8307_v40  ;;  %v8329_v18 = vcombine.high %v8314_v0, %v8314_v0  ;;  %v10552_v50 = vld [vmem:[#allocation16_spill] sm:$0xff]  ;;  %v10562_v34 = vld [vmem:[#allocation23_spill] sm:$0xff] }
 0x15d   : > { %10547 = vst [vmem:[#allocation85_spill] sm:$0xff] %v8314_v0  ;;  %10548 = vst [vmem:[#allocation86_spill] sm:$0xff] %v8318_v20  ;;  %v2617_v14 = vcombine.low %v2429_v10, %v8000_v57  ;;  %v2993_v44 = vmul.f32 %v7708_v55, %v7933_v62  ;;  %v6418_v33 = vmax.f32 %v6402_v56, 0.0  ;;  %v2113_v9 = vcombine.low %v10551_v25, %v2112_v8  ;;  %v10554_v0 = vld [vmem:[#allocation11_spill] sm:$0xff]  ;;  %v10555_v57 = vld [vmem:[#allocation18_spill] sm:$0xff] }
 0x15e   : > { %10549 = vst [vmem:[#allocation87_spill] sm:$0xff] %v8325_v61  ;;  %10550 = vst [vmem:[#allocation88_spill] sm:$0xff] %v8329_v18  ;;  %v2614_v42 = vrot.slane %v2600_v45, %v7438_v7  ;;  %v2624_v31 = vrot.slane %v2616_v51, %v7438_v7  ;;  %v2994_v49 = vmul.f32 %v10552_v50, %v7954_v15  ;;  %v10556_v62 = vld [vmem:[#allocation39_spill] sm:$0xff] }
 0x15f   : > { %v2631_v60 = vrot.slane %v2617_v14, %v7438_v7  ;;  %v2995_v18 = vmul.f32 %v10554_v0, %v10553_v5  ;;  %v2996_v10 = vmul.f32 %v10555_v57, %v7942_v27  ;;  %v6434_v20 = vmin.f32 %v6418_v33, 6.0  ;;  %v10558_v25 = vld [vmem:[#allocation43_spill] sm:$0xff] }
 0x160   : > { %v2353_v56 = vadd.f32 %v10556_v62, %v2113_v9  ;;  %v2615_v8 = vcombine.low %v10557_v41, %v2614_v42  ;;  %v3451_v45 = vmul.f32 %v7768_v17, %v10558_v25  ;;  %v3147_v61 = vcombine.low %v2993_v44, %v2994_v49  ;;  %v10559_v9 = vld [vmem:[#allocation8_spill] sm:$0xff] }
 0x161   : > { %v2632_v51 = vcombine.low %v2624_v31, %v2631_v60  ;;  %v3148_v14 = vcombine.low %v2995_v18, %v2996_v10  ;;  %v3452_v15 = vmul.f32 %v7798_v35, %v8004_v11  ;;  %7031 = vmatmul.mubr.f32.vlgmr.msra.gmra.mrb[0].mxu1 %v6434_v20  ;;  %v3453_v5 = vmul.f32 %v7781_v24, %v8011_v59  ;;  %v10560_v20 = vld [vmem:[#allocation19_spill] sm:$0xff]  ;;  %v10561_v10 = vld [vmem:[#allocation21_spill] sm:$0xff] }
 0x162   : > { %v2892_v40 = vrot.slane %v2615_v8, 1  ;;  %v3454_v33 = vmul.f32 %v7812_v43, %v8022_v28  ;;  %v3924_v41 = vmul.f32 %v10559_v9, %v10558_v25  ;;  %v3155_v31 = vrot.slane %v3147_v61, %v7438_v7  ;;  %v10563_v61 = vld [vmem:[#allocation29_spill] sm:$0xff] }
 0x163   : > { %v8356_v42 = vrot.slane %v2632_v51, 1  ;;  %v3162_v18 = vrot.slane %v3148_v14, %v7438_v7  ;;  %v3605_v44 = vcombine.low %v3451_v45, %v3452_v15  ;;  %v3925_v49 = vmul.f32 %v10560_v20, %v8004_v11 }
 0x164   : > { %v3606_v60 = vcombine.low %v3453_v5, %v3454_v33  ;;  %v3926_v8 = vmul.f32 %v10561_v10, %v8011_v59  ;;  %v3927_v54 = vmul.f32 %v10562_v34, %v8022_v28  ;;  %v3928_v14 = vmul.f32 %v10563_v61, %v8016_v4 }
 0x165   : > { %v2894_v21 = vsel %vm2886_vm10, %v2892_v40, %v8356_v42  ;;  %v3163_v51 = vcombine.low %v3155_v31, %v3162_v18  ;;  %v3613_v9 = vrot.slane %v3605_v44, %v7438_v7  ;;  %v3929_v5 = vmul.f32 %v10560_v20, %v8026_v22 }
 0x166   : > { %v2945_v45 = vadd.f32 %v2894_v21, %v2353_v56  ;;  %v3620_v15 = vrot.slane %v3606_v60, %v7438_v7  ;;  %v3930_v33 = vmul.f32 %v10561_v10, %v8032_v6  ;;  %v3931_v47 = vmul.f32 %v10562_v34, %v8048_v16 }
 0x167   : > { %v4100_v39 = vcombine.low %v3924_v41, %v3925_v49  ;;  %v4101_v40 = vcombine.low %v3926_v8, %v3927_v54  ;;  %v4493_v31 = vmul.f32 %v7787_v29, %v8004_v11  ;;  %v4117_v61 = vcombine.low %v3928_v14, %v3929_v5  ;;  %v10566_v5 = vld [vmem:[#allocation55_spill] sm:$0xff]  ;;  %v10575_v11 = vld [vmem:[#allocation56_spill] sm:$0xff] }
 0x168   : > { %v3403_v18 = vadd.f32 %v3163_v51, %v2945_v45  ;;  %v3621_v44 = vcombine.low %v3613_v9, %v3620_v15  ;;  %v4494_v21 = vmul.f32 %v7825_v52, %v8011_v59  ;;  %v4118_v20 = vcombine.low %v3930_v33, %v3931_v47  ;;  %v10564_v51 = vld [vmem:[#allocation60_spill] sm:$0xff] }
 0x169   : > { %v4108_v56 = vrot.slane %v4100_v39, %v7438_v7  ;;  %v4115_v60 = vrot.slane %v4101_v40, %v7438_v7  ;;  %v4495_v10 = vmul.f32 %v7790_v30, %v8022_v28  ;;  %v4125_v54 = vrot.slane %v4117_v61, %v7438_v7  ;;  %v10565_v39 = vld [vmem:[#allocation50_spill] sm:$0xff] }
 0x16a   : > { %v3861_v34 = vadd.f32 %v3621_v44, %v3403_v18  ;;  %v4496_v41 = vmul.f32 %v7829_v53, %v8016_v4  ;;  %v4647_v49 = vcombine.low %v4493_v31, %v4494_v21  ;;  %v4132_v8 = vrot.slane %v4118_v20, %v7438_v7  ;;  %v10567_v20 = vld [vmem:[#allocation20_spill] sm:$0xff] }
 0x16b   : > { %v4116_v9 = vcombine.low %v4108_v56, %v4115_v60  ;;  %v4951_v14 = vmul.f32 %v7801_v36, %v10564_v51  ;;  %v4952_v45 = vmul.f32 %v7836_v63, %v10565_v39  ;;  %v4953_v33 = vmul.f32 %v7804_v37, %v10566_v5  ;;  %v10568_v60 = vld [vmem:[#allocation33_spill] sm:$0xff] }
 0x16c   : > { %v4648_v47 = vcombine.low %v4495_v10, %v4496_v41  ;;  %v4655_v15 = vrot.slane %v4647_v49, %v7438_v7  ;;  %v4954_v61 = vmul.f32 %v7840_v3, %v8051_v48  ;;  %v4133_v40 = vcombine.low %v4125_v54, %v4132_v8  ;;  %v10569_v41 = vld [vmem:[#allocation34_spill] sm:$0xff]  ;;  %v10571_v54 = vld [vmem:[#allocation36_spill] sm:$0xff] }
 0x16d   : > { %v4392_v31 = vrot.slane %v4116_v9, 1  ;;  %v5105_v18 = vcombine.low %v4951_v14, %v4952_v45  ;;  %v5424_v44 = vmul.f32 %v10567_v20, %v10564_v51  ;;  %v5425_v10 = vmul.f32 %v10568_v60, %v10565_v39  ;;  %v10572_v8 = vld [vmem:[#allocation38_spill] sm:$0xff]  ;;  %v10574_v20 = vld [vmem:[#allocation57_spill] sm:$0xff] }
 0x16e   : > { %v4662_v21 = vrot.slane %v4648_v47, %v7438_v7  ;;  %v5106_v56 = vcombine.low %v4953_v33, %v4954_v61  ;;  %v5426_v49 = vmul.f32 %v10569_v41, %v10566_v5  ;;  %v8406_v28 = vrot.slane %v4133_v40, 1  ;;  %v10573_v33 = vld [vmem:[#allocation51_spill] sm:$0xff] }
 0x16f   : > { %v5113_v59 = vrot.slane %v5105_v18, %v7438_v7  ;;  %v5427_v9 = vmul.f32 %v10571_v54, %v8051_v48  ;;  %v5428_v14 = vmul.f32 %v10572_v8, %v8287_v1  ;;  %v5429_v61 = vmul.f32 %v10568_v60, %v10573_v33 }
 0x170   : > { %10570 = vst [vmem:[#allocation42_spill] sm:$0xff] %v8406_v28  ;;  %v4663_v45 = vcombine.low %v4655_v15, %v4662_v21  ;;  %v5120_v47 = vrot.slane %v5106_v56, %v7438_v7  ;;  %v5430_v51 = vmul.f32 %v10569_v41, %v10574_v20  ;;  %v4394_v40 = vsel %vm2886_vm10, %v4392_v31, %v8406_v28 }
 0x171   : > { %v5431_v18 = vmul.f32 %v10571_v54, %v10575_v11  ;;  %v5600_v25 = vcombine.low %v5424_v44, %v5425_v10  ;;  %v5601_v19 = vcombine.low %v5426_v49, %v5427_v9  ;;  %v4445_v3 = vadd.f32 %v4394_v40, %v3861_v34 }
 0x172   : > { %v5121_v37 = vcombine.low %v5113_v59, %v5120_v47  ;;  %v5617_v8 = vcombine.low %v5428_v14, %v5429_v61  ;;  %v5993_v15 = vmul.f32 %v10531_v38, %v10565_v39  ;;  %v5994_v41 = vmul.f32 %v10532_v58, %v10566_v5 }
 0x173   : > { %v5608_v21 = vrot.slane %v5600_v25, %v7438_v7  ;;  %v5615_v56 = vrot.slane %v5601_v19, %v7438_v7  ;;  %v5618_v60 = vcombine.low %v5430_v51, %v5431_v18  ;;  %v4903_v31 = vadd.f32 %v4663_v45, %v4445_v3  ;;  %v10577_v3 = vld [vmem:[#allocation6_spill] sm:$0xff] }
 0x174   : > { %v5625_v28 = vrot.slane %v5617_v8, %v7438_v7  ;;  %v5995_v44 = vmul.f32 %v10533_v12, %v8051_v48  ;;  %v5996_v59 = vmul.f32 %v10534_v23, %v8287_v1  ;;  %v6147_v49 = vcombine.low %v5993_v15, %v5994_v41  ;;  %v10578_v8 = vld [vmem:[#allocation9_spill] sm:$0xff]  ;;  %v10579_v18 = vld [vmem:[#allocation10_spill] sm:$0xff] }
 0x175   : > { %v5616_v34 = vcombine.low %v5608_v21, %v5615_v56  ;;  %v5632_v10 = vrot.slane %v5618_v60, %v7438_v7  ;;  %v8436_v19 = vcombine.high %v10575_v11, %v10575_v11  ;;  %v5361_v25 = vadd.f32 %v5121_v37, %v4903_v31  ;;  %v10580_v21 = vld [vmem:[#allocation44_spill] sm:$0xff]  ;;  %v10581_v31 = vld [vmem:[#allocation41_spill] sm:$0xff] }
 0x176   : > { %v6148_v51 = vcombine.low %v5995_v44, %v5996_v59  ;;  %v1947_v9 = vmul.f32 %v10577_v3, %v7942_v27  ;;  %v1948_v14 = vmul.f32 %v10578_v8, %v7938_v26  ;;  %v6155_v61 = vrot.slane %v6147_v49, %v7438_v7 }
 0x177   : > { %10576 = vst [vmem:[#allocation16_spill] sm:$0xff] %v8436_v19  ;;  %v5633_v45 = vcombine.low %v5625_v28, %v5632_v10  ;;  %v5892_v47 = vrot.slane %v5616_v34, 1  ;;  %v1949_v60 = vmul.f32 %v10540_v13, %v7975_v2  ;;  %v2431_v37 = vmul.f32 %v10579_v18, %v8224_v32 }
 0x178   : > { %v6162_v41 = vrot.slane %v6148_v51, %v7438_v7  ;;  %v2114_v40 = vcombine.low %v1947_v9, %v1948_v14  ;;  %v2997_v15 = vmul.f32 %v7708_v55, %v7938_v26  ;;  %v2998_v28 = vmul.f32 %v10552_v50, %v7975_v2 }
 0x179   : > { %v8450_v27 = vrot.slane %v5633_v45, 1  ;;  %v2115_v56 = vcombine.low %v1949_v60, %v10580_v21  ;;  %v2999_v44 = vmul.f32 %v10554_v0, %v10581_v31  ;;  %v2639_v10 = vrot.slane %v2431_v37, %v7438_v7  ;;  %v10582_v31 = vld [vmem:[#allocation22_spill] sm:$0xff] }
 0x17a   : > { %v6163_v59 = vcombine.low %v6155_v61, %v6162_v41  ;;  %v2122_v34 = vrot.slane %v2114_v40, %v7438_v7  ;;  %v3000_v49 = vmul.f32 %v10555_v57, %v8224_v32  ;;  %v3164_v9 = vcombine.low %v2997_v15, %v2998_v28 }
 0x17b   : > { %v5894_v26 = vsel %vm2886_vm10, %v5892_v47, %v8450_v27  ;;  %v2129_v51 = vrot.slane %v2115_v56, %v7438_v7  ;;  %v3455_v2 = vmul.f32 %v7768_v17, %v8016_v4  ;;  %v2895_v45 = vrot.slane %v2639_v10, 1 }
 0x17c   : > { %v5945_v14 = vadd.f32 %v5894_v26, %v5361_v25  ;;  %v3165_v60 = vcombine.low %v2999_v44, %v3000_v49  ;;  %v3456_v61 = vmul.f32 %v7798_v35, %v8026_v22  ;;  %v3172_v40 = vrot.slane %v3164_v9, %v7438_v7 }
 0x17d   : > { %v2130_v41 = vcombine.low %v2122_v34, %v2129_v51  ;;  %v3457_v32 = vmul.f32 %v7781_v24, %v8032_v6  ;;  %v3458_v47 = vmul.f32 %v7812_v43, %v8048_v16  ;;  %v2896_v15 = vsel %vm2886_vm10, %v8356_v42, %v2895_v45 }
 0x17e   : > { %v6403_v37 = vadd.f32 %v6163_v59, %v5945_v14  ;;  %v3179_v25 = vrot.slane %v3165_v60, %v7438_v7  ;;  %v3622_v21 = vcombine.low %v3455_v2, %v3456_v61  ;;  %v3932_v44 = vmul.f32 %v10582_v31, %v8044_v46 }
 0x17f   : > { %v2354_v56 = vadd.f32 %v10556_v62, %v2130_v41  ;;  %v3623_v28 = vcombine.low %v3457_v32, %v3458_v47  ;;  %v4497_v34 = vmul.f32 %v7787_v29, %v8026_v22  ;;  %v4498_v59 = vmul.f32 %v7825_v52, %v8032_v6 }
 0x180   : > { %v6419_v10 = vmax.f32 %v6403_v37, 0.0  ;;  %v3180_v49 = vcombine.low %v3172_v40, %v3179_v25  ;;  %v3630_v26 = vrot.slane %v3622_v21, %v7438_v7  ;;  %v4140_v9 = vrot.slane %v3932_v44, %v7438_v7  ;;  %v10584_v21 = vld [vmem:[#allocation32_spill] sm:$0xff]  ;;  %v10585_v44 = vld [vmem:[#allocation42_spill] sm:$0xff] }
 0x181   : > { %v2946_v42 = vadd.f32 %v2896_v15, %v2354_v56  ;;  %v3637_v51 = vrot.slane %v3623_v28, %v7438_v7  ;;  %v4499_v62 = vmul.f32 %v7790_v30, %v8048_v16  ;;  %v4500_v14 = vmul.f32 %v7829_v53, %v8044_v46  ;;  %v10583_v15 = vld [vmem:[#allocation25_spill] sm:$0xff] }
 0x182   : > { %v6435_v2 = vmin.f32 %v6419_v10, 6.0  ;;  %v4664_v45 = vcombine.low %v4497_v34, %v4498_v59  ;;  %v4955_v60 = vmul.f32 %v7801_v36, %v8287_v1  ;;  %v4395_v40 = vrot.slane %v4140_v9, 1 }
 0x183   : > { %v3404_v61 = vadd.f32 %v3180_v49, %v2946_v42  ;;  %v3638_v41 = vcombine.low %v3630_v26, %v3637_v51  ;;  %v4956_v32 = vmul.f32 %v7836_v63, %v10573_v33  ;;  %v4665_v47 = vcombine.low %v4499_v62, %v4500_v14  ;;  %v10586_v49 = vld [vmem:[#allocation30_spill] sm:$0xff]  ;;  %v8508_v62 = vpop.f32.mrb[40].mxu0 }
 0x184   : > { %7033 = vmatprep.mubr.f32.mxu1 %v6435_v2  ;;  %v4672_v37 = vrot.slane %v4664_v45, %v7438_v7  ;;  %v4957_v25 = vmul.f32 %v10583_v15, %v10574_v20  ;;  %v4958_v56 = vmul.f32 %v10584_v21, %v10575_v11  ;;  %v4396_v34 = vsel %vm2886_vm10, %v10585_v44, %v4395_v40  ;;  %v10589_v44 = vld [vmem:[#allocation78_spill] sm:$0xff] }
 0x185   : > { %v3862_v28 = vadd.f32 %v3638_v41, %v3404_v61  ;;  %v5122_v10 = vcombine.low %v4955_v60, %v4956_v32  ;;  %v5432_v26 = vmul.f32 %v10586_v49, %v8436_v19  ;;  %v4679_v59 = vrot.slane %v4665_v47, %v7438_v7  ;;  %10587 = vst [vmem:[#allocation40_spill] sm:$0xff] %v8508_v62  ;;  %v6991_v61 = vpop.f32.mrb[41].mxu0  ;;  %v10591_v62 = vld [vmem:[#allocation58_spill] sm:$0xff] }
 0x186   : > { %v5123_v42 = vcombine.low %v4957_v25, %v4958_v56  ;;  %v5997_v51 = vmul.f32 %v10531_v38, %v10573_v33  ;;  %v5998_v9 = vmul.f32 %v10532_v58, %v10574_v20  ;;  %v5999_v60 = vmul.f32 %v10533_v12, %v10575_v11  ;;  %v8517_v25 = vpop.f32.mrb[42].mxu0 }
 0x187   : > { %v4446_v2 = vadd.f32 %v4396_v34, %v3862_v28  ;;  %v5130_v14 = vrot.slane %v5122_v10, %v7438_v7  ;;  %v5640_v45 = vrot.slane %v5432_v26, %v7438_v7  ;;  %v4680_v41 = vcombine.low %v4672_v37, %v4679_v59  ;;  %10588 = vst [vmem:[#allocation11_spill] sm:$0xff] %v8517_v25  ;;  %v10590_v34 = vld [vmem:[#allocation37_spill] sm:$0xff]  ;;  %v6994_v49 = vpop.f32.mrb[43].mxu0 }
 0x188   : > { %v5137_v40 = vrot.slane %v5123_v42, %v7438_v7  ;;  %v6000_v32 = vmul.f32 %v10534_v23, %v8436_v19  ;;  %v6164_v47 = vcombine.low %v5997_v51, %v5998_v9  ;;  %v1368_v28 = vmax.f32 %v10589_v44, 0.0  ;;  %v8526_v31 = vpop.f32.mrb[44].mxu0  ;;  %v10594_v44 = vld [vmem:[#allocation43_spill] sm:$0xff]  ;;  %v10595_v49 = vld [vmem:[#allocation46_spill] sm:$0xff] }
 0x189   : > { %v5895_v56 = vrot.slane %v5640_v45, 1  ;;  %v1369_v10 = vmax.f32 %v10590_v34, 0.0  ;;  %v8523_v26 = vcombine.high %v10591_v62, %v10591_v62  ;;  %v4904_v61 = vadd.f32 %v4680_v41, %v4446_v2  ;;  %10593 = vst [vmem:[#allocation39_spill] sm:$0xff] %v8526_v31  ;;  %v6997_v25 = vpop.f32.mrb[45].mxu0 }
 0x18a   : > { %v5138_v37 = vcombine.low %v5130_v14, %v5137_v40  ;;  %v6165_v59 = vcombine.low %v5999_v60, %v6000_v32  ;;  %v6172_v42 = vrot.slane %v6164_v47, %v7438_v7  ;;  %v1391_v9 = vmin.f32 %v1368_v28, 6.0  ;;  %v10596_v14 = vld [vmem:[#allocation48_spill] sm:$0xff]  ;;  %v10599_v25 = vld [vmem:[#allocation49_spill] sm:$0xff] }
 0x18b   : > { %10592 = vst [vmem:[#allocation18_spill] sm:$0xff] %v8523_v26  ;;  %v5896_v51 = vsel %vm2886_vm10, %v8450_v27, %v5895_v56  ;;  %v1392_v45 = vmin.f32 %v1369_v10, 6.0  ;;  %v1951_v34 = vmul.f32 %v10577_v3, %v10594_v44  ;;  %v1952_v2 = vmul.f32 %v10578_v8, %v10595_v49  ;;  %v10600_v28 = vld [vmem:[#allocation12_spill] sm:$0xff] }
 0x18c   : > { %v5362_v19 = vadd.f32 %v5138_v37, %v4904_v61  ;;  %v6179_v18 = vrot.slane %v6165_v59, %v7438_v7  ;;  %v1953_v60 = vmul.f32 %v10540_v13, %v10596_v14  ;;  %v1693_v41 = vcombine.high %v1391_v9, %v1391_v9 }
 0x18d   : > { %v8538_v40 = vrot.slane %v1391_v9, %v7438_v7  ;;  %v1710_v27 = vcombine.high %v1392_v45, %v1392_v45  ;;  %v8541_v32 = vrot.slane %v1392_v45, %v7438_v7  ;;  %v1954_v10 = vmul.f32 %v10600_v28, %v10599_v25 }
 0x18e   : > { %v5946_v47 = vadd.f32 %v5896_v51, %v5362_v19  ;;  %v6180_v56 = vcombine.low %v6172_v42, %v6179_v18  ;;  %v2131_v61 = vcombine.low %v1951_v34, %v1952_v2  ;;  %v8546_v37 = vrot.slane %v1693_v41, %v7438_v7  ;;  %v10605_v51 = vld [vmem:[#allocation13_spill] sm:$0xff]  ;;  %v10606_v34 = vld [vmem:[#allocation14_spill] sm:$0xff]  ;;  %v10607_v41 = vld [vmem:[#allocation15_spill] sm:$0xff] }
 0x18f   : > { %10597 = vst [vmem:[#allocation45_spill] sm:$0xff] %v8538_v40  ;;  %10598 = vst [vmem:[#allocation36_spill] sm:$0xff] %v8541_v32  ;;  %v8550_v59 = vcombine.high %v8538_v40, %v8538_v40  ;;  %v8553_v9 = vrot.slane %v1710_v27, %v7438_v7  ;;  %v8557_v45 = vcombine.high %v8541_v32, %v8541_v32  ;;  %v10608_v27 = vld [vmem:[#allocation17_spill] sm:$0xff] }
 0x190   : > { %10601 = vst [vmem:[#allocation51_spill] sm:$0xff] %v8546_v37  ;;  %v6404_v19 = vadd.f32 %v6180_v56, %v5946_v47  ;;  %v2132_v18 = vcombine.low %v1953_v60, %v1954_v10  ;;  %v2139_v42 = vrot.slane %v2131_v61, %v7438_v7  ;;  %v2433_v44 = vmul.f32 %v10605_v51, %v10595_v49  ;;  %v10609_v10 = vld [vmem:[#allocation47_spill] sm:$0xff] }
 0x191   : > { %10602 = vst [vmem:[#allocation57_spill] sm:$0xff] %v8550_v59  ;;  %10603 = vst [vmem:[#allocation56_spill] sm:$0xff] %v8553_v9  ;;  %v2434_v2 = vmul.f32 %v10606_v34, %v10596_v14  ;;  %v2435_v59 = vmul.f32 %v10607_v41, %v10599_v25  ;;  %v2436_v9 = vmul.f32 %v10608_v27, %v8016_v4 }
 0x192   : > { %10604 = vst [vmem:[#allocation44_spill] sm:$0xff] %v8557_v45  ;;  %v2437_v32 = vmul.f32 %v10605_v51, %v8026_v22  ;;  %v6420_v45 = vmax.f32 %v6404_v19, 0.0  ;;  %v2146_v60 = vrot.slane %v2132_v18, %v7438_v7  ;;  %v2438_v47 = vmul.f32 %v10606_v34, %v8032_v6 }
 0x193   : > { %v2439_v56 = vmul.f32 %v10607_v41, %v8048_v16  ;;  %v2640_v61 = vcombine.low %v10609_v10, %v2433_v44  ;;  %v2641_v40 = vcombine.low %v2434_v2, %v2435_v59  ;;  %v3001_v31 = vmul.f32 %v7708_v55, %v10595_v49  ;;  %v8588_v49 = vld [vmem:[%s10166_s3] ss:$0 sm:$0xff] }
 0x194   : > { %v2657_v37 = vcombine.low %v2436_v9, %v2437_v32  ;;  %v6436_v27 = vmin.f32 %v6420_v45, 6.0  ;;  %v2147_v46 = vcombine.low %v2139_v42, %v2146_v60  ;;  %v3002_v19 = vmul.f32 %v10552_v50, %v10596_v14  ;;  %10610 = vst [vmem:[#allocation41_spill] sm:$0xff] %v8588_v49  ;;  %v10611_v45 = vld [vmem:[#allocation60_spill] sm:$0xff] }
 0x195   : > { %v2658_v28 = vcombine.low %v2438_v47, %v2439_v56  ;;  %v2648_v18 = vrot.slane %v2640_v61, %v7438_v7  ;;  %v2655_v34 = vrot.slane %v2641_v40, %v7438_v7  ;;  %v3003_v44 = vmul.f32 %v10554_v0, %v10599_v25  ;;  %v10613_v56 = vld [vmem:[#allocation19_spill] sm:$0xff] }
 0x196   : > { %v2665_v51 = vrot.slane %v2657_v37, %v7438_v7  ;;  %7034 = vmatmul.mubr.f32.gmra.mrb[2].mxu1 %v6436_v27  ;;  %v2355_v32 = vadd.f32 %v8588_v49, %v2147_v46  ;;  %v3004_v14 = vmul.f32 %v10555_v57, %v8016_v4  ;;  %v3181_v9 = vcombine.low %v3001_v31, %v3002_v19  ;;  %v10612_v31 = vld [vmem:[#allocation8_spill] sm:$0xff] }
 0x197   : > { %v2672_v59 = vrot.slane %v2658_v28, %v7438_v7  ;;  %v2656_v40 = vcombine.low %v2648_v18, %v2655_v34  ;;  %v3459_v37 = vmul.f32 %v7768_v17, %v10611_v45  ;;  %v3460_v25 = vmul.f32 %v7798_v35, %v10565_v39 }
 0x198   : > { %v3461_v42 = vmul.f32 %v7781_v24, %v10566_v5  ;;  %v3182_v27 = vcombine.low %v3003_v44, %v3004_v14  ;;  %v3189_v46 = vrot.slane %v3181_v9, %v7438_v7  ;;  %v3462_v28 = vmul.f32 %v7812_v43, %v8051_v48  ;;  %v10615_v14 = vld [vmem:[#allocation23_spill] sm:$0xff] }
 0x199   : > { %v2673_v2 = vcombine.low %v2665_v51, %v2672_v59  ;;  %v2897_v60 = vrot.slane %v2656_v40, 1  ;;  %v3639_v47 = vcombine.low %v3459_v37, %v3460_v25  ;;  %v3933_v34 = vmul.f32 %v10612_v31, %v10611_v45  ;;  %v10614_v51 = vld [vmem:[#allocation21_spill] sm:$0xff] }
 0x19a   : > { %v3934_v10 = vmul.f32 %v10613_v56, %v10565_v39  ;;  %v3196_v19 = vrot.slane %v3182_v27, %v7438_v7  ;;  %v3640_v18 = vcombine.low %v3461_v42, %v3462_v28  ;;  %v3935_v44 = vmul.f32 %v10614_v51, %v10566_v5  ;;  %v10616_v40 = vld [vmem:[#allocation29_spill] sm:$0xff] }
 0x19b   : > { %v8607_v61 = vrot.slane %v2673_v2, 1  ;;  %v3647_v59 = vrot.slane %v3639_v47, %v7438_v7  ;;  %v3936_v9 = vmul.f32 %v10615_v14, %v8051_v48  ;;  %v3937_v37 = vmul.f32 %v10616_v40, %v8287_v1 }
 0x19c   : > { %v3938_v25 = vmul.f32 %v10613_v56, %v10573_v33  ;;  %v3197_v41 = vcombine.low %v3189_v46, %v3196_v19  ;;  %v3654_v42 = vrot.slane %v3640_v18, %v7438_v7  ;;  %v3939_v27 = vmul.f32 %v10614_v51, %v10574_v20 }
 0x19d   : > { %v2899_v2 = vsel %vm2886_vm10, %v2897_v60, %v8607_v61  ;;  %v3940_v47 = vmul.f32 %v10615_v14, %v10575_v11  ;;  %v4141_v31 = vcombine.low %v3933_v34, %v3934_v10  ;;  %v4142_v45 = vcombine.low %v3935_v44, %v3936_v9 }
 0x19e   : > { %v2947_v28 = vadd.f32 %v2899_v2, %v2355_v32  ;;  %v3655_v49 = vcombine.low %v3647_v59, %v3654_v42  ;;  %v4158_v40 = vcombine.low %v3937_v37, %v3938_v25  ;;  %v4501_v56 = vmul.f32 %v7787_v29, %v10565_v39  ;;  %v10617_v25 = vld [vmem:[#allocation52_spill] sm:$0xff]  ;;  %v10618_v2 = vld [vmem:[#allocation59_spill] sm:$0xff] }
 0x19f   : > { %v4502_v60 = vmul.f32 %v7825_v52, %v10566_v5  ;;  %v4149_v19 = vrot.slane %v4141_v31, %v7438_v7  ;;  %v4156_v18 = vrot.slane %v4142_v45, %v7438_v7  ;;  %v4159_v51 = vcombine.low %v3939_v27, %v3940_v47 }
 0x1a0   : > { %v3405_v46 = vadd.f32 %v3197_v41, %v2947_v28  ;;  %v4166_v32 = vrot.slane %v4158_v40, %v7438_v7  ;;  %v4503_v34 = vmul.f32 %v7790_v30, %v8051_v48  ;;  %v4504_v10 = vmul.f32 %v7829_v53, %v8287_v1 }
 0x1a1   : > { %v4681_v44 = vcombine.low %v4501_v56, %v4502_v60  ;;  %v4157_v9 = vcombine.low %v4149_v19, %v4156_v18  ;;  %v4173_v37 = vrot.slane %v4159_v51, %v7438_v7  ;;  %v4959_v41 = vmul.f32 %v7801_v36, %v10617_v25  ;;  %v10619_v56 = vld [vmem:[#allocation20_spill] sm:$0xff]  ;;  %v10621_v18 = vld [vmem:[#allocation34_spill] sm:$0xff] }
 0x1a2   : > { %v3863_v59 = vadd.f32 %v3655_v49, %v3405_v46  ;;  %v4682_v31 = vcombine.low %v4503_v34, %v4504_v10  ;;  %v4960_v40 = vmul.f32 %v7836_v63, %v10618_v2  ;;  %v4961_v42 = vmul.f32 %v10583_v15, %v10591_v62  ;;  %v10620_v46 = vld [vmem:[#allocation33_spill] sm:$0xff] }
 0x1a3   : > { %v4689_v45 = vrot.slane %v4681_v44, %v7438_v7  ;;  %v4174_v27 = vcombine.low %v4166_v32, %v4173_v37  ;;  %v4397_v28 = vrot.slane %v4157_v9, 1  ;;  %v4962_v49 = vmul.f32 %v10584_v21, %v8523_v26  ;;  %v10623_v9 = vld [vmem:[#allocation63_spill] sm:$0xff]  ;;  %v10624_v37 = vld [vmem:[#allocation38_spill] sm:$0xff] }
 0x1a4   : > { %v5433_v51 = vmul.f32 %v10619_v56, %v10617_v25  ;;  %v4696_v47 = vrot.slane %v4682_v31, %v7438_v7  ;;  %v5139_v60 = vcombine.low %v4959_v41, %v4960_v40  ;;  %v5434_v19 = vmul.f32 %v10620_v46, %v10618_v2  ;;  %v10625_v31 = vld [vmem:[#allocation66_spill] sm:$0xff]  ;;  %v10626_v40 = vld [vmem:[#allocation65_spill] sm:$0xff] }
 0x1a5   : > { %v5435_v34 = vmul.f32 %v10621_v18, %v10591_v62  ;;  %v8654_v10 = vrot.slane %v4174_v27, 1  ;;  %v5140_v44 = vcombine.low %v4961_v42, %v4962_v49  ;;  %v5436_v32 = vmul.f32 %v10571_v54, %v8523_v26  ;;  %v10627_v49 = vld [vmem:[#allocation69_spill] sm:$0xff] }
 0x1a6   : > { %v5437_v14 = vmul.f32 %v10624_v37, %v10623_v9  ;;  %v4697_v48 = vcombine.low %v4689_v45, %v4696_v47  ;;  %v5147_v25 = vrot.slane %v5139_v60, %v7438_v7  ;;  %v5438_v41 = vmul.f32 %v10620_v46, %v10625_v31 }
 0x1a7   : > { %10622 = vst [vmem:[#allocation42_spill] sm:$0xff] %v8654_v10  ;;  %v5439_v56 = vmul.f32 %v10621_v18, %v10626_v40  ;;  %v4399_v27 = vsel %vm2886_vm10, %v4397_v28, %v8654_v10  ;;  %v5154_v42 = vrot.slane %v5140_v44, %v7438_v7  ;;  %v5440_v5 = vmul.f32 %v10571_v54, %v10627_v49 }
 0x1a8   : > { %v5641_v39 = vcombine.low %v5433_v51, %v5434_v19  ;;  %v4447_v21 = vadd.f32 %v4399_v27, %v3863_v59  ;;  %v5642_v37 = vcombine.low %v5435_v34, %v5436_v32  ;;  %v5658_v45 = vcombine.low %v5437_v14, %v5438_v41  ;;  %v10629_v27 = vld [vmem:[#allocation53_spill] sm:$0xff] }
 0x1a9   : > { %v6001_v47 = vmul.f32 %v10531_v38, %v10618_v2  ;;  %v5155_v60 = vcombine.low %v5147_v25, %v5154_v42  ;;  %v5659_v15 = vcombine.low %v5439_v56, %v5440_v5  ;;  %v6002_v18 = vmul.f32 %v10532_v58, %v10591_v62  ;;  %v10630_v42 = vld [vmem:[#allocation10_spill] sm:$0xff] }
 0x1aa   : > { %v5649_v46 = vrot.slane %v5641_v39, %v7438_v7  ;;  %v4905_v28 = vadd.f32 %v4697_v48, %v4447_v21  ;;  %v5656_v44 = vrot.slane %v5642_v37, %v7438_v7  ;;  %v5666_v10 = vrot.slane %v5658_v45, %v7438_v7 }
 0x1ab   : > { %v6003_v59 = vmul.f32 %v10533_v12, %v8523_v26  ;;  %v5673_v14 = vrot.slane %v5659_v15, %v7438_v7  ;;  %v6004_v51 = vmul.f32 %v10534_v23, %v10623_v9  ;;  %v6181_v25 = vcombine.low %v6001_v47, %v6002_v18  ;;  %v10628_v15 = vld [vmem:[#allocation12_spill] sm:$0xff] }
 0x1ac   : > { %v1955_v39 = vmul.f32 %v10577_v3, %v8016_v4  ;;  %v5363_v5 = vadd.f32 %v5155_v60, %v4905_v28  ;;  %v5657_v56 = vcombine.low %v5649_v46, %v5656_v44  ;;  %v1956_v48 = vmul.f32 %v10578_v8, %v8026_v22 }
 0x1ad   : > { %v1957_v21 = vmul.f32 %v10540_v13, %v8032_v6  ;;  %v5674_v19 = vcombine.low %v5666_v10, %v5673_v14  ;;  %v6182_v34 = vcombine.low %v6003_v59, %v6004_v51  ;;  %v6189_v32 = vrot.slane %v6181_v25, %v7438_v7 }
 0x1ae   : > { %v1958_v37 = vmul.f32 %v10628_v15, %v8048_v16  ;;  %v5897_v41 = vrot.slane %v5657_v56, 1  ;;  %v2148_v18 = vcombine.low %v1955_v39, %v1956_v48  ;;  %v2440_v4 = vmul.f32 %v10630_v42, %v10629_v27  ;;  %v10640_v42 = vld [vmem:[#allocation80_spill] sm:$0xff] }
 0x1af   : > { %v3005_v46 = vmul.f32 %v7708_v55, %v8026_v22  ;;  %v8695_v45 = vrot.slane %v5674_v19, 1  ;;  %v6196_v47 = vrot.slane %v6182_v34, %v7438_v7  ;;  %v3006_v10 = vmul.f32 %v10552_v50, %v8032_v6 }
 0x1b0   : > { %v2149_v60 = vcombine.low %v1957_v21, %v1958_v37  ;;  %v2156_v28 = vrot.slane %v2148_v18, %v7438_v7  ;;  %v2680_v44 = vrot.slane %v2440_v4, %v7438_v7  ;;  %v3007_v59 = vmul.f32 %v10554_v0, %v8048_v16 }
 0x1b1   : > { %v3008_v14 = vmul.f32 %v10555_v57, %v10629_v27  ;;  %v5899_v22 = vsel %vm2886_vm10, %v5897_v41, %v8695_v45  ;;  %v6197_v51 = vcombine.low %v6189_v32, %v6196_v47  ;;  %v3198_v39 = vcombine.low %v3005_v46, %v3006_v10  ;;  %v10631_v27 = vld [vmem:[#allocation41_spill] sm:$0xff]  ;;  %v10632_v47 = vld [vmem:[#allocation16_spill] sm:$0xff] }
 0x1b2   : > { %v2163_v25 = vrot.slane %v2149_v60, %v7438_v7  ;;  %v5947_v56 = vadd.f32 %v5899_v22, %v5363_v5  ;;  %v2900_v48 = vrot.slane %v2680_v44, 1  ;;  %v3463_v21 = vmul.f32 %v7768_v17, %v8287_v1  ;;  %v10633_v60 = vld [vmem:[#allocation22_spill] sm:$0xff] }
 0x1b3   : > { %v3199_v6 = vcombine.low %v3007_v59, %v3008_v14  ;;  %v3206_v34 = vrot.slane %v3198_v39, %v7438_v7  ;;  %v3464_v16 = vmul.f32 %v7798_v35, %v10573_v33  ;;  %v3465_v37 = vmul.f32 %v7781_v24, %v10574_v20 }
 0x1b4   : > { %v2164_v19 = vcombine.low %v2156_v28, %v2163_v25  ;;  %v6405_v41 = vadd.f32 %v6197_v51, %v5947_v56  ;;  %v2901_v32 = vsel %vm2886_vm10, %v8607_v61, %v2900_v48  ;;  %v3466_v18 = vmul.f32 %v7812_v43, %v10575_v11 }
 0x1b5   : > { %v3213_v5 = vrot.slane %v3199_v6, %v7438_v7  ;;  %v3656_v46 = vcombine.low %v3463_v21, %v3464_v16  ;;  %v3941_v10 = vmul.f32 %v10633_v60, %v10632_v47  ;;  %v4505_v28 = vmul.f32 %v7787_v29, %v10573_v33 }
 0x1b6   : > { %v2356_v4 = vadd.f32 %v10631_v27, %v2164_v19  ;;  %v6421_v44 = vmax.f32 %v6405_v41, 0.0  ;;  %v3657_v14 = vcombine.low %v3465_v37, %v3466_v18  ;;  %v4506_v61 = vmul.f32 %v7825_v52, %v10574_v20  ;;  %v10634_v18 = vld [vmem:[#allocation25_spill] sm:$0xff] }
 0x1b7   : > { %v3214_v59 = vcombine.low %v3206_v34, %v3213_v5  ;;  %v3664_v51 = vrot.slane %v3656_v46, %v7438_v7  ;;  %v4181_v25 = vrot.slane %v3941_v10, %v7438_v7  ;;  %v4507_v39 = vmul.f32 %v7790_v30, %v10575_v11  ;;  %v10635_v46 = vld [vmem:[#allocation42_spill] sm:$0xff] }
 0x1b8   : > { %v2948_v22 = vadd.f32 %v2901_v32, %v2356_v4  ;;  %v6437_v56 = vmin.f32 %v6421_v44, 6.0  ;;  %v3671_v48 = vrot.slane %v3657_v14, %v7438_v7  ;;  %v4508_v6 = vmul.f32 %v7829_v53, %v10632_v47  ;;  %v10637_v14 = vld [vmem:[#allocation64_spill] sm:$0xff]  ;;  %v10641_v47 = vld [vmem:[#allocation67_spill] sm:$0xff] }
 0x1b9   : > { %v4698_v21 = vcombine.low %v4505_v28, %v4506_v61  ;;  %v4400_v34 = vrot.slane %v4181_v25, 1  ;;  %v4963_v16 = vmul.f32 %v7801_v36, %v10623_v9  ;;  %v4964_v37 = vmul.f32 %v7836_v63, %v10625_v31  ;;  %v10636_v28 = vld [vmem:[#allocation32_spill] sm:$0xff]  ;;  %v10638_v61 = vld [vmem:[#allocation30_spill] sm:$0xff] }
 0x1ba   : > { %v3406_v19 = vadd.f32 %v3214_v59, %v2948_v22  ;;  %7036 = vmatprep.mubr.f32.mxu1 %v6437_v56  ;;  %v3672_v41 = vcombine.low %v3664_v51, %v3671_v48  ;;  %v4699_v32 = vcombine.low %v4507_v39, %v4508_v6  ;;  %v4965_v4 = vmul.f32 %v10634_v18, %v10626_v40 }
 0x1bb   : > { %v4706_v5 = vrot.slane %v4698_v21, %v7438_v7  ;;  %v4401_v10 = vsel %vm2886_vm10, %v10635_v46, %v4400_v34  ;;  %v4966_v44 = vmul.f32 %v10636_v28, %v10627_v49  ;;  %v5156_v59 = vcombine.low %v4963_v16, %v4964_v37 }
 0x1bc   : > { %v5441_v22 = vmul.f32 %v10638_v61, %v10637_v14  ;;  %v3864_v25 = vadd.f32 %v3672_v41, %v3406_v19  ;;  %v4713_v56 = vrot.slane %v4699_v32, %v7438_v7  ;;  %v6005_v51 = vmul.f32 %v10531_v38, %v10625_v31  ;;  %v10639_v61 = vld [vmem:[#allocation79_spill] sm:$0xff] }
 0x1bd   : > { %v6006_v39 = vmul.f32 %v10532_v58, %v10626_v40  ;;  %v5157_v48 = vcombine.low %v4965_v4, %v4966_v44  ;;  %v5164_v6 = vrot.slane %v5156_v59, %v7438_v7  ;;  %v6007_v34 = vmul.f32 %v10533_v12, %v10627_v49 }
 0x1be   : > { %v5681_v21 = vrot.slane %v5441_v22, %v7438_v7  ;;  %v4448_v16 = vadd.f32 %v4401_v10, %v3864_v25  ;;  %v4714_v37 = vcombine.low %v4706_v5, %v4713_v56  ;;  %v6008_v19 = vmul.f32 %v10534_v23, %v10637_v14 }
 0x1bf   : > { %v6198_v41 = vcombine.low %v6005_v51, %v6006_v39  ;;  %v5171_v32 = vrot.slane %v5157_v48, %v7438_v7  ;;  %v1370_v60 = vmax.f32 %v10639_v61, 0.0  ;;  %v1371_v4 = vmax.f32 %v10640_v42, 0.0  ;;  %v10643_v39 = vld [vmem:[#allocation60_spill] sm:$0xff]  ;;  %v10644_v42 = vld [vmem:[#allocation50_spill] sm:$0xff] }
 0x1c0   : > { %v5900_v46 = vrot.slane %v5681_v21, 1  ;;  %v4906_v44 = vadd.f32 %v4714_v37, %v4448_v16  ;;  %v6199_v59 = vcombine.low %v6007_v34, %v6008_v19  ;;  %v8765_v12 = vcombine.high %v10641_v47, %v10641_v47  ;;  %v10645_v21 = vld [vmem:[#allocation55_spill] sm:$0xff] }
 0x1c1   : > { %v6206_v22 = vrot.slane %v6198_v41, %v7438_v7  ;;  %v5172_v5 = vcombine.low %v5164_v6, %v5171_v32  ;;  %v1393_v25 = vmin.f32 %v1370_v60, 6.0  ;;  %v1394_v56 = vmin.f32 %v1371_v4, 6.0  ;;  %v10647_v60 = vld [vmem:[#allocation54_spill] sm:$0xff] }
 0x1c2   : > { %10642 = vst [vmem:[#allocation78_spill] sm:$0xff] %v8765_v12  ;;  %v5901_v10 = vsel %vm2886_vm10, %v8695_v45, %v5900_v46  ;;  %v6213_v51 = vrot.slane %v6199_v59, %v7438_v7  ;;  %v1959_v61 = vmul.f32 %v10577_v3, %v10643_v39  ;;  %v1960_v48 = vmul.f32 %v10578_v8, %v10644_v42  ;;  %v10663_v8 = vld [vmem:[#allocation14_spill] sm:$0xff] }
 0x1c3   : > { %v1961_v34 = vmul.f32 %v10540_v13, %v10645_v21  ;;  %v5364_v16 = vadd.f32 %v5172_v5, %v4906_v44  ;;  %v1727_v37 = vcombine.high %v1393_v25, %v1393_v25  ;;  %v1734_v6 = vrot.slane %v1393_v25, %v7438_v7  ;;  %v10651_v5 = vld [vmem:[#allocation8_spill] sm:$0xff] }
 0x1c4   : > { %v1744_v19 = vcombine.high %v1394_v56, %v1394_v56  ;;  %v6214_v41 = vcombine.low %v6206_v22, %v6213_v51  ;;  %v8778_v45 = vrot.slane %v1394_v56, %v7438_v7  ;;  %v1962_v32 = vmul.f32 %v10628_v15, %v10647_v60  ;;  %v10653_v56 = vld [vmem:[#allocation20_spill] sm:$0xff] }
 0x1c5   : > { %v2165_v46 = vcombine.low %v1959_v61, %v1960_v48  ;;  %v5948_v4 = vadd.f32 %v5901_v10, %v5364_v16  ;;  %v8783_v59 = vrot.slane %v1727_v37, %v7438_v7  ;;  %v8785_v14 = vcombine.high %v1734_v6, %v1734_v6  ;;  %v10658_v16 = vld [vmem:[#allocation19_spill] sm:$0xff] }
 0x1c6   : > { %10646 = vst [vmem:[#allocation37_spill] sm:$0xff] %v8778_v45  ;;  %v8788_v44 = vmul.f32 %v7768_v17, %v1734_v6  ;;  %v3978_v25 = vmul.f32 %v10651_v5, %v1734_v6  ;;  %v8792_v22 = vmul.f32 %v7801_v36, %v1734_v6  ;;  %v8795_v51 = vmul.f32 %v10653_v56, %v1734_v6 }
 0x1c7   : > { %10648 = vst [vmem:[#allocation43_spill] sm:$0xff] %v8783_v59  ;;  %10649 = vst [vmem:[#allocation46_spill] sm:$0xff] %v8785_v14  ;;  %v8798_v15 = vrot.slane %v1744_v19, %v7438_v7  ;;  %v6406_v10 = vadd.f32 %v6214_v41, %v5948_v4  ;;  %v8802_v61 = vcombine.high %v8783_v59, %v8783_v59  ;;  %v10661_v59 = vld [vmem:[#allocation5_spill] sm:$0xff] }
 0x1c8   : > { %10650 = vst [vmem:[#allocation48_spill] sm:$0xff] %v8788_v44  ;;  %10652 = vst [vmem:[#allocation49_spill] sm:$0xff] %v8792_v22  ;;  %v8806_v48 = vmul.f32 %v7798_v35, %v8785_v14  ;;  %v3979_v37 = vmul.f32 %v10658_v16, %v8785_v14  ;;  %v8812_v22 = vcombine.high %v8778_v45, %v8778_v45  ;;  %v10662_v45 = vld [vmem:[#allocation13_spill] sm:$0xff] }
 0x1c9   : > { %10654 = vst [vmem:[#allocation47_spill] sm:$0xff] %v8795_v51  ;;  %10655 = vst [vmem:[#allocation63_spill] sm:$0xff] %v8798_v15  ;;  %v8816_v6 = vcombine.high %v8798_v15, %v8798_v15  ;;  %v2166_v19 = vcombine.low %v1961_v34, %v1962_v32  ;;  %v2173_v41 = vrot.slane %v2165_v46, %v7438_v7  ;;  %v6422_v4 = vmax.f32 %v6406_v10, 0.0  ;;  %v10664_v34 = vld [vmem:[#allocation15_spill] sm:$0xff] }
 0x1ca   : > { %10656 = vst [vmem:[#allocation66_spill] sm:$0xff] %v8802_v61  ;;  %10657 = vst [vmem:[#allocation65_spill] sm:$0xff] %v8806_v48  ;;  %v4346_v61 = vcombine.low %v3978_v25, %v3979_v37  ;;  %v2441_v13 = vmul.f32 %v10661_v59, %v10643_v39  ;;  %v2443_v15 = vmul.f32 %v10663_v8, %v10645_v21  ;;  %v10666_v25 = vld [vmem:[#allocation17_spill] sm:$0xff] }
 0x1cb   : > { %10659 = vst [vmem:[#allocation69_spill] sm:$0xff] %v8812_v22  ;;  %10660 = vst [vmem:[#allocation53_spill] sm:$0xff] %v8816_v6  ;;  %v2180_v14 = vrot.slane %v2166_v19, %v7438_v7  ;;  %v2442_v22 = vmul.f32 %v10662_v45, %v10644_v42  ;;  %v2444_v32 = vmul.f32 %v10664_v34, %v10647_v60  ;;  %v6438_v46 = vmin.f32 %v6422_v4, 6.0 }
 0x1cc   : > { %v8831_v10 = vrot.slane %v4346_v61, %v7438_v7  ;;  %v2445_v37 = vmul.f32 %v10666_v25, %v8287_v1  ;;  %v2446_v39 = vmul.f32 %v10662_v45, %v10573_v33  ;;  %v2447_v51 = vmul.f32 %v10663_v8, %v10574_v20 }
 0x1cd   : > { %v2181_v19 = vcombine.low %v2173_v41, %v2180_v14  ;;  %v2448_v48 = vmul.f32 %v10664_v34, %v10575_v11  ;;  %v2681_v44 = vcombine.low %v2441_v13, %v2442_v22  ;;  %7037 = vmatmul.mubr.f32.gmra.mrb[4].mxu1 %v6438_v46  ;;  %v2682_v6 = vcombine.low %v2443_v15, %v2444_v32  ;;  %v10667_v32 = vld [vmem:[#allocation52_spill] sm:$0xff] }
 0x1ce   : > { %10665 = vst [vmem:[#allocation41_spill] sm:$0xff] %v8831_v10  ;;  %v2698_v4 = vcombine.low %v2445_v37, %v2446_v39  ;;  %v3009_v61 = vmul.f32 %v7708_v55, %v10644_v42  ;;  %v3010_v10 = vmul.f32 %v10552_v50, %v10645_v21  ;;  %v3011_v25 = vmul.f32 %v10554_v0, %v10647_v60 }
 0x1cf   : > { %v2357_v59 = vadd.f32 %v10631_v27, %v2181_v19  ;;  %v2689_v14 = vrot.slane %v2681_v44, %v7438_v7  ;;  %v2699_v41 = vcombine.low %v2447_v51, %v2448_v48  ;;  %v2696_v34 = vrot.slane %v2682_v6, %v7438_v7 }
 0x1d0   : > { %v2706_v13 = vrot.slane %v2698_v4, %v7438_v7  ;;  %v3012_v15 = vmul.f32 %v10555_v57, %v8287_v1  ;;  %v3215_v22 = vcombine.low %v3009_v61, %v3010_v10  ;;  %v3467_v21 = vmul.f32 %v7768_v17, %v10667_v32 }
 0x1d1   : > { %v2713_v42 = vrot.slane %v2699_v41, %v7438_v7  ;;  %v3468_v44 = vmul.f32 %v7798_v35, %v10618_v2  ;;  %v3469_v51 = vmul.f32 %v7781_v24, %v10591_v62  ;;  %v2697_v60 = vcombine.low %v2689_v14, %v2696_v34  ;;  %v10668_v34 = vld [vmem:[#allocation21_spill] sm:$0xff] }
 0x1d2   : > { %v3216_v48 = vcombine.low %v3011_v25, %v3012_v15  ;;  %v3223_v6 = vrot.slane %v3215_v22, %v7438_v7  ;;  %v3470_v46 = vmul.f32 %v7812_v43, %v8523_v26  ;;  %v3942_v39 = vmul.f32 %v10651_v5, %v10667_v32 }
 0x1d3   : > { %v2714_v37 = vcombine.low %v2706_v13, %v2713_v42  ;;  %v3673_v10 = vcombine.low %v3467_v21, %v3468_v44  ;;  %v3943_v19 = vmul.f32 %v10658_v16, %v10618_v2  ;;  %v2902_v4 = vrot.slane %v2697_v60, 1  ;;  %v10669_v13 = vld [vmem:[#allocation23_spill] sm:$0xff]  ;;  %v10670_v42 = vld [vmem:[#allocation29_spill] sm:$0xff] }
 0x1d4   : > { %v3230_v61 = vrot.slane %v3216_v48, %v7438_v7  ;;  %v3674_v41 = vcombine.low %v3469_v51, %v3470_v46  ;;  %v3944_v25 = vmul.f32 %v10668_v34, %v10591_v62  ;;  %v3945_v22 = vmul.f32 %v10669_v13, %v8523_v26 }
 0x1d5   : > { %v8870_v14 = vrot.slane %v2714_v37, 1  ;;  %v3681_v15 = vrot.slane %v3673_v10, %v7438_v7  ;;  %v3946_v32 = vmul.f32 %v10670_v42, %v10623_v9  ;;  %v3947_v60 = vmul.f32 %v10658_v16, %v10625_v31 }
 0x1d6   : > { %v3231_v21 = vcombine.low %v3223_v6, %v3230_v61  ;;  %v3688_v44 = vrot.slane %v3674_v41, %v7438_v7  ;;  %v3948_v51 = vmul.f32 %v10668_v34, %v10626_v40  ;;  %v3949_v46 = vmul.f32 %v10669_v13, %v10627_v49 }
 0x1d7   : > { %v2904_v48 = vsel %vm2886_vm10, %v2902_v4, %v8870_v14  ;;  %v4182_v37 = vcombine.low %v3942_v39, %v3943_v19  ;;  %v4183_v10 = vcombine.low %v3944_v25, %v3945_v22  ;;  %v4199_v42 = vcombine.low %v3946_v32, %v3947_v60  ;;  %v10671_v22 = vld [vmem:[#allocation68_spill] sm:$0xff] }
 0x1d8   : > { %v2949_v5 = vadd.f32 %v2904_v48, %v2357_v59  ;;  %v3689_v8 = vcombine.low %v3681_v15, %v3688_v44  ;;  %v4509_v6 = vmul.f32 %v7787_v29, %v10618_v2  ;;  %v4200_v16 = vcombine.low %v3948_v51, %v3949_v46  ;;  %v10672_v46 = vld [vmem:[#allocation70_spill] sm:$0xff] }
 0x1d9   : > { %v4190_v61 = vrot.slane %v4182_v37, %v7438_v7  ;;  %v4197_v41 = vrot.slane %v4183_v10, %v7438_v7  ;;  %v4510_v34 = vmul.f32 %v7825_v52, %v10591_v62  ;;  %v4207_v45 = vrot.slane %v4199_v42, %v7438_v7  ;;  %v10673_v10 = vld [vmem:[#allocation33_spill] sm:$0xff] }
 0x1da   : > { %v3407_v4 = vadd.f32 %v3231_v21, %v2949_v5  ;;  %v4511_v39 = vmul.f32 %v7790_v30, %v8523_v26  ;;  %v4512_v59 = vmul.f32 %v7829_v53, %v10623_v9  ;;  %v4214_v25 = vrot.slane %v4200_v16, %v7438_v7 }
 0x1db   : > { %v4198_v19 = vcombine.low %v4190_v61, %v4197_v41  ;;  %v4715_v15 = vcombine.low %v4509_v6, %v4510_v34  ;;  %v4967_v32 = vmul.f32 %v7801_v36, %v10671_v22  ;;  %v4968_v5 = vmul.f32 %v7836_v63, %v10641_v47 }
 0x1dc   : > { %v3865_v44 = vadd.f32 %v3689_v8, %v3407_v4  ;;  %v4716_v60 = vcombine.low %v4511_v39, %v4512_v59  ;;  %v4969_v42 = vmul.f32 %v10634_v18, %v8765_v12  ;;  %v4215_v21 = vcombine.low %v4207_v45, %v4214_v25  ;;  %v10674_v45 = vld [vmem:[#allocation34_spill] sm:$0xff]  ;;  %v10675_v25 = vld [vmem:[#allocation72_spill] sm:$0xff] }
 0x1dd   : > { %v4402_v51 = vrot.slane %v4198_v19, 1  ;;  %v4723_v48 = vrot.slane %v4715_v15, %v7438_v7  ;;  %v4970_v37 = vmul.f32 %v10636_v28, %v10672_v46  ;;  %v5173_v34 = vcombine.low %v4967_v32, %v4968_v5  ;;  %v10676_v15 = vld [vmem:[#allocation38_spill] sm:$0xff] }
 0x1de   : > { %v4730_v16 = vrot.slane %v4716_v60, %v7438_v7  ;;  %v5442_v8 = vmul.f32 %v10653_v56, %v10671_v22  ;;  %v5443_v6 = vmul.f32 %v10673_v10, %v10641_v47  ;;  %v8912_v61 = vrot.slane %v4215_v21, 1  ;;  %v10677_v60 = vld [vmem:[#allocation71_spill] sm:$0xff]  ;;  %v10679_v22 = vld [vmem:[#allocation74_spill] sm:$0xff] }
 0x1df   : > { %v5174_v41 = vcombine.low %v4969_v42, %v4970_v37  ;;  %v5444_v4 = vmul.f32 %v10674_v45, %v8765_v12  ;;  %v5445_v39 = vmul.f32 %v10571_v54, %v10672_v46  ;;  %v5181_v19 = vrot.slane %v5173_v34, %v7438_v7  ;;  %v10678_v37 = vld [vmem:[#allocation73_spill] sm:$0xff] }
 0x1e0   : > { %v4731_v59 = vcombine.low %v4723_v48, %v4730_v16  ;;  %v5446_v32 = vmul.f32 %v10676_v15, %v10675_v25  ;;  %v5447_v5 = vmul.f32 %v10673_v10, %v10677_v60  ;;  %v4404_v21 = vsel %vm2886_vm10, %v4402_v51, %v8912_v61 }
 0x1e1   : > { %v5188_v42 = vrot.slane %v5174_v41, %v7438_v7  ;;  %v5448_v13 = vmul.f32 %v10674_v45, %v10678_v37  ;;  %v5449_v26 = vmul.f32 %v10571_v54, %v10679_v22  ;;  %v4449_v48 = vadd.f32 %v4404_v21, %v3865_v44 }
 0x1e2   : > { %v5682_v16 = vcombine.low %v5442_v8, %v5443_v6  ;;  %v5683_v34 = vcombine.low %v5444_v4, %v5445_v39  ;;  %v5699_v62 = vcombine.low %v5446_v32, %v5447_v5  ;;  %v6009_v10 = vmul.f32 %v10531_v38, %v10641_v47  ;;  %v10680_v8 = vld [vmem:[#allocation28_spill] sm:$0xff]  ;;  %v10682_v5 = vld [vmem:[#allocation9_spill] sm:$0xff] }
 0x1e3   : > { %v5189_v56 = vcombine.low %v5181_v19, %v5188_v42  ;;  %v5700_v15 = vcombine.low %v5448_v13, %v5449_v26  ;;  %v6010_v51 = vmul.f32 %v10532_v58, %v8765_v12  ;;  %v4907_v2 = vadd.f32 %v4731_v59, %v4449_v48  ;;  %v10683_v48 = vld [vmem:[#allocation7_spill] sm:$0xff] }
 0x1e4   : > { %v5690_v41 = vrot.slane %v5682_v16, %v7438_v7  ;;  %v5697_v45 = vrot.slane %v5683_v34, %v7438_v7  ;;  %v5707_v28 = vrot.slane %v5699_v62, %v7438_v7  ;;  %v6011_v6 = vmul.f32 %v10680_v8, %v10672_v46  ;;  %v10686_v16 = vld [vmem:[#allocation10_spill] sm:$0xff] }
 0x1e5   : > { %v5714_v44 = vrot.slane %v5700_v15, %v7438_v7  ;;  %v6012_v26 = vmul.f32 %v10534_v23, %v10675_v25  ;;  %v6215_v13 = vcombine.low %v6009_v10, %v6010_v51  ;;  %v5365_v4 = vadd.f32 %v5189_v56, %v4907_v2  ;;  %v10684_v2 = vld [vmem:[#allocation12_spill] sm:$0xff] }
 0x1e6   : > { %v5698_v39 = vcombine.low %v5690_v41, %v5697_v45  ;;  %v8944_v59 = vcombine.high %v10679_v22, %v10679_v22  ;;  %v1963_v19 = vmul.f32 %v10577_v3, %v8287_v1  ;;  %v1964_v21 = vmul.f32 %v10682_v5, %v10573_v33  ;;  %v10685_v45 = vld [vmem:[#allocation16_spill] sm:$0xff] }
 0x1e7   : > { %v5715_v32 = vcombine.low %v5707_v28, %v5714_v44  ;;  %v6216_v62 = vcombine.low %v6011_v6, %v6012_v26  ;;  %v6223_v15 = vrot.slane %v6215_v13, %v7438_v7  ;;  %v1965_v10 = vmul.f32 %v10683_v48, %v10574_v20 }
 0x1e8   : > { %10681 = vst [vmem:[#allocation42_spill] sm:$0xff] %v8944_v59  ;;  %v5902_v42 = vrot.slane %v5698_v39, 1  ;;  %v1966_v56 = vmul.f32 %v10684_v2, %v10575_v11  ;;  %v2449_v34 = vmul.f32 %v10686_v16, %v10685_v45  ;;  %v2182_v28 = vcombine.low %v1963_v19, %v1964_v21 }
 0x1e9   : > { %v8957_v51 = vrot.slane %v5715_v32, 1  ;;  %v6230_v1 = vrot.slane %v6216_v62, %v7438_v7  ;;  %v3013_v41 = vmul.f32 %v7708_v55, %v10573_v33  ;;  %v3014_v26 = vmul.f32 %v10552_v50, %v10574_v20 }
 0x1ea   : > { %v2183_v44 = vcombine.low %v1965_v10, %v1966_v56  ;;  %v2721_v6 = vrot.slane %v2449_v34, %v7438_v7  ;;  %v3015_v13 = vmul.f32 %v10554_v0, %v10575_v11  ;;  %v2190_v16 = vrot.slane %v2182_v28, %v7438_v7 }
 0x1eb   : > { %v5904_v39 = vsel %vm2886_vm10, %v5902_v42, %v8957_v51  ;;  %v6231_v32 = vcombine.low %v6223_v15, %v6230_v1  ;;  %v3016_v19 = vmul.f32 %v10555_v57, %v10685_v45  ;;  %v3232_v10 = vcombine.low %v3013_v41, %v3014_v26 }
 0x1ec   : > { %v5949_v62 = vadd.f32 %v5904_v39, %v5365_v4  ;;  %v2197_v33 = vrot.slane %v2183_v44, %v7438_v7  ;;  %v2905_v21 = vrot.slane %v2721_v6, 1  ;;  %v3471_v20 = vmul.f32 %v7768_v17, %v10623_v9  ;;  %v10687_v44 = vld [vmem:[#allocation64_spill] sm:$0xff]  ;;  %v10688_v6 = vld [vmem:[#allocation22_spill] sm:$0xff] }
 0x1ed   : > { %v3233_v56 = vcombine.low %v3015_v13, %v3016_v19  ;;  %v3472_v11 = vmul.f32 %v7798_v35, %v10625_v31  ;;  %v3473_v15 = vmul.f32 %v7781_v24, %v10626_v40  ;;  %v3240_v4 = vrot.slane %v3232_v10, %v7438_v7 }
 0x1ee   : > { %v6407_v42 = vadd.f32 %v6231_v32, %v5949_v62  ;;  %v2198_v34 = vcombine.low %v2190_v16, %v2197_v33  ;;  %v2906_v45 = vsel %vm2886_vm10, %v8870_v14, %v2905_v21  ;;  %v3474_v28 = vmul.f32 %v7812_v43, %v10627_v49 }
 0x1ef   : > { %v3247_v1 = vrot.slane %v3233_v56, %v7438_v7  ;;  %v3690_v41 = vcombine.low %v3471_v20, %v3472_v11  ;;  %v3950_v26 = vmul.f32 %v10688_v6, %v10687_v44  ;;  %v4513_v16 = vmul.f32 %v7787_v29, %v10625_v31 }
 0x1f0   : > { %v6423_v13 = vmax.f32 %v6407_v42, 0.0  ;;  %v2358_v39 = vadd.f32 %v10631_v27, %v2198_v34  ;;  %v4514_v14 = vmul.f32 %v7825_v52, %v10626_v40  ;;  %v3691_v19 = vcombine.low %v3473_v15, %v3474_v28 }
 0x1f1   : > { %v3248_v32 = vcombine.low %v3240_v4, %v3247_v1  ;;  %v3698_v62 = vrot.slane %v3690_v41, %v7438_v7  ;;  %v4222_v33 = vrot.slane %v3950_v26, %v7438_v7  ;;  %v4515_v56 = vmul.f32 %v7790_v30, %v10627_v49 }
 0x1f2   : > { %v6439_v21 = vmin.f32 %v6423_v13, 6.0  ;;  %v2950_v10 = vadd.f32 %v2906_v45, %v2358_v39  ;;  %v4516_v20 = vmul.f32 %v7829_v53, %v10687_v44  ;;  %v3705_v11 = vrot.slane %v3691_v19, %v7438_v7  ;;  %v10689_v39 = vld [vmem:[#allocation32_spill] sm:$0xff]  ;;  %v10692_v44 = vld [vmem:[#allocation11_spill] sm:$0xff] }
 0x1f3   : > { %v4405_v42 = vrot.slane %v4222_v33, 1  ;;  %v4732_v34 = vcombine.low %v4513_v16, %v4514_v14  ;;  %v4971_v4 = vmul.f32 %v7801_v36, %v10675_v25  ;;  %v4972_v28 = vmul.f32 %v7836_v63, %v10677_v60 }
 0x1f4   : > { %7039 = vmatprep.mubr.f32.mxu1 %v6439_v21  ;;  %v3408_v15 = vadd.f32 %v3248_v32, %v2950_v10  ;;  %v4733_v1 = vcombine.low %v4515_v56, %v4516_v20  ;;  %v4973_v45 = vmul.f32 %v10634_v18, %v10678_v37  ;;  %v3706_v41 = vcombine.low %v3698_v62, %v3705_v11  ;;  %v10690_v32 = vld [vmem:[#allocation30_spill] sm:$0xff] }
 0x1f5   : > { %v4406_v26 = vsel %vm2886_vm10, %v8912_v61, %v4405_v42  ;;  %v4740_v13 = vrot.slane %v4732_v34, %v7438_v7  ;;  %v4974_v16 = vmul.f32 %v10689_v39, %v10679_v22  ;;  %v5190_v19 = vcombine.low %v4971_v4, %v4972_v28 }
 0x1f6   : > { %v4747_v14 = vrot.slane %v4733_v1, %v7438_v7  ;;  %v5450_v33 = vmul.f32 %v10690_v32, %v8944_v59  ;;  %v6013_v21 = vmul.f32 %v10531_v38, %v10677_v60  ;;  %v3866_v10 = vadd.f32 %v3706_v41, %v3408_v15  ;;  %v10691_v15 = vld [vmem:[#allocation40_spill] sm:$0xff] }
 0x1f7   : > { %v5191_v56 = vcombine.low %v4973_v45, %v4974_v16  ;;  %v6014_v62 = vmul.f32 %v10532_v58, %v10678_v37  ;;  %v6015_v61 = vmul.f32 %v10680_v8, %v10679_v22  ;;  %v5198_v11 = vrot.slane %v5190_v19, %v7438_v7  ;;  %v10693_v58 = vld [vmem:[#allocation39_spill] sm:$0xff] }
 0x1f8   : > { %v4748_v20 = vcombine.low %v4740_v13, %v4747_v14  ;;  %v5722_v42 = vrot.slane %v5450_v33, %v7438_v7  ;;  %v6016_v34 = vmul.f32 %v10534_v23, %v8944_v59  ;;  %v4450_v4 = vadd.f32 %v4406_v26, %v3866_v10 }
 0x1f9   : > { %v5205_v1 = vrot.slane %v5191_v56, %v7438_v7  ;;  %v6232_v28 = vcombine.low %v6013_v21, %v6014_v62  ;;  %v1372_v45 = vmax.f32 %v10691_v15, 0.0  ;;  %v1373_v3 = vmax.f32 %v10692_v44, 0.0  ;;  %v10695_v44 = vld [vmem:[#allocation59_spill] sm:$0xff] }
 0x1fa   : > { %v5905_v41 = vrot.slane %v5722_v42, 1  ;;  %v6233_v16 = vcombine.low %v6015_v61, %v6016_v34  ;;  %v1374_v38 = vmax.f32 %v10693_v58, 0.0  ;;  %v4908_v13 = vadd.f32 %v4748_v20, %v4450_v4 }
 0x1fb   : > { %v5206_v14 = vcombine.low %v5198_v11, %v5205_v1  ;;  %v6240_v19 = vrot.slane %v6232_v28, %v7438_v7  ;;  %v1395_v33 = vmin.f32 %v1372_v45, 6.0  ;;  %v1396_v10 = vmin.f32 %v1373_v3, 6.0 }
 0x1fc   : > { %v5906_v59 = vsel %vm2886_vm10, %v8957_v51, %v5905_v41  ;;  %v6247_v26 = vrot.slane %v6233_v16, %v7438_v7  ;;  %v1397_v21 = vmin.f32 %v1374_v38, 6.0  ;;  %v1968_v58 = vmul.f32 %v10682_v5, %v10695_v44 }
 0x1fd   : > { %v5366_v56 = vadd.f32 %v5206_v14, %v4908_v13  ;;  %v1761_v62 = vcombine.high %v1395_v33, %v1395_v33  ;;  %v9032_v61 = vrot.slane %v1395_v33, %v7438_v7  ;;  %v1778_v11 = vcombine.high %v1396_v10, %v1396_v10  ;;  %v10704_v14 = vld [vmem:[#allocation20_spill] sm:$0xff]  ;;  %v10706_v33 = vld [vmem:[#allocation33_spill] sm:$0xff] }
 0x1fe   : > { %v6248_v20 = vcombine.low %v6240_v19, %v6247_v26  ;;  %v1785_v42 = vrot.slane %v1396_v10, %v7438_v7  ;;  %v1801_v34 = vrot.slane %v1397_v21, %v7438_v7 }
 0x1ff   : > { %10694 = vst [vmem:[#allocation79_spill] sm:$0xff] %v9032_v61  ;;  %v5950_v4 = vadd.f32 %v5906_v59, %v5366_v56  ;;  %v9039_v51 = vrot.slane %v1761_v62, %v7438_v7  ;;  %v9043_v38 = vcombine.high %v9032_v61, %v9032_v61  ;;  %v3986_v3 = vmul.f32 %v10688_v6, %v9032_v61 }
 0x200   : > { %v9049_v1 = vmul.f32 %v7829_v53, %v9032_v61  ;;  %v9052_v28 = vrot.slane %v1778_v11, %v7438_v7  ;;  %v9054_v15 = vcombine.high %v1785_v42, %v1785_v42  ;;  %v9057_v59 = vmul.f32 %v10689_v39, %v1785_v42 }
 0x201   : > { %10696 = vst [vmem:[#allocation80_spill] sm:$0xff] %v9039_v51  ;;  %10697 = vst [vmem:[#allocation60_spill] sm:$0xff] %v9043_v38  ;;  %v6408_v45 = vadd.f32 %v6248_v20, %v5950_v4  ;;  %v9061_v41 = vcombine.high %v9039_v51, %v9039_v51  ;;  %v4386_v16 = vrot.slane %v3986_v3, %v7438_v7  ;;  %v10713_v3 = vld [vmem:[#allocation34_spill] sm:$0xff] }
 0x202   : > { %10698 = vst [vmem:[#allocation50_spill] sm:$0xff] %v9049_v1  ;;  %10699 = vst [vmem:[#allocation55_spill] sm:$0xff] %v9052_v28  ;;  %v9066_v13 = vmul.f32 %v7836_v63, %v9039_v51  ;;  %v9070_v19 = vmul.f32 %v10704_v14, %v9043_v38  ;;  %v9074_v26 = vmul.f32 %v10706_v33, %v9039_v51 }
 0x203   : > { %10700 = vst [vmem:[#allocation54_spill] sm:$0xff] %v9054_v15  ;;  %10701 = vst [vmem:[#allocation52_spill] sm:$0xff] %v9057_v59  ;;  %v9078_v10 = vcombine.high %v9052_v28, %v9052_v28  ;;  %v9082_v21 = vmul.f32 %v7801_v36, %v9054_v15  ;;  %v6424_v56 = vmax.f32 %v6408_v45, 0.0  ;;  %v9084_v62 = vrot.slane %v4386_v16, 1  ;;  %v10716_v45 = vld [vmem:[#allocation38_spill] sm:$0xff] }
 0x204   : > { %10702 = vst [vmem:[#allocation72_spill] sm:$0xff] %v9061_v41  ;;  %10703 = vst [vmem:[#allocation71_spill] sm:$0xff] %v9066_v13  ;;  %v9088_v20 = vmul.f32 %v10634_v18, %v9061_v41  ;;  %v9092_v11 = vmul.f32 %v7836_v63, %v9052_v28  ;;  %v9098_v1 = vmul.f32 %v10713_v3, %v9061_v41 }
 0x205   : > { %10705 = vst [vmem:[#allocation73_spill] sm:$0xff] %v9070_v19  ;;  %10707 = vst [vmem:[#allocation74_spill] sm:$0xff] %v9074_v26  ;;  %v9105_v16 = vmul.f32 %v10716_v45, %v9054_v15  ;;  %v9114_v4 = vmul.f32 %v10680_v8, %v1785_v42  ;;  %v9118_v13 = vcombine.high %v1801_v34, %v1801_v34  ;;  %v10733_v19 = vld [vmem:[#allocation17_spill] sm:$0xff] }
 0x206   : > { %10708 = vst [vmem:[#allocation28_spill] sm:$0xff] %v9078_v10  ;;  %10709 = vst [vmem:[#allocation16_spill] sm:$0xff] %v9082_v21  ;;  %v9101_v21 = vmul.f32 %v10571_v54, %v1785_v42  ;;  %v9122_v15 = vmul.f32 %v10634_v18, %v9078_v10  ;;  %v9131_v42 = vmul.f32 %v10713_v3, %v9078_v10 }
 0x207   : > { %10710 = vst [vmem:[#allocation40_spill] sm:$0xff] %v9084_v62  ;;  %10711 = vst [vmem:[#allocation11_spill] sm:$0xff] %v9088_v20  ;;  %v6440_v62 = vmin.f32 %v6424_v56, 6.0  ;;  %v9125_v56 = vmul.f32 %v10689_v39, %v1801_v34  ;;  %v9137_v41 = vmul.f32 %v10680_v8, %v1801_v34  ;;  %v2454_v59 = vmul.f32 %v10733_v19, %v10623_v9 }
 0x208   : > { %10712 = vst [vmem:[#allocation39_spill] sm:$0xff] %v9092_v11  ;;  %10714 = vst [vmem:[#allocation59_spill] sm:$0xff] %v9098_v1  ;;  %v9111_v11 = vmul.f32 %v10706_v33, %v9052_v28  ;;  %v9134_v28 = vmul.f32 %v10571_v54, %v1801_v34  ;;  %v10729_v1 = vld [vmem:[#allocation61_spill] sm:$0xff]  ;;  %v3017_v61 = vmul.f32 %v7708_v55, %v10695_v44 }
 0x209   : > { %10715 = vst [vmem:[#allocation89_spill] sm:$0xff] %v9101_v21  ;;  %10717 = vst [vmem:[#allocation90_spill] sm:$0xff] %v9105_v16  ;;  %7040 = vmatmul.mubr.f32.gmra.mrb[6].mxu1 %v6440_v62  ;;  %v9143_v21 = vmul.f32 %v10690_v32, %v9118_v13  ;;  %v10727_v62 = vld [vmem:[#allocation58_spill] sm:$0xff]  ;;  %v2199_v26 = vcombine.low %v10729_v1, %v1968_v58  ;;  %v10730_v34 = vld [vmem:[#allocation13_spill] sm:$0xff] }
 0x20a   : > { %10718 = vst [vmem:[#allocation91_spill] sm:$0xff] %v9111_v11  ;;  %10719 = vst [vmem:[#allocation92_spill] sm:$0xff] %v9114_v4  ;;  %v1969_v51 = vmul.f32 %v10683_v48, %v10727_v62  ;;  %v10728_v11 = vld [vmem:[#allocation18_spill] sm:$0xff]  ;;  %v2455_v20 = vmul.f32 %v10730_v34, %v10625_v31 }
 0x20b   : > { %10720 = vst [vmem:[#allocation93_spill] sm:$0xff] %v9118_v13  ;;  %10721 = vst [vmem:[#allocation94_spill] sm:$0xff] %v9122_v15  ;;  %v1970_v10 = vmul.f32 %v10684_v2, %v10728_v11  ;;  %v10731_v4 = vld [vmem:[#allocation14_spill] sm:$0xff]  ;;  %v10732_v13 = vld [vmem:[#allocation15_spill] sm:$0xff]  ;;  %v2207_v16 = vrot.slane %v2199_v26, %v7438_v7  ;;  %v3018_v26 = vmul.f32 %v10552_v50, %v10727_v62 }
 0x20c   : > { %10722 = vst [vmem:[#allocation95_spill] sm:$0xff] %v9125_v56  ;;  %10723 = vst [vmem:[#allocation96_spill] sm:$0xff] %v9131_v42  ;;  %v2452_v56 = vmul.f32 %v10731_v4, %v10727_v62  ;;  %v2456_v58 = vmul.f32 %v10731_v4, %v10626_v40  ;;  %v2457_v1 = vmul.f32 %v10732_v13, %v10627_v49 }
 0x20d   : > { %10724 = vst [vmem:[#allocation97_spill] sm:$0xff] %v9134_v28  ;;  %10725 = vst [vmem:[#allocation98_spill] sm:$0xff] %v9137_v41  ;;  %v2451_v41 = vmul.f32 %v10730_v34, %v10695_v44  ;;  %v2200_v15 = vcombine.low %v1969_v51, %v1970_v10  ;;  %v10734_v28 = vld [vmem:[#allocation62_spill] sm:$0xff]  ;;  %v2739_v38 = vcombine.low %v2454_v59, %v2455_v20 }
 0x20e   : > { %10726 = vst [vmem:[#allocation99_spill] sm:$0xff] %v9143_v21  ;;  %v2453_v21 = vmul.f32 %v10732_v13, %v10728_v11  ;;  %v2740_v34 = vcombine.low %v2456_v58, %v2457_v1  ;;  %v3019_v4 = vmul.f32 %v10554_v0, %v10728_v11  ;;  %v3249_v44 = vcombine.low %v3017_v61, %v3018_v26  ;;  %v10738_v26 = vld [vmem:[#allocation21_spill] sm:$0xff] }
 0x20f   : > { %v2722_v42 = vcombine.low %v10734_v28, %v2451_v41  ;;  %v2214_v51 = vrot.slane %v2200_v15, %v7438_v7  ;;  %v2747_v28 = vrot.slane %v2739_v38, %v7438_v7  ;;  %v3020_v15 = vmul.f32 %v10555_v57, %v10623_v9  ;;  %v10735_v41 = vld [vmem:[#allocation68_spill] sm:$0xff] }
 0x210   : > { %v2723_v10 = vcombine.low %v2452_v56, %v2453_v21  ;;  %v2754_v59 = vrot.slane %v2740_v34, %v7438_v7  ;;  %v3475_v21 = vmul.f32 %v7768_v17, %v10735_v41  ;;  %v3476_v20 = vmul.f32 %v7798_v35, %v10641_v47 }
 0x211   : > { %v2730_v19 = vrot.slane %v2722_v42, %v7438_v7  ;;  %v2215_v32 = vcombine.low %v2207_v16, %v2214_v51  ;;  %v3250_v16 = vcombine.low %v3019_v4, %v3020_v15  ;;  %v3477_v42 = vmul.f32 %v7781_v24, %v8765_v12  ;;  %v10736_v51 = vld [vmem:[#allocation8_spill] sm:$0xff] }
 0x212   : > { %v2737_v13 = vrot.slane %v2723_v10, %v7438_v7  ;;  %v2755_v38 = vcombine.low %v2747_v28, %v2754_v59  ;;  %v3257_v62 = vrot.slane %v3249_v44, %v7438_v7  ;;  %v3478_v34 = vmul.f32 %v7812_v43, %v10672_v46  ;;  %v10739_v59 = vld [vmem:[#allocation23_spill] sm:$0xff] }
 0x213   : > { %v2359_v56 = vadd.f32 %v10631_v27, %v2215_v32  ;;  %v3707_v61 = vcombine.low %v3475_v21, %v3476_v20  ;;  %v3264_v1 = vrot.slane %v3250_v16, %v7438_v7  ;;  %v3951_v10 = vmul.f32 %v10736_v51, %v10735_v41  ;;  %v10737_v27 = vld [vmem:[#allocation19_spill] sm:$0xff]  ;;  %v10740_v21 = vld [vmem:[#allocation29_spill] sm:$0xff] }
 0x214   : > { %v2738_v11 = vcombine.low %v2730_v19, %v2737_v13  ;;  %v3952_v32 = vmul.f32 %v10737_v27, %v10641_v47  ;;  %v9196_v13 = vrot.slane %v2755_v38, 1  ;;  %v3708_v19 = vcombine.low %v3477_v42, %v3478_v34 }
 0x215   : > { %v3715_v4 = vrot.slane %v3707_v61, %v7438_v7  ;;  %v3953_v28 = vmul.f32 %v10738_v26, %v8765_v12  ;;  %v3265_v15 = vcombine.low %v3257_v62, %v3264_v1  ;;  %v3954_v44 = vmul.f32 %v10739_v59, %v10672_v46 }
 0x216   : > { %v2907_v58 = vrot.slane %v2738_v11, 1  ;;  %v3955_v20 = vmul.f32 %v10740_v21, %v10675_v25  ;;  %v3956_v11 = vmul.f32 %v10737_v27, %v10677_v60  ;;  %v3722_v42 = vrot.slane %v3708_v19, %v7438_v7 }
 0x217   : > { %v3957_v38 = vmul.f32 %v10738_v26, %v10678_v37  ;;  %v3958_v62 = vmul.f32 %v10739_v59, %v10679_v22  ;;  %v4223_v61 = vcombine.low %v3951_v10, %v3952_v32  ;;  %v4224_v1 = vcombine.low %v3953_v28, %v3954_v44 }
 0x218   : > { %v2909_v16 = vsel %vm2886_vm10, %v2907_v58, %v9196_v13  ;;  %v4240_v51 = vcombine.low %v3955_v20, %v3956_v11  ;;  %v3723_v41 = vcombine.low %v3715_v4, %v3722_v42  ;;  %v4517_v27 = vmul.f32 %v7787_v29, %v10641_v47  ;;  %v10741_v20 = vld [vmem:[#allocation75_spill] sm:$0xff]  ;;  %v10742_v11 = vld [vmem:[#allocation76_spill] sm:$0xff] }
 0x219   : > { %v2951_v34 = vadd.f32 %v2909_v16, %v2359_v56  ;;  %v4241_v21 = vcombine.low %v3957_v38, %v3958_v62  ;;  %v4518_v58 = vmul.f32 %v7825_v52, %v8765_v12  ;;  %v4231_v19 = vrot.slane %v4223_v61, %v7438_v7  ;;  %v10744_v61 = vld [vmem:[#allocation84_spill] sm:$0xff] }
 0x21a   : > { %v4238_v26 = vrot.slane %v4224_v1, %v7438_v7  ;;  %v4248_v43 = vrot.slane %v4240_v51, %v7438_v7  ;;  %v4519_v10 = vmul.f32 %v7790_v30, %v10672_v46  ;;  %v4520_v32 = vmul.f32 %v7829_v53, %v10675_v25 }
 0x21b   : > { %v3409_v6 = vadd.f32 %v3265_v15, %v2951_v34  ;;  %v4255_v56 = vrot.slane %v4241_v21, %v7438_v7  ;;  %v4749_v4 = vcombine.low %v4517_v27, %v4518_v58  ;;  %v4975_v15 = vmul.f32 %v7801_v36, %v10741_v20  ;;  %v10743_v21 = vld [vmem:[#allocation81_spill] sm:$0xff] }
 0x21c   : > { %v4239_v44 = vcombine.low %v4231_v19, %v4238_v26  ;;  %v4976_v16 = vmul.f32 %v7836_v63, %v10742_v11  ;;  %v4750_v38 = vcombine.low %v4519_v10, %v4520_v32  ;;  %v4977_v62 = vmul.f32 %v10634_v18, %v10743_v21  ;;  %v10746_v32 = vld [vmem:[#allocation83_spill] sm:$0xff] }
 0x21d   : > { %v3867_v28 = vadd.f32 %v3723_v41, %v3409_v6  ;;  %v4256_v42 = vcombine.low %v4248_v43, %v4255_v56  ;;  %v4757_v51 = vrot.slane %v4749_v4, %v7438_v7  ;;  %v4978_v1 = vmul.f32 %v10689_v39, %v10744_v61 }
 0x21e   : > { %v4407_v34 = vrot.slane %v4239_v44, 1  ;;  %v5207_v27 = vcombine.low %v4975_v15, %v4976_v16  ;;  %v5451_v6 = vmul.f32 %v10704_v14, %v10741_v20  ;;  %v4764_v26 = vrot.slane %v4750_v38, %v7438_v7  ;;  %v10747_v16 = vld [vmem:[#allocation87_spill] sm:$0xff]  ;;  %v10748_v38 = vld [vmem:[#allocation82_spill] sm:$0xff] }
 0x21f   : > { %v9237_v41 = vrot.slane %v4256_v42, 1  ;;  %v5452_v43 = vmul.f32 %v10706_v33, %v10742_v11  ;;  %v5453_v58 = vmul.f32 %v10713_v3, %v10743_v21  ;;  %v5208_v19 = vcombine.low %v4977_v62, %v4978_v1  ;;  %v10749_v1 = vld [vmem:[#allocation86_spill] sm:$0xff] }
 0x220   : > { %v5215_v56 = vrot.slane %v5207_v27, %v7438_v7  ;;  %v5454_v10 = vmul.f32 %v10571_v54, %v10744_v61  ;;  %v5455_v4 = vmul.f32 %v10716_v45, %v10746_v32  ;;  %v4765_v15 = vcombine.low %v4757_v51, %v4764_v26  ;;  %v10750_v45 = vld [vmem:[#allocation26_spill] sm:$0xff]  ;;  %v10751_v51 = vld [vmem:[#allocation35_spill] sm:$0xff] }
 0x221   : > { %10745 = vst [vmem:[#allocation58_spill] sm:$0xff] %v9237_v41  ;;  %v4409_v44 = vsel %vm2886_vm10, %v4407_v34, %v9237_v41  ;;  %v5456_v42 = vmul.f32 %v10706_v33, %v10747_v16  ;;  %v5457_v14 = vmul.f32 %v10713_v3, %v10748_v38  ;;  %v5222_v62 = vrot.slane %v5208_v19, %v7438_v7 }
 0x222   : > { %v4451_v59 = vadd.f32 %v4409_v44, %v3867_v28  ;;  %v5458_v27 = vmul.f32 %v10571_v54, %v10749_v1  ;;  %v5723_v20 = vcombine.low %v5451_v6, %v5452_v43  ;;  %v5724_v46 = vcombine.low %v5453_v58, %v5454_v10 }
 0x223   : > { %v5740_v12 = vcombine.low %v5455_v4, %v5456_v42  ;;  %v6017_v47 = vmul.f32 %v10750_v45, %v10742_v11  ;;  %v6018_v34 = vmul.f32 %v10751_v51, %v10743_v21  ;;  %v5223_v33 = vcombine.low %v5215_v56, %v5222_v62  ;;  %v10753_v42 = vld [vmem:[#allocation64_spill] sm:$0xff] }
 0x224   : > { %v4909_v26 = vadd.f32 %v4765_v15, %v4451_v59  ;;  %v5731_v41 = vrot.slane %v5723_v20, %v7438_v7  ;;  %v5741_v3 = vcombine.low %v5457_v14, %v5458_v27  ;;  %v5738_v28 = vrot.slane %v5724_v46, %v7438_v7  ;;  %v10752_v59 = vld [vmem:[#allocation6_spill] sm:$0xff] }
 0x225   : > { %v5748_v19 = vrot.slane %v5740_v12, %v7438_v7  ;;  %v6019_v6 = vmul.f32 %v10680_v8, %v10744_v61  ;;  %v6020_v43 = vmul.f32 %v10534_v23, %v10746_v32  ;;  %v6249_v4 = vcombine.low %v6017_v47, %v6018_v34 }
 0x226   : > { %v5367_v58 = vadd.f32 %v5223_v33, %v4909_v26  ;;  %v5755_v10 = vrot.slane %v5741_v3, %v7438_v7  ;;  %v1971_v56 = vmul.f32 %v10752_v59, %v10623_v9  ;;  %v5739_v44 = vcombine.low %v5731_v41, %v5738_v28  ;;  %v10754_v3 = vld [vmem:[#allocation10_spill] sm:$0xff] }
 0x227   : > { %v6250_v20 = vcombine.low %v6019_v6, %v6020_v43  ;;  %v1972_v46 = vmul.f32 %v10682_v5, %v10625_v31  ;;  %v1973_v12 = vmul.f32 %v10683_v48, %v10626_v40  ;;  %v6257_v15 = vrot.slane %v6249_v4, %v7438_v7 }
 0x228   : > { %v5756_v14 = vcombine.low %v5748_v19, %v5755_v10  ;;  %v1974_v33 = vmul.f32 %v10684_v2, %v10627_v49  ;;  %v2458_v47 = vmul.f32 %v10754_v3, %v10753_v42  ;;  %v5907_v62 = vrot.slane %v5739_v44, 1 }
 0x229   : > { %v6264_v9 = vrot.slane %v6250_v20, %v7438_v7  ;;  %v2216_v41 = vcombine.low %v1971_v56, %v1972_v46  ;;  %v3021_v27 = vmul.f32 %v7708_v55, %v10625_v31  ;;  %v3022_v19 = vmul.f32 %v10552_v50, %v10626_v40 }
 0x22a   : > { %v9284_v34 = vrot.slane %v5756_v14, 1  ;;  %v2217_v26 = vcombine.low %v1973_v12, %v1974_v33  ;;  %v2762_v28 = vrot.slane %v2458_v47, %v7438_v7  ;;  %v3023_v10 = vmul.f32 %v10554_v0, %v10627_v49 }
 0x22b   : > { %v6265_v6 = vcombine.low %v6257_v15, %v6264_v9  ;;  %v2224_v43 = vrot.slane %v2216_v41, %v7438_v7  ;;  %v3024_v4 = vmul.f32 %v10555_v57, %v10753_v42  ;;  %v3266_v20 = vcombine.low %v3021_v27, %v3022_v19  ;;  %v9312_v27 = vld [vmem:[%s10166_s3] ss:$0 sm:$0xff] }
 0x22c   : > { %v5909_v31 = vsel %vm2886_vm10, %v5907_v62, %v9284_v34  ;;  %v2231_v56 = vrot.slane %v2217_v26, %v7438_v7  ;;  %v2910_v44 = vrot.slane %v2762_v28, 1  ;;  %v3479_v40 = vmul.f32 %v7768_v17, %v10675_v25  ;;  %v10757_v28 = vld [vmem:[#allocation22_spill] sm:$0xff] }
 0x22d   : > { %v5951_v46 = vadd.f32 %v5909_v31, %v5367_v58  ;;  %v3267_v12 = vcombine.low %v3023_v10, %v3024_v4  ;;  %v3480_v14 = vmul.f32 %v7798_v35, %v10677_v60  ;;  %v3274_v33 = vrot.slane %v3266_v20, %v7438_v7  ;;  %v10755_v58 = vld [vmem:[#allocation27_spill] sm:$0xff] }
 0x22e   : > { %v2232_v15 = vcombine.low %v2224_v43, %v2231_v56  ;;  %v2911_v49 = vsel %vm2886_vm10, %v9196_v13, %v2910_v44  ;;  %v3481_v42 = vmul.f32 %v7781_v24, %v10678_v37  ;;  %v3482_v9 = vmul.f32 %v10755_v58, %v10679_v22  ;;  %v10756_v13 = vld [vmem:[#allocation42_spill] sm:$0xff] }
 0x22f   : > { %v6409_v47 = vadd.f32 %v6265_v6, %v5951_v46  ;;  %v3281_v62 = vrot.slane %v3267_v12, %v7438_v7  ;;  %v3724_v41 = vcombine.low %v3479_v40, %v3480_v14  ;;  %v3959_v19 = vmul.f32 %v10757_v28, %v10756_v13 }
 0x230   : > { %v2360_v26 = vadd.f32 %v9312_v27, %v2232_v15  ;;  %v4521_v43 = vmul.f32 %v7787_v29, %v10677_v60  ;;  %v4522_v6 = vmul.f32 %v7825_v52, %v10678_v37  ;;  %v3725_v31 = vcombine.low %v3481_v42, %v3482_v9 }
 0x231   : > { %v6425_v10 = vmax.f32 %v6409_v47, 0.0  ;;  %v3282_v4 = vcombine.low %v3274_v33, %v3281_v62  ;;  %v3732_v56 = vrot.slane %v3724_v41, %v7438_v7  ;;  %v4263_v20 = vrot.slane %v3959_v19, %v7438_v7 }
 0x232   : > { %v2952_v44 = vadd.f32 %v2911_v49, %v2360_v26  ;;  %v4523_v46 = vmul.f32 %v7790_v30, %v10679_v22  ;;  %v4524_v12 = vmul.f32 %v7829_v53, %v10756_v13  ;;  %v3739_v14 = vrot.slane %v3725_v31, %v7438_v7  ;;  %v10759_v31 = vld [vmem:[#allocation85_spill] sm:$0xff] }
 0x233   : > { %v6441_v40 = vmin.f32 %v6425_v10, 6.0  ;;  %v4766_v15 = vcombine.low %v4521_v43, %v4522_v6  ;;  %v4979_v47 = vmul.f32 %v7801_v36, %v10746_v32  ;;  %v4410_v42 = vrot.slane %v4263_v20, 1  ;;  %v10758_v43 = vld [vmem:[#allocation58_spill] sm:$0xff] }
 0x234   : > { %v3410_v33 = vadd.f32 %v3282_v4, %v2952_v44  ;;  %v4767_v62 = vcombine.low %v4523_v46, %v4524_v12  ;;  %v4980_v49 = vmul.f32 %v7836_v63, %v10747_v16  ;;  %v3740_v9 = vcombine.low %v3732_v56, %v3739_v14  ;;  %v10760_v44 = vld [vmem:[#allocation30_spill] sm:$0xff] }
 0x235   : > { %7042 = vmatprep.mubr.f32.mxu1 %v6441_v40  ;;  %v4774_v41 = vrot.slane %v4766_v15, %v7438_v7  ;;  %v4981_v26 = vmul.f32 %v10634_v18, %v10748_v38  ;;  %v4982_v19 = vmul.f32 %v10689_v39, %v10749_v1  ;;  %v4411_v6 = vsel %vm2886_vm10, %v10758_v43, %v4410_v42 }
 0x236   : > { %v4781_v10 = vrot.slane %v4767_v62, %v7438_v7  ;;  %v5224_v4 = vcombine.low %v4979_v47, %v4980_v49  ;;  %v5459_v20 = vmul.f32 %v10760_v44, %v10759_v31  ;;  %v3868_v46 = vadd.f32 %v3740_v9, %v3410_v33 }
 0x237   : > { %v5225_v12 = vcombine.low %v4981_v26, %v4982_v19  ;;  %v6021_v56 = vmul.f32 %v10750_v45, %v10747_v16  ;;  %v6022_v40 = vmul.f32 %v10751_v51, %v10748_v38  ;;  %v6023_v42 = vmul.f32 %v10680_v8, %v10749_v1  ;;  %v10761_v26 = vld [vmem:[#allocation51_spill] sm:$0xff] }
 0x238   : > { %v4782_v14 = vcombine.low %v4774_v41, %v4781_v10  ;;  %v5232_v15 = vrot.slane %v5224_v4, %v7438_v7  ;;  %v5763_v28 = vrot.slane %v5459_v20, %v7438_v7  ;;  %v4452_v47 = vadd.f32 %v4411_v6, %v3868_v46  ;;  %v10762_v41 = vld [vmem:[#allocation68_spill] sm:$0xff]  ;;  %v10763_v10 = vld [vmem:[#allocation67_spill] sm:$0xff] }
 0x239   : > { %v5239_v62 = vrot.slane %v5225_v12, %v7438_v7  ;;  %v6024_v33 = vmul.f32 %v10534_v23, %v10759_v31  ;;  %v6266_v49 = vcombine.low %v6021_v56, %v6022_v40  ;;  %v9355_v19 = vcombine.high %v10761_v26, %v10761_v26  ;;  %v10764_v56 = vld [vmem:[#allocation78_spill] sm:$0xff] }
 0x23a   : > { %v5910_v9 = vrot.slane %v5763_v28, 1  ;;  %v1975_v43 = vmul.f32 %v10752_v59, %v10762_v41  ;;  %v1976_v4 = vmul.f32 %v10682_v5, %v10763_v10  ;;  %v4910_v20 = vadd.f32 %v4782_v14, %v4452_v47  ;;  %v10765_v40 = vld [vmem:[#allocation70_spill] sm:$0xff]  ;;  %v10766_v5 = vld [vmem:[#allocation5_spill] sm:$0xff] }
 0x23b   : > { %v5240_v44 = vcombine.low %v5232_v15, %v5239_v62  ;;  %v6267_v6 = vcombine.low %v6023_v42, %v6024_v33  ;;  %v6274_v46 = vrot.slane %v6266_v49, %v7438_v7  ;;  %v1977_v28 = vmul.f32 %v10683_v48, %v10764_v56  ;;  %v10767_v15 = vld [vmem:[#allocation13_spill] sm:$0xff]  ;;  %v10769_v49 = vld [vmem:[#allocation15_spill] sm:$0xff] }
 0x23c   : > { %v5911_v12 = vsel %vm2886_vm10, %v9284_v34, %v5910_v9  ;;  %v1978_v31 = vmul.f32 %v10684_v2, %v10765_v40  ;;  %v2233_v3 = vcombine.low %v1975_v43, %v1976_v4  ;;  %v2459_v14 = vmul.f32 %v10766_v5, %v10762_v41  ;;  %v10768_v34 = vld [vmem:[#allocation14_spill] sm:$0xff] }
 0x23d   : > { %v5368_v13 = vadd.f32 %v5240_v44, %v4910_v20  ;;  %v6281_v59 = vrot.slane %v6267_v6, %v7438_v7  ;;  %v2460_v42 = vmul.f32 %v10767_v15, %v10763_v10  ;;  %v2461_v33 = vmul.f32 %v10768_v34, %v10764_v56  ;;  %v10770_v44 = vld [vmem:[#allocation17_spill] sm:$0xff] }
 0x23e   : > { %v2234_v47 = vcombine.low %v1977_v28, %v1978_v31  ;;  %v2241_v62 = vrot.slane %v2233_v3, %v7438_v7  ;;  %v2462_v9 = vmul.f32 %v10769_v49, %v10765_v40  ;;  %v2463_v4 = vmul.f32 %v10770_v44, %v10675_v25 }
 0x23f   : > { %v5952_v2 = vadd.f32 %v5911_v12, %v5368_v13  ;;  %v6282_v43 = vcombine.low %v6274_v46, %v6281_v59  ;;  %v2464_v41 = vmul.f32 %v10767_v15, %v10677_v60  ;;  %v2465_v31 = vmul.f32 %v10768_v34, %v10678_v37 }
 0x240   : > { %v2248_v20 = vrot.slane %v2234_v47, %v7438_v7  ;;  %v2466_v3 = vmul.f32 %v10769_v49, %v10679_v22  ;;  %v2763_v6 = vcombine.low %v2459_v14, %v2460_v42  ;;  %v2764_v5 = vcombine.low %v2461_v33, %v2462_v9 }
 0x241   : > { %v6410_v28 = vadd.f32 %v6282_v43, %v5952_v2  ;;  %v2780_v48 = vcombine.low %v2463_v4, %v2464_v41  ;;  %v3025_v59 = vmul.f32 %v7708_v55, %v10763_v10  ;;  %v3026_v47 = vmul.f32 %v10552_v50, %v10764_v56  ;;  %v10771_v43 = vld [vmem:[#allocation75_spill] sm:$0xff] }
 0x242   : > { %v2249_v13 = vcombine.low %v2241_v62, %v2248_v20  ;;  %v2771_v46 = vrot.slane %v2763_v6, %v7438_v7  ;;  %v2781_v12 = vcombine.low %v2465_v31, %v2466_v3  ;;  %v2778_v34 = vrot.slane %v2764_v5, %v7438_v7 }
 0x243   : > { %v6426_v44 = vmax.f32 %v6410_v28, 0.0  ;;  %v2788_v15 = vrot.slane %v2780_v48, %v7438_v7  ;;  %v3027_v2 = vmul.f32 %v10554_v0, %v10765_v40  ;;  %v3028_v10 = vmul.f32 %v10555_v57, %v10675_v25 }
 0x244   : > { %v2361_v14 = vadd.f32 %v9312_v27, %v2249_v13  ;;  %v2795_v42 = vrot.slane %v2781_v12, %v7438_v7  ;;  %v3283_v62 = vcombine.low %v3025_v59, %v3026_v47  ;;  %v2779_v9 = vcombine.low %v2771_v46, %v2778_v34  ;;  %v10772_v34 = vld [vmem:[#allocation8_spill] sm:$0xff]  ;;  %v10774_v13 = vld [vmem:[#allocation21_spill] sm:$0xff] }
 0x245   : > { %v6442_v33 = vmin.f32 %v6426_v44, 6.0  ;;  %v3483_v56 = vmul.f32 %v7768_v17, %v10771_v43  ;;  %v3484_v5 = vmul.f32 %v7798_v35, %v10742_v11  ;;  %v3284_v4 = vcombine.low %v3027_v2, %v3028_v10  ;;  %v10775_v2 = vld [vmem:[#allocation23_spill] sm:$0xff]  ;;  %v10776_v10 = vld [vmem:[#allocation29_spill] sm:$0xff] }
 0x246   : > { %v2796_v48 = vcombine.low %v2788_v15, %v2795_v42  ;;  %v3291_v40 = vrot.slane %v3283_v62, %v7438_v7  ;;  %v3485_v41 = vmul.f32 %v7781_v24, %v10743_v21  ;;  %v2912_v20 = vrot.slane %v2779_v9, 1  ;;  %v10773_v15 = vld [vmem:[#allocation19_spill] sm:$0xff] }
 0x247   : > { %7043 = vmatmul.mubr.f32.gmra.mrb[8].mxu1 %v6442_v33  ;;  %v3486_v31 = vmul.f32 %v10755_v58, %v10744_v61  ;;  %v3741_v44 = vcombine.low %v3483_v56, %v3484_v5  ;;  %v3960_v3 = vmul.f32 %v10772_v34, %v10771_v43  ;;  %v3298_v28 = vrot.slane %v3284_v4, %v7438_v7 }
 0x248   : > { %v9411_v6 = vrot.slane %v2796_v48, 1  ;;  %v3961_v59 = vmul.f32 %v10773_v15, %v10742_v11  ;;  %v3962_v46 = vmul.f32 %v10774_v13, %v10743_v21  ;;  %v3963_v42 = vmul.f32 %v10775_v2, %v10744_v61 }
 0x249   : > { %v3742_v12 = vcombine.low %v3485_v41, %v3486_v31  ;;  %v3749_v47 = vrot.slane %v3741_v44, %v7438_v7  ;;  %v3964_v62 = vmul.f32 %v10776_v10, %v10746_v32  ;;  %v3299_v9 = vcombine.low %v3291_v40, %v3298_v28 }
 0x24a   : > { %v2914_v33 = vsel %vm2886_vm10, %v2912_v20, %v9411_v6  ;;  %v3965_v56 = vmul.f32 %v10773_v15, %v10747_v16  ;;  %v3966_v5 = vmul.f32 %v10774_v13, %v10748_v38  ;;  %v3967_v41 = vmul.f32 %v10775_v2, %v10749_v1 }
 0x24b   : > { %v2953_v48 = vadd.f32 %v2914_v33, %v2361_v14  ;;  %v3756_v4 = vrot.slane %v3742_v12, %v7438_v7  ;;  %v4264_v31 = vcombine.low %v3960_v3, %v3961_v59  ;;  %v4265_v44 = vcombine.low %v3962_v46, %v3963_v42  ;;  %v10777_v33 = vld [vmem:[#allocation88_spill] sm:$0xff] }
 0x24c   : > { %v4281_v34 = vcombine.low %v3964_v62, %v3965_v56  ;;  %v4525_v10 = vmul.f32 %v7787_v29, %v10742_v11  ;;  %v4526_v40 = vmul.f32 %v7825_v52, %v10743_v21  ;;  %v4282_v13 = vcombine.low %v3966_v5, %v3967_v41  ;;  %v10778_v5 = vld [vmem:[#allocation45_spill] sm:$0xff] }
 0x24d   : > { %v3411_v20 = vadd.f32 %v3299_v9, %v2953_v48  ;;  %v3757_v28 = vcombine.low %v3749_v47, %v3756_v4  ;;  %v4272_v15 = vrot.slane %v4264_v31, %v7438_v7  ;;  %v4279_v14 = vrot.slane %v4265_v44, %v7438_v7  ;;  %v10779_v4 = vld [vmem:[#allocation57_spill] sm:$0xff] }
 0x24e   : > { %v4289_v12 = vrot.slane %v4281_v34, %v7438_v7  ;;  %v4527_v3 = vmul.f32 %v7790_v30, %v10744_v61  ;;  %v4528_v59 = vmul.f32 %v7829_v53, %v10746_v32  ;;  %v4296_v42 = vrot.slane %v4282_v13, %v7438_v7  ;;  %v10780_v13 = vld [vmem:[#allocation20_spill] sm:$0xff] }
 0x24f   : > { %v3869_v46 = vadd.f32 %v3757_v28, %v3411_v20  ;;  %v4783_v62 = vcombine.low %v4525_v10, %v4526_v40  ;;  %v4983_v47 = vmul.f32 %v7801_v36, %v10777_v33  ;;  %v4280_v9 = vcombine.low %v4272_v15, %v4279_v14  ;;  %v10781_v28 = vld [vmem:[#allocation33_spill] sm:$0xff] }
 0x250   : > { %v4784_v56 = vcombine.low %v4527_v3, %v4528_v59  ;;  %v4984_v48 = vmul.f32 %v7836_v63, %v10778_v5  ;;  %v4985_v34 = vmul.f32 %v10634_v18, %v10779_v4  ;;  %v4297_v41 = vcombine.low %v4289_v12, %v4296_v42  ;;  %v10782_v12 = vld [vmem:[#allocation34_spill] sm:$0xff] }
 0x251   : > { %v4791_v31 = vrot.slane %v4783_v62, %v7438_v7  ;;  %v4986_v44 = vmul.f32 %v10689_v39, %v10761_v26  ;;  %v5460_v10 = vmul.f32 %v10780_v13, %v10777_v33  ;;  %v4412_v40 = vrot.slane %v4280_v9, 1  ;;  %v10783_v9 = vld [vmem:[#allocation38_spill] sm:$0xff]  ;;  %v10786_v33 = vld [vmem:[#allocation56_spill] sm:$0xff] }
 0x252   : > { %v4798_v20 = vrot.slane %v4784_v56, %v7438_v7  ;;  %v5241_v15 = vcombine.low %v4983_v47, %v4984_v48  ;;  %v5461_v14 = vmul.f32 %v10781_v28, %v10778_v5  ;;  %v9458_v3 = vrot.slane %v4297_v41, 1  ;;  %v10784_v56 = vld [vmem:[#allocation36_spill] sm:$0xff] }
 0x253   : > { %v5242_v59 = vcombine.low %v4985_v34, %v4986_v44  ;;  %v5462_v42 = vmul.f32 %v10782_v12, %v10779_v4  ;;  %v5463_v62 = vmul.f32 %v10571_v54, %v10761_v26  ;;  %v5464_v13 = vmul.f32 %v10783_v9, %v9355_v19  ;;  %v10785_v41 = vld [vmem:[#allocation44_spill] sm:$0xff] }
 0x254   : > { %v4799_v2 = vcombine.low %v4791_v31, %v4798_v20  ;;  %v5249_v49 = vrot.slane %v5241_v15, %v7438_v7  ;;  %v5465_v47 = vmul.f32 %v10781_v28, %v10784_v56  ;;  %v4414_v48 = vsel %vm2886_vm10, %v4412_v40, %v9458_v3 }
 0x255   : > { %v5256_v34 = vrot.slane %v5242_v59, %v7438_v7  ;;  %v5466_v44 = vmul.f32 %v10782_v12, %v10785_v41  ;;  %v5467_v61 = vmul.f32 %v10571_v54, %v10786_v33  ;;  %v4453_v31 = vadd.f32 %v4414_v48, %v3869_v46 }
 0x256   : > { %v5764_v20 = vcombine.low %v5460_v10, %v5461_v14  ;;  %v5765_v15 = vcombine.low %v5462_v42, %v5463_v62  ;;  %v5781_v21 = vcombine.low %v5464_v13, %v5465_v47  ;;  %v6025_v28 = vmul.f32 %v10750_v45, %v10778_v5  ;;  %v10788_v62 = vld [vmem:[#allocation6_spill] sm:$0xff]  ;;  %v9494_v47 = vpop.f32.mrb[0].mxu1 }
 0x257   : > { %v5257_v11 = vcombine.low %v5249_v49, %v5256_v34  ;;  %v5782_v9 = vcombine.low %v5466_v44, %v5467_v61  ;;  %v6026_v40 = vmul.f32 %v10751_v51, %v10779_v4  ;;  %v4911_v43 = vadd.f32 %v4799_v2, %v4453_v31  ;;  %10789 = vst [vmem:[#allocation61_spill] sm:$0xff] %v9494_v47  ;;  %v10790_v34 = vld [vmem:[#allocation9_spill] sm:$0xff]  ;;  %v9499_v31 = vpop.f32.mrb[1].mxu1 }
 0x258   : > { %v5772_v59 = vrot.slane %v5764_v20, %v7438_v7  ;;  %v5779_v12 = vrot.slane %v5765_v15, %v7438_v7  ;;  %v5789_v39 = vrot.slane %v5781_v21, %v7438_v7  ;;  %v6027_v10 = vmul.f32 %v10680_v8, %v10761_v26  ;;  %10791 = vst [vmem:[#allocation62_spill] sm:$0xff] %v9499_v31  ;;  %v10794_v15 = vld [vmem:[#allocation42_spill] sm:$0xff] }
 0x259   : > { %v5796_v46 = vrot.slane %v5782_v9, %v7438_v7  ;;  %v6028_v61 = vmul.f32 %v10534_v23, %v9355_v19  ;;  %v6283_v49 = vcombine.low %v6025_v28, %v6026_v40  ;;  %v5369_v14 = vadd.f32 %v5257_v11, %v4911_v43  ;;  %v10792_v43 = vld [vmem:[#allocation7_spill] sm:$0xff] }
 0x25a   : > { %v5780_v42 = vcombine.low %v5772_v59, %v5779_v12  ;;  %v9490_v2 = vcombine.high %v10786_v33, %v10786_v33  ;;  %v1979_v13 = vmul.f32 %v10788_v62, %v10675_v25  ;;  %v1980_v44 = vmul.f32 %v10790_v34, %v10677_v60  ;;  %v10793_v12 = vld [vmem:[#allocation12_spill] sm:$0xff]  ;;  %v10795_v25 = vld [vmem:[#allocation10_spill] sm:$0xff] }
 0x25b   : > { %v5797_v21 = vcombine.low %v5789_v39, %v5796_v46  ;;  %v6284_v9 = vcombine.low %v6027_v10, %v6028_v61  ;;  %v6291_v48 = vrot.slane %v6283_v49, %v7438_v7  ;;  %v1981_v28 = vmul.f32 %v10792_v43, %v10678_v37 }
 0x25c   : > { %10787 = vst [vmem:[#allocation18_spill] sm:$0xff] %v9490_v2  ;;  %v5912_v11 = vrot.slane %v5780_v42, 1  ;;  %v1982_v20 = vmul.f32 %v10793_v12, %v10679_v22  ;;  %v2467_v40 = vmul.f32 %v10795_v25, %v10794_v15  ;;  %v2250_v46 = vcombine.low %v1979_v13, %v1980_v44 }
 0x25d   : > { %v9507_v59 = vrot.slane %v5797_v21, 1  ;;  %v6298_v39 = vrot.slane %v6284_v9, %v7438_v7  ;;  %v3029_v10 = vmul.f32 %v7708_v55, %v10677_v60  ;;  %v3030_v42 = vmul.f32 %v10552_v50, %v10678_v37 }
 0x25e   : > { %v2251_v61 = vcombine.low %v1981_v28, %v1982_v20  ;;  %v2803_v49 = vrot.slane %v2467_v40, %v7438_v7  ;;  %v3031_v31 = vmul.f32 %v10554_v0, %v10679_v22  ;;  %v2258_v25 = vrot.slane %v2250_v46, %v7438_v7  ;;  %v10796_v46 = vld [vmem:[#allocation85_spill] sm:$0xff] }
 0x25f   : > { %v5914_v47 = vsel %vm2886_vm10, %v5912_v11, %v9507_v59  ;;  %v6299_v21 = vcombine.low %v6291_v48, %v6298_v39  ;;  %v3032_v13 = vmul.f32 %v10555_v57, %v10794_v15  ;;  %v3300_v28 = vcombine.low %v3029_v10, %v3030_v42  ;;  %v10797_v10 = vld [vmem:[#allocation22_spill] sm:$0xff] }
 0x260   : > { %v5953_v9 = vadd.f32 %v5914_v47, %v5369_v14  ;;  %v2265_v60 = vrot.slane %v2251_v61, %v7438_v7  ;;  %v2915_v44 = vrot.slane %v2803_v49, 1  ;;  %v3487_v37 = vmul.f32 %v7768_v17, %v10746_v32 }
 0x261   : > { %v3301_v20 = vcombine.low %v3031_v31, %v3032_v13  ;;  %v3488_v22 = vmul.f32 %v7798_v35, %v10747_v16  ;;  %v3489_v48 = vmul.f32 %v7781_v24, %v10748_v38  ;;  %v3308_v14 = vrot.slane %v3300_v28, %v7438_v7 }
 0x262   : > { %v6411_v11 = vadd.f32 %v6299_v21, %v5953_v9  ;;  %v2266_v40 = vcombine.low %v2258_v25, %v2265_v60  ;;  %v2916_v15 = vsel %vm2886_vm10, %v9411_v6, %v2915_v44  ;;  %v3490_v31 = vmul.f32 %v10755_v58, %v10749_v1 }
 0x263   : > { %v3315_v47 = vrot.slane %v3301_v20, %v7438_v7  ;;  %v3758_v39 = vcombine.low %v3487_v37, %v3488_v22  ;;  %v3968_v61 = vmul.f32 %v10797_v10, %v10796_v46  ;;  %v4529_v25 = vmul.f32 %v7787_v29, %v10747_v16 }
 0x264   : > { %v6427_v49 = vmax.f32 %v6411_v11, 0.0  ;;  %v2362_v42 = vadd.f32 %v9312_v27, %v2266_v40  ;;  %v4530_v6 = vmul.f32 %v7825_v52, %v10748_v38  ;;  %v3759_v13 = vcombine.low %v3489_v48, %v3490_v31 }
 0x265   : > { %v3316_v21 = vcombine.low %v3308_v14, %v3315_v47  ;;  %v3766_v9 = vrot.slane %v3758_v39, %v7438_v7  ;;  %v4304_v60 = vrot.slane %v3968_v61, %v7438_v7  ;;  %v4531_v20 = vmul.f32 %v7790_v30, %v10749_v1 }
 0x266   : > { %v6443_v44 = vmin.f32 %v6427_v49, 6.0  ;;  %v2954_v28 = vadd.f32 %v2916_v15, %v2362_v42  ;;  %v4532_v37 = vmul.f32 %v7829_v53, %v10796_v46  ;;  %v3773_v22 = vrot.slane %v3759_v13, %v7438_v7  ;;  %v10798_v42 = vld [vmem:[#allocation32_spill] sm:$0xff]  ;;  %v10809_v46 = vld [vmem:[#allocation17_spill] sm:$0xff] }
 0x267   : > { %v4415_v11 = vrot.slane %v4304_v60, 1  ;;  %v4800_v40 = vcombine.low %v4529_v25, %v4530_v6  ;;  %v4987_v14 = vmul.f32 %v7801_v36, %v9355_v19  ;;  %v4988_v31 = vmul.f32 %v7836_v63, %v10784_v56 }
 0x268   : > { %7045 = vmatprep.mubr.f32.mxu1 %v6443_v44  ;;  %v3412_v48 = vadd.f32 %v3316_v21, %v2954_v28  ;;  %v4801_v47 = vcombine.low %v4531_v20, %v4532_v37  ;;  %v4989_v15 = vmul.f32 %v10634_v18, %v10785_v41  ;;  %v3774_v39 = vcombine.low %v3766_v9, %v3773_v22  ;;  %v10799_v21 = vld [vmem:[#allocation30_spill] sm:$0xff] }
 0x269   : > { %v4416_v61 = vsel %vm2886_vm10, %v9458_v3, %v4415_v11  ;;  %v4808_v49 = vrot.slane %v4800_v40, %v7438_v7  ;;  %v4990_v25 = vmul.f32 %v10798_v42, %v10786_v33  ;;  %v5258_v13 = vcombine.low %v4987_v14, %v4988_v31  ;;  %v9573_v14 = vpop.f32.mrb[2].mxu1 }
 0x26a   : > { %v4815_v6 = vrot.slane %v4801_v47, %v7438_v7  ;;  %v5468_v60 = vmul.f32 %v10799_v21, %v9490_v2  ;;  %v6029_v44 = vmul.f32 %v10750_v45, %v10784_v56  ;;  %v3870_v28 = vadd.f32 %v3774_v39, %v3412_v48  ;;  %10800 = vst [vmem:[#allocation83_spill] sm:$0xff] %v9573_v14  ;;  %v10807_v14 = vld [vmem:[#allocation14_spill] sm:$0xff] }
 0x26b   : > { %v5259_v20 = vcombine.low %v4989_v15, %v4990_v25  ;;  %v6030_v9 = vmul.f32 %v10751_v51, %v10785_v41  ;;  %v6031_v3 = vmul.f32 %v10680_v8, %v10786_v33  ;;  %v5266_v22 = vrot.slane %v5258_v13, %v7438_v7  ;;  %v10801_v15 = vld [vmem:[#allocation75_spill] sm:$0xff]  ;;  %v9578_v25 = vpop.f32.mrb[3].mxu1 }
 0x26c   : > { %v4816_v37 = vcombine.low %v4808_v49, %v4815_v6  ;;  %v5804_v11 = vrot.slane %v5468_v60, %v7438_v7  ;;  %v6032_v40 = vmul.f32 %v10534_v23, %v9490_v2  ;;  %v4454_v47 = vadd.f32 %v4416_v61, %v3870_v28  ;;  %10802 = vst [vmem:[#allocation87_spill] sm:$0xff] %v9578_v25  ;;  %v10803_v6 = vld [vmem:[#allocation76_spill] sm:$0xff]  ;;  %v10804_v60 = vld [vmem:[#allocation81_spill] sm:$0xff] }
 0x26d   : > { %v5273_v48 = vrot.slane %v5259_v20, %v7438_v7  ;;  %v6300_v31 = vcombine.low %v6029_v44, %v6030_v9  ;;  %v1983_v39 = vmul.f32 %v10788_v62, %v10801_v15  ;;  %v1984_v13 = vmul.f32 %v10790_v34, %v10803_v6  ;;  %v10805_v28 = vld [vmem:[#allocation84_spill] sm:$0xff] }
 0x26e   : > { %v5915_v21 = vrot.slane %v5804_v11, 1  ;;  %v6301_v49 = vcombine.low %v6031_v3, %v6032_v40  ;;  %v1985_v36 = vmul.f32 %v10792_v43, %v10804_v60  ;;  %v4912_v10 = vadd.f32 %v4816_v37, %v4454_v47  ;;  %v10806_v3 = vld [vmem:[#allocation13_spill] sm:$0xff] }
 0x26f   : > { %v5274_v2 = vcombine.low %v5266_v22, %v5273_v48  ;;  %v6308_v61 = vrot.slane %v6300_v31, %v7438_v7  ;;  %v1986_v44 = vmul.f32 %v10793_v12, %v10805_v28  ;;  %v2267_v11 = vcombine.low %v1983_v39, %v1984_v13  ;;  %v10808_v22 = vld [vmem:[#allocation15_spill] sm:$0xff] }
 0x270   : > { %v5916_v20 = vsel %vm2886_vm10, %v9507_v59, %v5915_v21  ;;  %v6315_v9 = vrot.slane %v6301_v49, %v7438_v7  ;;  %v2469_v40 = vmul.f32 %v10806_v3, %v10803_v6  ;;  %v2470_v37 = vmul.f32 %v10807_v14, %v10804_v60 }
 0x271   : > { %v5370_v15 = vadd.f32 %v5274_v2, %v4912_v10  ;;  %v2268_v25 = vcombine.low %v1985_v36, %v1986_v44  ;;  %v2471_v47 = vmul.f32 %v10808_v22, %v10805_v28  ;;  %v2275_v31 = vrot.slane %v2267_v11, %v7438_v7  ;;  %v10810_v10 = vld [vmem:[#allocation77_spill] sm:$0xff] }
 0x272   : > { %v6316_v48 = vcombine.low %v6308_v61, %v6315_v9  ;;  %v2472_v59 = vmul.f32 %v10809_v46, %v10746_v32  ;;  %v2473_v21 = vmul.f32 %v10806_v3, %v10747_v16  ;;  %v2474_v36 = vmul.f32 %v10807_v14, %v10748_v38 }
 0x273   : > { %v5954_v39 = vadd.f32 %v5916_v20, %v5370_v15  ;;  %v2282_v49 = vrot.slane %v2268_v25, %v7438_v7  ;;  %v2475_v2 = vmul.f32 %v10808_v22, %v10749_v1  ;;  %v2804_v13 = vcombine.low %v10810_v10, %v2469_v40 }
 0x274   : > { %v2805_v61 = vcombine.low %v2470_v37, %v2471_v47  ;;  %v2821_v44 = vcombine.low %v2472_v59, %v2473_v21  ;;  %v3033_v9 = vmul.f32 %v7708_v55, %v10803_v6  ;;  %v3034_v20 = vmul.f32 %v10552_v50, %v10804_v60  ;;  %v10811_v60 = vld [vmem:[#allocation88_spill] sm:$0xff] }
 0x275   : > { %v6412_v11 = vadd.f32 %v6316_v48, %v5954_v39  ;;  %v2283_v46 = vcombine.low %v2275_v31, %v2282_v49  ;;  %v2822_v12 = vcombine.low %v2474_v36, %v2475_v2  ;;  %v2812_v25 = vrot.slane %v2804_v13, %v7438_v7 }
 0x276   : > { %v2819_v15 = vrot.slane %v2805_v61, %v7438_v7  ;;  %v2829_v14 = vrot.slane %v2821_v44, %v7438_v7  ;;  %v3035_v40 = vmul.f32 %v10554_v0, %v10805_v28  ;;  %v3036_v48 = vmul.f32 %v10555_v57, %v10746_v32 }
 0x277   : > { %v6428_v37 = vmax.f32 %v6412_v11, 0.0  ;;  %v2363_v47 = vadd.f32 %v9312_v27, %v2283_v46  ;;  %v2836_v6 = vrot.slane %v2822_v12, %v7438_v7  ;;  %v3317_v59 = vcombine.low %v3033_v9, %v3034_v20  ;;  %v10812_v9 = vld [vmem:[#allocation8_spill] sm:$0xff] }
 0x278   : > { %v2820_v31 = vcombine.low %v2812_v25, %v2819_v15  ;;  %v3491_v21 = vmul.f32 %v7768_v17, %v10811_v60  ;;  %v3492_v39 = vmul.f32 %v7798_v35, %v10778_v5  ;;  %v3318_v2 = vcombine.low %v3035_v40, %v3036_v48  ;;  %v10814_v40 = vld [vmem:[#allocation21_spill] sm:$0xff] }
 0x279   : > { %v6444_v49 = vmin.f32 %v6428_v37, 6.0  ;;  %v2837_v36 = vcombine.low %v2829_v14, %v2836_v6  ;;  %v3493_v28 = vmul.f32 %v7781_v24, %v10779_v4  ;;  %v3325_v12 = vrot.slane %v3317_v59, %v7438_v7  ;;  %v10813_v14 = vld [vmem:[#allocation19_spill] sm:$0xff] }
 0x27a   : > { %v2917_v46 = vrot.slane %v2820_v31, 1  ;;  %v3494_v10 = vmul.f32 %v10755_v58, %v10761_v26  ;;  %v3775_v13 = vcombine.low %v3491_v21, %v3492_v39  ;;  %v3332_v44 = vrot.slane %v3318_v2, %v7438_v7  ;;  %v10815_v6 = vld [vmem:[#allocation23_spill] sm:$0xff]  ;;  %v10816_v21 = vld [vmem:[#allocation29_spill] sm:$0xff] }
 0x27b   : > { %7046 = vmatmul.mubr.f32.gmra.mrb[10].mxu1 %v6444_v49  ;;  %v9629_v61 = vrot.slane %v2837_v36, 1  ;;  %v3969_v11 = vmul.f32 %v10812_v9, %v10811_v60  ;;  %v3970_v20 = vmul.f32 %v10813_v14, %v10778_v5  ;;  %v3971_v37 = vmul.f32 %v10814_v40, %v10779_v4 }
 0x27c   : > { %v3776_v25 = vcombine.low %v3493_v28, %v3494_v10  ;;  %v3783_v15 = vrot.slane %v3775_v13, %v7438_v7  ;;  %v3972_v48 = vmul.f32 %v10815_v6, %v10761_v26  ;;  %v3333_v59 = vcombine.low %v3325_v12, %v3332_v44 }
 0x27d   : > { %v2919_v31 = vsel %vm2886_vm10, %v2917_v46, %v9629_v61  ;;  %v3973_v39 = vmul.f32 %v10816_v21, %v9355_v19  ;;  %v3974_v49 = vmul.f32 %v10813_v14, %v10784_v56  ;;  %v3975_v28 = vmul.f32 %v10814_v40, %v10785_v41 }
 0x27e   : > { %v2955_v36 = vadd.f32 %v2919_v31, %v2363_v47  ;;  %v3790_v2 = vrot.slane %v3776_v25, %v7438_v7  ;;  %v3976_v10 = vmul.f32 %v10815_v6, %v10786_v33  ;;  %v4305_v13 = vcombine.low %v3969_v11, %v3970_v20  ;;  %v10821_v6 = vld [vmem:[#allocation49_spill] sm:$0xff] }
 0x27f   : > { %v4306_v9 = vcombine.low %v3971_v37, %v3972_v48  ;;  %v4322_v22 = vcombine.low %v3973_v39, %v3974_v49  ;;  %v4533_v46 = vmul.f32 %v7787_v29, %v10778_v5  ;;  %v4534_v47 = vmul.f32 %v7825_v52, %v10779_v4  ;;  %v10817_v39 = vld [vmem:[#allocation46_spill] sm:$0xff]  ;;  %v10828_v5 = vld [vmem:[#allocation47_spill] sm:$0xff] }
 0x280   : > { %v3413_v12 = vadd.f32 %v3333_v59, %v2955_v36  ;;  %v3791_v44 = vcombine.low %v3783_v15, %v3790_v2  ;;  %v4323_v21 = vcombine.low %v3975_v28, %v3976_v10  ;;  %v4313_v25 = vrot.slane %v4305_v13, %v7438_v7  ;;  %v10818_v36 = vld [vmem:[#allocation43_spill] sm:$0xff]  ;;  %v10819_v28 = vld [vmem:[#allocation66_spill] sm:$0xff] }
 0x281   : > { %v4320_v31 = vrot.slane %v4306_v9, %v7438_v7  ;;  %v4330_v14 = vrot.slane %v4322_v22, %v7438_v7  ;;  %v4535_v11 = vmul.f32 %v7790_v30, %v10761_v26  ;;  %v4536_v48 = vmul.f32 %v7829_v53, %v9355_v19  ;;  %v10825_v26 = vld [vmem:[#allocation69_spill] sm:$0xff] }
 0x282   : > { %v3871_v20 = vadd.f32 %v3791_v44, %v3413_v12  ;;  %v4337_v37 = vrot.slane %v4323_v21, %v7438_v7  ;;  %v4817_v15 = vcombine.low %v4533_v46, %v4534_v47  ;;  %v4992_v49 = vmul.f32 %v7836_v63, %v10817_v39  ;;  %v10820_v21 = vld [vmem:[#allocation33_spill] sm:$0xff] }
 0x283   : > { %v4321_v59 = vcombine.low %v4313_v25, %v4320_v31  ;;  %v4993_v2 = vmul.f32 %v10634_v18, %v10818_v36  ;;  %v4994_v22 = vmul.f32 %v10798_v42, %v10819_v28  ;;  %v4818_v13 = vcombine.low %v4535_v11, %v4536_v48  ;;  %v10822_v25 = vld [vmem:[#allocation34_spill] sm:$0xff]  ;;  %v10823_v11 = vld [vmem:[#allocation37_spill] sm:$0xff] }
 0x284   : > { %v4338_v10 = vcombine.low %v4330_v14, %v4337_v37  ;;  %v4825_v9 = vrot.slane %v4817_v15, %v7438_v7  ;;  %v5470_v12 = vmul.f32 %v10820_v21, %v10817_v39  ;;  %v5275_v46 = vcombine.low %v10821_v6, %v4992_v49  ;;  %v10824_v37 = vld [vmem:[#allocation38_spill] sm:$0xff]  ;;  %v10826_v49 = vld [vmem:[#allocation63_spill] sm:$0xff] }
 0x285   : > { %v4417_v44 = vrot.slane %v4321_v59, 1  ;;  %v5276_v47 = vcombine.low %v4993_v2, %v4994_v22  ;;  %v5471_v31 = vmul.f32 %v10822_v25, %v10818_v36  ;;  %v4832_v3 = vrot.slane %v4818_v13, %v7438_v7  ;;  %v10827_v13 = vld [vmem:[#allocation53_spill] sm:$0xff] }
 0x286   : > { %v9676_v40 = vrot.slane %v4338_v10, 1  ;;  %v5472_v14 = vmul.f32 %v10571_v54, %v10819_v28  ;;  %v5473_v48 = vmul.f32 %v10824_v37, %v10823_v11  ;;  %v5283_v15 = vrot.slane %v5275_v46, %v7438_v7 }
 0x287   : > { %v5290_v59 = vrot.slane %v5276_v47, %v7438_v7  ;;  %v5474_v6 = vmul.f32 %v10820_v21, %v10825_v26  ;;  %v5475_v2 = vmul.f32 %v10822_v25, %v10826_v49  ;;  %v4833_v10 = vcombine.low %v4825_v9, %v4832_v3 }
 0x288   : > { %v4419_v22 = vsel %vm2886_vm10, %v4417_v44, %v9676_v40  ;;  %v5476_v4 = vmul.f32 %v10571_v54, %v10827_v13  ;;  %v5805_v60 = vcombine.low %v10828_v5, %v5470_v12  ;;  %v5806_v46 = vcombine.low %v5471_v31, %v5472_v14 }
 0x289   : > { %v4455_v37 = vadd.f32 %v4419_v22, %v3871_v20  ;;  %v5291_v42 = vcombine.low %v5283_v15, %v5290_v59  ;;  %v5822_v18 = vcombine.low %v5473_v48, %v5474_v6  ;;  %v6033_v21 = vmul.f32 %v10750_v45, %v10817_v39 }
 0x28a   : > { %v5813_v47 = vrot.slane %v5805_v60, %v7438_v7  ;;  %v5823_v63 = vcombine.low %v5475_v2, %v5476_v4  ;;  %v6034_v25 = vmul.f32 %v10751_v51, %v10818_v36  ;;  %v5820_v3 = vrot.slane %v5806_v46, %v7438_v7 }
 0x28b   : > { %v4913_v44 = vadd.f32 %v4833_v10, %v4455_v37  ;;  %v5830_v54 = vrot.slane %v5822_v18, %v7438_v7  ;;  %v6035_v5 = vmul.f32 %v10680_v8, %v10819_v28  ;;  %v6036_v60 = vmul.f32 %v10534_v23, %v10823_v11  ;;  %v10830_v10 = vld [vmem:[#allocation85_spill] sm:$0xff]  ;;  %v10831_v37 = vld [vmem:[#allocation10_spill] sm:$0xff] }
 0x28c   : > { %v5837_v20 = vrot.slane %v5823_v63, %v7438_v7  ;;  %v6317_v4 = vcombine.low %v6033_v21, %v6034_v25  ;;  %v1987_v9 = vmul.f32 %v10788_v62, %v10746_v32  ;;  %v5821_v31 = vcombine.low %v5813_v47, %v5820_v3  ;;  %v10829_v63 = vld [vmem:[#allocation12_spill] sm:$0xff] }
 0x28d   : > { %v5371_v12 = vadd.f32 %v5291_v42, %v4913_v44  ;;  %v1988_v14 = vmul.f32 %v10790_v34, %v10747_v16  ;;  %v1989_v18 = vmul.f32 %v10792_v43, %v10748_v38  ;;  %v6318_v15 = vcombine.low %v6035_v5, %v6036_v60 }
 0x28e   : > { %v5838_v48 = vcombine.low %v5830_v54, %v5837_v20  ;;  %v6325_v59 = vrot.slane %v6317_v4, %v7438_v7  ;;  %v1990_v6 = vmul.f32 %v10829_v63, %v10749_v1  ;;  %v5917_v2 = vrot.slane %v5821_v31, 1 }
 0x28f   : > { %v2284_v22 = vcombine.low %v1987_v9, %v1988_v14  ;;  %v2476_v32 = vmul.f32 %v10831_v37, %v10830_v10  ;;  %v3037_v42 = vmul.f32 %v7708_v55, %v10747_v16  ;;  %v6332_v47 = vrot.slane %v6318_v15, %v7438_v7 }
 0x290   : > { %v9719_v46 = vrot.slane %v5838_v48, 1  ;;  %v2285_v21 = vcombine.low %v1989_v18, %v1990_v6  ;;  %v3038_v25 = vmul.f32 %v10552_v50, %v10748_v38  ;;  %v3039_v54 = vmul.f32 %v10554_v0, %v10749_v1 }
 0x291   : > { %v2292_v44 = vrot.slane %v2284_v22, %v7438_v7  ;;  %v2844_v3 = vrot.slane %v2476_v32, %v7438_v7  ;;  %v3040_v5 = vmul.f32 %v10555_v57, %v10830_v10  ;;  %v6333_v20 = vcombine.low %v6325_v59, %v6332_v47  ;;  %v10832_v32 = vld [vmem:[#allocation18_spill] sm:$0xff] }
 0x292   : > { %v5919_v16 = vsel %vm2886_vm10, %v5917_v2, %v9719_v46  ;;  %v2299_v60 = vrot.slane %v2285_v21, %v7438_v7  ;;  %v3334_v4 = vcombine.low %v3037_v42, %v3038_v25  ;;  %v3495_v14 = vmul.f32 %v7768_v17, %v9355_v19  ;;  %v10833_v42 = vld [vmem:[#allocation22_spill] sm:$0xff] }
 0x293   : > { %v5955_v9 = vadd.f32 %v5919_v16, %v5371_v12  ;;  %v2920_v31 = vrot.slane %v2844_v3, 1  ;;  %v3335_v38 = vcombine.low %v3039_v54, %v3040_v5  ;;  %v3496_v1 = vmul.f32 %v7798_v35, %v10784_v56 }
 0x294   : > { %v2300_v18 = vcombine.low %v2292_v44, %v2299_v60  ;;  %v3342_v48 = vrot.slane %v3334_v4, %v7438_v7  ;;  %v3497_v15 = vmul.f32 %v7781_v24, %v10785_v41  ;;  %v3498_v2 = vmul.f32 %v10755_v58, %v10786_v33 }
 0x295   : > { %v6413_v6 = vadd.f32 %v6333_v20, %v5955_v9  ;;  %v2921_v59 = vsel %vm2886_vm10, %v9629_v61, %v2920_v31  ;;  %v3349_v12 = vrot.slane %v3335_v38, %v7438_v7  ;;  %v3792_v10 = vcombine.low %v3495_v14, %v3496_v1  ;;  %v10835_v1 = vld [vmem:[#allocation31_spill] sm:$0xff] }
 0x296   : > { %v2364_v22 = vadd.f32 %v9312_v27, %v2300_v18  ;;  %v3977_v47 = vmul.f32 %v10833_v42, %v10832_v32  ;;  %v4537_v21 = vmul.f32 %v7787_v29, %v10784_v56  ;;  %v3793_v3 = vcombine.low %v3497_v15, %v3498_v2  ;;  %v10834_v18 = vld [vmem:[#allocation24_spill] sm:$0xff]  ;;  %v10836_v2 = vld [vmem:[#allocation25_spill] sm:$0xff] }
 0x297   : > { %v6429_v25 = vmax.f32 %v6413_v6, 0.0  ;;  %v3350_v44 = vcombine.low %v3342_v48, %v3349_v12  ;;  %v4538_v61 = vmul.f32 %v7825_v52, %v10785_v41  ;;  %v3800_v5 = vrot.slane %v3792_v10, %v7438_v7  ;;  %v10837_v42 = vld [vmem:[#allocation32_spill] sm:$0xff] }
 0x298   : > { %v2956_v54 = vadd.f32 %v2921_v59, %v2364_v22  ;;  %v4345_v16 = vrot.slane %v3977_v47, %v7438_v7  ;;  %v4539_v20 = vmul.f32 %v7790_v30, %v10786_v33  ;;  %v3807_v4 = vrot.slane %v3793_v3, %v7438_v7 }
 0x299   : > { %v6445_v60 = vmin.f32 %v6429_v25, 6.0  ;;  %v4540_v9 = vmul.f32 %v7829_v53, %v10832_v32  ;;  %v4834_v31 = vcombine.low %v4537_v21, %v4538_v61  ;;  %v4995_v48 = vmul.f32 %v10834_v18, %v10823_v11  ;;  %v10838_v25 = vld [vmem:[#allocation79_spill] sm:$0xff] }
 0x29a   : > { %v3414_v38 = vadd.f32 %v3350_v44, %v2956_v54  ;;  %v4420_v14 = vrot.slane %v4345_v16, 1  ;;  %v4996_v15 = vmul.f32 %v10835_v1, %v10825_v26  ;;  %v3808_v6 = vcombine.low %v3800_v5, %v3807_v4  ;;  %v10839_v44 = vld [vmem:[#allocation30_spill] sm:$0xff] }
 0x29b   : > { %7048 = vmatprep.mubr.f32.mxu1 %v6445_v60  ;;  %v4835_v59 = vcombine.low %v4539_v20, %v4540_v9  ;;  %v4842_v12 = vrot.slane %v4834_v31, %v7438_v7  ;;  %v4997_v22 = vmul.f32 %v10836_v2, %v10826_v49  ;;  %v4998_v47 = vmul.f32 %v10837_v42, %v10827_v13 }
 0x29c   : > { %v4421_v10 = vsel %vm2886_vm10, %v9676_v40, %v4420_v14  ;;  %v5292_v21 = vcombine.low %v4995_v48, %v4996_v15  ;;  %v5477_v3 = vmul.f32 %v10839_v44, %v10838_v25  ;;  %v3872_v61 = vadd.f32 %v3808_v6, %v3414_v38  ;;  %v10840_v15 = vld [vmem:[#allocation88_spill] sm:$0xff] }
 0x29d   : > { %v4849_v54 = vrot.slane %v4835_v59, %v7438_v7  ;;  %v6037_v5 = vmul.f32 %v10750_v45, %v10825_v26  ;;  %v6038_v16 = vmul.f32 %v10751_v51, %v10826_v49  ;;  %v5293_v20 = vcombine.low %v4997_v22, %v4998_v47  ;;  %v10841_v59 = vld [vmem:[#allocation45_spill] sm:$0xff] }
 0x29e   : > { %v5300_v60 = vrot.slane %v5292_v21, %v7438_v7  ;;  %v5845_v40 = vrot.slane %v5477_v3, %v7438_v7  ;;  %v6039_v4 = vmul.f32 %v10680_v8, %v10827_v13  ;;  %v4456_v9 = vadd.f32 %v4421_v10, %v3872_v61  ;;  %v10842_v8 = vld [vmem:[#allocation57_spill] sm:$0xff] }
 0x29f   : > { %v4850_v31 = vcombine.low %v4842_v12, %v4849_v54  ;;  %v6040_v38 = vmul.f32 %v10534_v23, %v10838_v25  ;;  %v6334_v14 = vcombine.low %v6037_v5, %v6038_v16  ;;  %v5307_v48 = vrot.slane %v5293_v20, %v7438_v7  ;;  %v10843_v25 = vld [vmem:[#allocation51_spill] sm:$0xff]  ;;  %v10844_v54 = vld [vmem:[#allocation5_spill] sm:$0xff] }
 0x2a0   : > { %v5920_v1 = vrot.slane %v5845_v40, 1  ;;  %v1991_v6 = vmul.f32 %v10788_v62, %v10840_v15  ;;  %v1992_v2 = vmul.f32 %v10790_v34, %v10841_v59  ;;  %v1993_v12 = vmul.f32 %v10792_v43, %v10842_v8  ;;  %v10845_v16 = vld [vmem:[#allocation13_spill] sm:$0xff]  ;;  %v10846_v40 = vld [vmem:[#allocation14_spill] sm:$0xff] }
 0x2a1   : > { %v4914_v22 = vadd.f32 %v4850_v31, %v4456_v9  ;;  %v6335_v42 = vcombine.low %v6039_v4, %v6040_v38  ;;  %v6342_v47 = vrot.slane %v6334_v14, %v7438_v7  ;;  %v5308_v10 = vcombine.low %v5300_v60, %v5307_v48  ;;  %v9802_v9 = vpop.f32.mrb[4].mxu1  ;;  %v10847_v38 = vld [vmem:[#allocation15_spill] sm:$0xff] }
 0x2a2   : > { %v5921_v21 = vsel %vm2886_vm10, %v9719_v46, %v5920_v1  ;;  %v1994_v44 = vmul.f32 %v10829_v63, %v10843_v25  ;;  %v2301_v3 = vcombine.low %v1991_v6, %v1992_v2  ;;  %v2477_v5 = vmul.f32 %v10844_v54, %v10840_v15  ;;  %v9807_v48 = vpop.f32.mrb[5].mxu1  ;;  %v10849_v15 = vld [vmem:[#allocation17_spill] sm:$0xff] }
 0x2a3   : > { %v6349_v61 = vrot.slane %v6335_v42, %v7438_v7  ;;  %v2478_v20 = vmul.f32 %v10845_v16, %v10841_v59  ;;  %v2479_v4 = vmul.f32 %v10846_v40, %v10842_v8  ;;  %v5372_v60 = vadd.f32 %v5308_v10, %v4914_v22  ;;  %10848 = vst [vmem:[#allocation82_spill] sm:$0xff] %v9807_v48 }
 0x2a4   : > { %v2302_v31 = vcombine.low %v1993_v12, %v1994_v44  ;;  %v2309_v46 = vrot.slane %v2301_v3, %v7438_v7  ;;  %v2480_v14 = vmul.f32 %v10847_v38, %v10843_v25  ;;  %v2481_v6 = vmul.f32 %v10849_v15, %v9355_v19 }
 0x2a5   : > { %v6350_v1 = vcombine.low %v6342_v47, %v6349_v61  ;;  %v2482_v2 = vmul.f32 %v10845_v16, %v10784_v56  ;;  %v2483_v42 = vmul.f32 %v10846_v40, %v10785_v41  ;;  %v5956_v54 = vadd.f32 %v5921_v21, %v5372_v60 }
 0x2a6   : > { %v2316_v22 = vrot.slane %v2302_v31, %v7438_v7  ;;  %v2484_v12 = vmul.f32 %v10847_v38, %v10786_v33  ;;  %v2845_v10 = vcombine.low %v2477_v5, %v2478_v20  ;;  %v2846_v44 = vcombine.low %v2479_v4, %v2480_v14 }
 0x2a7   : > { %v2862_v3 = vcombine.low %v2481_v6, %v2482_v2  ;;  %v3041_v47 = vmul.f32 %v7708_v55, %v10841_v59  ;;  %v3042_v61 = vmul.f32 %v10552_v50, %v10842_v8  ;;  %v6414_v15 = vadd.f32 %v6350_v1, %v5956_v54  ;;  %v10851_v54 = vld [vmem:[#allocation65_spill] sm:$0xff] }
 0x2a8   : > { %v2317_v16 = vcombine.low %v2309_v46, %v2316_v22  ;;  %v2853_v48 = vrot.slane %v2845_v10, %v7438_v7  ;;  %v2863_v40 = vcombine.low %v2483_v42, %v2484_v12  ;;  %v2860_v21 = vrot.slane %v2846_v44, %v7438_v7  ;;  %v10850_v42 = vld [vmem:[#allocation48_spill] sm:$0xff]  ;;  %v10853_v44 = vld [vmem:[#allocation21_spill] sm:$0xff] }
 0x2a9   : > { %v2870_v60 = vrot.slane %v2862_v3, %v7438_v7  ;;  %v3043_v5 = vmul.f32 %v10554_v0, %v10843_v25  ;;  %v3044_v20 = vmul.f32 %v10555_v57, %v9355_v19  ;;  %v6430_v4 = vmax.f32 %v6414_v15, 0.0 }
 0x2aa   : > { %v2365_v59 = vadd.f32 %v9312_v27, %v2317_v16  ;;  %v2877_v8 = vrot.slane %v2863_v40, %v7438_v7  ;;  %v3351_v31 = vcombine.low %v3041_v47, %v3042_v61  ;;  %v2861_v46 = vcombine.low %v2853_v48, %v2860_v21  ;;  %v10854_v61 = vld [vmem:[#allocation23_spill] sm:$0xff]  ;;  %v10855_v16 = vld [vmem:[#allocation29_spill] sm:$0xff] }
 0x2ab   : > { %v3352_v38 = vcombine.low %v3043_v5, %v3044_v20  ;;  %v3501_v14 = vmul.f32 %v7781_v24, %v10818_v36  ;;  %v3502_v1 = vmul.f32 %v10755_v58, %v10819_v28  ;;  %v6446_v6 = vmin.f32 %v6430_v4, 6.0  ;;  %v10856_v21 = vld [vmem:[#allocation19_spill] sm:$0xff] }
 0x2ac   : > { %v2878_v2 = vcombine.low %v2870_v60, %v2877_v8  ;;  %v3359_v25 = vrot.slane %v3351_v31, %v7438_v7  ;;  %v10852_v22 = vcombine.low %v10850_v42, %v10851_v54  ;;  %v2922_v12 = vrot.slane %v2861_v46, 1 }
 0x2ad   : > { %v3366_v10 = vrot.slane %v3352_v38, %v7438_v7  ;;  %v3810_v48 = vcombine.low %v3501_v14, %v3502_v1  ;;  %v3980_v3 = vmul.f32 %v10853_v44, %v10818_v36  ;;  %7049 = vmatmul.mubr.f32.gmra.mrb[12].mxu1 %v6446_v6  ;;  %v3981_v15 = vmul.f32 %v10854_v61, %v10819_v28 }
 0x2ae   : > { %v3817_v27 = vrot.slane %v10852_v22, %v7438_v7  ;;  %v9843_v47 = vrot.slane %v2878_v2, 1  ;;  %v3982_v40 = vmul.f32 %v10855_v16, %v10823_v11  ;;  %v3983_v60 = vmul.f32 %v10856_v21, %v10825_v26  ;;  %v10863_v21 = vld [vmem:[#allocation74_spill] sm:$0xff] }
 0x2af   : > { %v3367_v5 = vcombine.low %v3359_v25, %v3366_v10  ;;  %v3824_v20 = vrot.slane %v3810_v48, %v7438_v7  ;;  %v3984_v4 = vmul.f32 %v10853_v44, %v10826_v49  ;;  %v3985_v8 = vmul.f32 %v10854_v61, %v10827_v13  ;;  %v10858_v44 = vld [vmem:[#allocation41_spill] sm:$0xff]  ;;  %v10859_v61 = vld [vmem:[#allocation11_spill] sm:$0xff] }
 0x2b0   : > { %v2924_v31 = vsel %vm2886_vm10, %v2922_v12, %v9843_v47  ;;  %v4347_v46 = vcombine.low %v3980_v3, %v3981_v15  ;;  %v4363_v38 = vcombine.low %v3982_v40, %v3983_v60  ;;  %v4541_v14 = vmul.f32 %v7787_v29, %v10817_v39  ;;  %v10860_v15 = vld [vmem:[#allocation52_spill] sm:$0xff] }
 0x2b1   : > { %v2957_v1 = vadd.f32 %v2924_v31, %v2365_v59  ;;  %v3825_v6 = vcombine.low %v3817_v27, %v3824_v20  ;;  %v4364_v2 = vcombine.low %v3984_v4, %v3985_v8  ;;  %v4542_v25 = vmul.f32 %v7825_v52, %v10818_v36  ;;  %v10857_v59 = vld [vmem:[#allocation60_spill] sm:$0xff]  ;;  %v10865_v8 = vld [vmem:[#allocation71_spill] sm:$0xff] }
 0x2b2   : > { %v4361_v42 = vrot.slane %v4347_v46, %v7438_v7  ;;  %v4371_v54 = vrot.slane %v4363_v38, %v7438_v7  ;;  %v4543_v22 = vmul.f32 %v7790_v30, %v10819_v28  ;;  %v4544_v12 = vmul.f32 %v7829_v53, %v10823_v11  ;;  %v10862_v28 = vld [vmem:[#allocation73_spill] sm:$0xff]  ;;  %v10866_v38 = vld [vmem:[#allocation59_spill] sm:$0xff] }
 0x2b3   : > { %v3415_v10 = vadd.f32 %v3367_v5, %v2957_v1  ;;  %v4378_v48 = vrot.slane %v4364_v2, %v7438_v7  ;;  %v4851_v39 = vcombine.low %v4541_v14, %v4542_v25  ;;  %v4999_v27 = vmul.f32 %v10834_v18, %v10857_v59  ;;  %v10867_v14 = vld [vmem:[#allocation89_spill] sm:$0xff]  ;;  %v10869_v25 = vld [vmem:[#allocation90_spill] sm:$0xff] }
 0x2b4   : > { %v4362_v3 = vcombine.low %v10858_v44, %v4361_v42  ;;  %v4852_v36 = vcombine.low %v4543_v22, %v4544_v12  ;;  %v10861_v16 = vcombine.low %v10859_v61, %v10860_v15  ;;  %v10864_v60 = vcombine.low %v10862_v28, %v10863_v21  ;;  %v10870_v42 = vld [vmem:[#allocation91_spill] sm:$0xff]  ;;  %v10876_v61 = vld [vmem:[#allocation72_spill] sm:$0xff] }
 0x2b5   : > { %v3873_v5 = vadd.f32 %v3825_v6, %v3415_v10  ;;  %v4379_v20 = vcombine.low %v4371_v54, %v4378_v48  ;;  %v4859_v4 = vrot.slane %v4851_v39, %v7438_v7  ;;  %v5309_v31 = vcombine.low %v4999_v27, %v10865_v8  ;;  %v10872_v54 = vld [vmem:[#allocation96_spill] sm:$0xff]  ;;  %v10873_v10 = vld [vmem:[#allocation97_spill] sm:$0xff] }
 0x2b6   : > { %v5324_v40 = vrot.slane %v10861_v16, %v7438_v7  ;;  %v5854_v53 = vrot.slane %v10864_v60, %v7438_v7  ;;  %v4422_v18 = vrot.slane %v4362_v3, 1  ;;  %v4866_v46 = vrot.slane %v4852_v36, %v7438_v7  ;;  %v10875_v27 = vld [vmem:[#allocation80_spill] sm:$0xff]  ;;  %v10877_v16 = vld [vmem:[#allocation54_spill] sm:$0xff] }
 0x2b7   : > { %v10868_v1 = vcombine.low %v10866_v38, %v10867_v14  ;;  %v10871_v22 = vcombine.low %v10869_v25, %v10870_v42  ;;  %v4423_v59 = vrot.slane %v4379_v20, 1  ;;  %v5317_v6 = vrot.slane %v5309_v31, %v7438_v7 }
 0x2b8   : > { %v10874_v48 = vcombine.low %v10872_v54, %v10873_v10  ;;  %v6041_v44 = vmul.f32 %v10750_v45, %v10875_v27  ;;  %v4867_v3 = vcombine.low %v4859_v4, %v4866_v46  ;;  %v6042_v15 = vmul.f32 %v10751_v51, %v10876_v61  ;;  %v10879_v61 = vld [vmem:[#allocation40_spill] sm:$0xff] }
 0x2b9   : > { %v5861_v2 = vrot.slane %v10868_v1, %v7438_v7  ;;  %v5871_v12 = vrot.slane %v10871_v22, %v7438_v7  ;;  %v6044_v28 = vmul.f32 %v10534_v23, %v10877_v16  ;;  %v4424_v21 = vsel %vm2886_vm10, %v4422_v18, %v4423_v59  ;;  %v10878_v1 = vld [vmem:[#allocation92_spill] sm:$0xff] }
 0x2ba   : > { %v5878_v39 = vrot.slane %v10874_v48, %v7438_v7  ;;  %v5325_v60 = vcombine.low %v5317_v6, %v5324_v40  ;;  %v1995_v8 = vmul.f32 %v10788_v62, %v9355_v19  ;;  %v4457_v31 = vadd.f32 %v4424_v21, %v3873_v5 }
 0x2bb   : > { %v5862_v36 = vcombine.low %v5854_v53, %v5861_v2  ;;  %v6351_v14 = vcombine.low %v6041_v44, %v6042_v15  ;;  %v6352_v25 = vcombine.low %v10878_v1, %v6044_v28  ;;  %v1996_v53 = vmul.f32 %v10790_v34, %v10784_v56 }
 0x2bc   : > { %v5879_v20 = vcombine.low %v5871_v12, %v5878_v39  ;;  %v1997_v46 = vmul.f32 %v10792_v43, %v10785_v41  ;;  %v1998_v40 = vmul.f32 %v10829_v63, %v10786_v33  ;;  %v4915_v18 = vadd.f32 %v4867_v3, %v4457_v31 }
 0x2bd   : > { %v5922_v38 = vrot.slane %v5862_v36, 1  ;;  %v6359_v2 = vrot.slane %v6351_v14, %v7438_v7  ;;  %v6366_v19 = vrot.slane %v6352_v25, %v7438_v7  ;;  %v2485_v62 = vmul.f32 %v10831_v37, %v10832_v32  ;;  %v10881_v14 = vld [vmem:[#allocation16_spill] sm:$0xff] }
 0x2be   : > { %v9906_v4 = vrot.slane %v5879_v20, 1  ;;  %v2318_v42 = vcombine.low %v1995_v8, %v1996_v53  ;;  %v2319_v22 = vcombine.low %v1997_v46, %v1998_v40  ;;  %v3045_v34 = vmul.f32 %v7708_v55, %v10784_v56  ;;  %v9971_v40 = vld [vmem:[%s10168_s5] ss:$0 sm:$0xff] }
 0x2bf   : > { %v5373_v43 = vadd.f32 %v5325_v60, %v4915_v18  ;;  %v6367_v12 = vcombine.low %v6359_v2, %v6366_v19  ;;  %v2885_v63 = vrot.slane %v2485_v62, %v7438_v7  ;;  %v3046_v6 = vmul.f32 %v10552_v50, %v10785_v41  ;;  %v10887_v62 = vld [vmem:[#allocation55_spill] sm:$0xff] }
 0x2c0   : > { %v5924_v5 = vsel %vm2886_vm10, %v5922_v38, %v9906_v4  ;;  %v2326_v54 = vrot.slane %v2318_v42, %v7438_v7  ;;  %v2333_v10 = vrot.slane %v2319_v22, %v7438_v7  ;;  %v3047_v37 = vmul.f32 %v10554_v0, %v10786_v33  ;;  %v10880_v38 = vld [vmem:[#allocation39_spill] sm:$0xff] }
 0x2c1   : > { %v3048_v48 = vmul.f32 %v10555_v57, %v10832_v32  ;;  %v5957_v39 = vadd.f32 %v5924_v5, %v5373_v43  ;;  %v2925_v27 = vrot.slane %v2885_v63, 1  ;;  %v3368_v55 = vcombine.low %v3045_v34, %v3046_v6  ;;  %v10888_v34 = vld [vmem:[#allocation28_spill] sm:$0xff] }
 0x2c2   : > { %v3503_v56 = vmul.f32 %v7768_v17, %v10823_v11  ;;  %v2334_v44 = vcombine.low %v2326_v54, %v2333_v10  ;;  %v3504_v50 = vmul.f32 %v7798_v35, %v10825_v26  ;;  %v3505_v41 = vmul.f32 %v7781_v24, %v10826_v49  ;;  %v7185_v17 = vld [vmem:[%s10166_s3] ss:$0 sm:$0xff] }
 0x2c3   : > { %v3369_v3 = vcombine.low %v3047_v37, %v3048_v48  ;;  %v6415_v36 = vadd.f32 %v6367_v12, %v5957_v39  ;;  %v2926_v0 = vsel %vm2886_vm10, %v9843_v47, %v2925_v27  ;;  %v3376_v57 = vrot.slane %v3368_v55, %v7438_v7  ;;  %v10889_v12 = vld [vmem:[#allocation93_spill] sm:$0xff] }
 0x2c4   : > { %v3506_v33 = vmul.f32 %v10755_v58, %v10827_v13  ;;  %v2366_v11 = vadd.f32 %v7185_v17, %v2334_v44  ;;  %v3826_v35 = vcombine.low %v3503_v56, %v3504_v50  ;;  %v4426_v24 = vsel %vm2886_vm10, %v4423_v59, %v10879_v61  ;;  %v10890_v10 = vld [vmem:[#allocation61_spill] sm:$0xff]  ;;  %v10891_v56 = vld [vmem:[#allocation98_spill] sm:$0xff] }
 0x2c5   : > { %v3383_v32 = vrot.slane %v3369_v3, %v7438_v7  ;;  %v6431_v15 = vmax.f32 %v6415_v36, 0.0  ;;  %v4545_v16 = vmul.f32 %v7787_v29, %v10825_v26  ;;  %v4546_v58 = vmul.f32 %v7825_v52, %v10826_v49  ;;  %v10882_v26 = vld [vmem:[#allocation50_spill] sm:$0xff]  ;;  %v10884_v49 = vld [vmem:[#allocation95_spill] sm:$0xff]  ;;  %v7186_v48 = vld [vmem:[%s7440_s12 + $0x20] sm:$0xff] }
 0x2c6   : > { %v3827_v47 = vcombine.low %v3505_v41, %v3506_v33  ;;  %v2958_v28 = vadd.f32 %v2926_v0, %v2366_v11  ;;  %v3834_v60 = vrot.slane %v3826_v35, %v7438_v7  ;;  %v4547_v20 = vmul.f32 %v7790_v30, %v10827_v13  ;;  %v10883_v52 = vld [vmem:[#allocation94_spill] sm:$0xff]  ;;  %v10886_v30 = vld [vmem:[#allocation99_spill] sm:$0xff]  ;;  %v7188_v0 = vld [vmem:[%s7440_s12 + $0x18] sm:$0xff] }
 0x2c7   : > { %v3384_v21 = vcombine.low %v3376_v57, %v3383_v32  ;;  %v6447_v8 = vmin.f32 %v6431_v15, 6.0  ;;  %v4868_v59 = vcombine.low %v4545_v16, %v4546_v58  ;;  %v5326_v1 = vcombine.low %v10881_v14, %v10880_v38  ;;  %v10892_v50 = vld [vmem:[#allocation62_spill] sm:$0xff]  ;;  %v10893_v33 = vld [vmem:[#allocation83_spill] sm:$0xff]  ;;  %v7189_v35 = vld [vmem:[%s7440_s12 + $0x38] sm:$0xff] }
 0x2c8   : > { %v3841_v31 = vrot.slane %v3827_v47, %v7438_v7  ;;  %v4869_v25 = vcombine.low %v4547_v20, %v10882_v26  ;;  %v10885_v53 = vcombine.low %v10883_v52, %v10884_v49  ;;  %v5886_v13 = vrot.slane %v10886_v30, %v7438_v7  ;;  %v10894_v58 = vld [vmem:[#allocation87_spill] sm:$0xff]  ;;  %v10895_v49 = vld [vmem:[#allocation82_spill] sm:$0xff] }
 0x2c9   : > { %v3416_v29 = vadd.f32 %v3384_v21, %v2958_v28  ;;  %7051 = vmatprep.mubr.f32.mxu1 %v6447_v8  ;;  %v4876_v2 = vrot.slane %v4868_v59, %v7438_v7  ;;  %v5334_v19 = vrot.slane %v5326_v1, %v7438_v7  ;;  %v6045_v5 = vmul.f32 %v10750_v45, %v10887_v62  ;;  %v7191_v8 = vld [vmem:[%s7440_s12 + $0x30] sm:$0xff] }
 0x2ca   : > { %v5341_v46 = vrot.slane %v10885_v53, %v7438_v7  ;;  %v3842_v18 = vcombine.low %v3834_v60, %v3841_v31  ;;  %v4883_v42 = vrot.slane %v4869_v25, %v7438_v7  ;;  %v5925_v22 = vrot.slane %v5886_v13, 1  ;;  %v7192_v14 = vld [vmem:[%s7440_s12 + $0x50] sm:$0xff] }
 0x2cb   : > { %v6046_v43 = vmul.f32 %v10751_v51, %v10888_v34  ;;  %v6048_v63 = vmul.f32 %v10534_v23, %v10889_v12  ;;  %v6544_v37 = vadd.f32 %v10890_v10, %v9971_v40  ;;  %v6634_v39 = vrot.slane %v7186_v48, 1  ;;  %v7187_v23 = vld [vmem:[%s7440_s12 + $0x28] sm:$0x3] }
 0x2cc   : > { %v3874_v6 = vadd.f32 %v3842_v18, %v3416_v29  ;;  %v5342_v54 = vcombine.low %v5334_v19, %v5341_v46  ;;  %v4884_v27 = vcombine.low %v4876_v2, %v4883_v42  ;;  %v5926_v45 = vsel %vm2886_vm10, %v9906_v4, %v5925_v22  ;;  %v7193_v29 = vld [vmem:[%s7440_s12 + $0x58] sm:$0x3]  ;;  %v7194_v46 = vld [vmem:[%s7440_s12 + $0x48] sm:$0xff] }
 0x2cd   : > { %v6368_v55 = vcombine.low %v6045_v5, %v6046_v43  ;;  %v6369_v44 = vcombine.low %v10891_v56, %v6048_v63  ;;  %6618 = vst [vmem:[%s9988_s16 + $0x8] sm:$0xff] %v6544_v37  ;;  %v6636_v3 = vrot.slane %v7187_v23, 1  ;;  %v6539_v41 = vadd.f32 %v9971_v40, %v10892_v50  ;;  %v7195_v22 = vld [vmem:[%s7440_s12 + $0x68] sm:$0xff]  ;;  %v7196_v43 = vld [vmem:[%s7440_s12 + $0x70] sm:$0x3]  ;;  %v7197_v63 = vld [vmem:[%s7440_s12 + $0x60] sm:$0xff] }
 0x2ce   : > { %v4458_v51 = vadd.f32 %v4426_v24, %v3874_v6  ;;  %v6633_v57 = vrot.slane %v7188_v0, 1  ;;  %v6554_v17 = vadd.f32 %v10893_v33, %v9971_v40  ;;  %v6639_v61 = vrot.slane %v7189_v35, 1  ;;  %v7190_v24 = vld [vmem:[%s7440_s12 + $0x40] sm:$0x3] }
 0x2cf   : > { %v6376_v4 = vrot.slane %v6368_v55, %v7438_v7  ;;  %v6383_v36 = vrot.slane %v6369_v44, %v7438_v7  ;;  %v6637_v32 = vsel %vm2886_vm10, %v6634_v39, %v6636_v3  ;;  %6617 = vst [vmem:[%s9988_s16] sm:$0xff] %v6539_v41  ;;  %v6641_v15 = vrot.slane %v7190_v24, 1  ;;  %v7198_v56 = vld [vmem:[%s7440_s12 + $0x80] sm:$0xff]  ;;  %v7200_v3 = vld [vmem:[%s7440_s12 + $0x78] sm:$0xff] }
 0x2d0   : > { %v4916_v11 = vadd.f32 %v4884_v27, %v4458_v51  ;;  %v6690_v7 = vadd.f32 %v6637_v32, %v6544_v37  ;;  %v6635_v16 = vsel %vm2886_vm10, %v6633_v57, %v6634_v39  ;;  %6620 = vst [vmem:[%s9988_s16 + $0x18] sm:$0xff] %v6554_v17  ;;  %v6549_v28 = vadd.f32 %v9971_v40, %v10894_v58  ;;  %v7199_v51 = vld [vmem:[%s7440_s12 + $0x88] sm:$0x3]  ;;  %v7201_v32 = vld [vmem:[%s7440_s12 + $0x98] sm:$0xff] }
 0x2d1   : > { %v6384_v47 = vcombine.low %v6376_v4, %v6383_v36  ;;  %v6689_v60 = vadd.f32 %v6635_v16, %v6539_v41  ;;  %v6642_v20 = vsel %vm2886_vm10, %v6639_v61, %v6641_v15  ;;  %v6638_v31 = vrot.slane %v7191_v8, 1  ;;  %v7203_v15 = vld [vmem:[%s7440_s12 + $0x90] sm:$0xff] }
 0x2d2   : > { %v5374_v21 = vadd.f32 %v5342_v54, %v4916_v11  ;;  %6707 = vst.msk [vmem:[%s9988_s16 + $0x8] sm:$0xff] %vm6705_vm11, %v6690_v7  ;;  %v6692_v59 = vadd.f32 %v6642_v20, %v6554_v17  ;;  %6619 = vst [vmem:[%s9988_s16 + $0x10] sm:$0xff] %v6549_v28  ;;  %v6564_v38 = vadd.f32 %v9802_v9, %v9971_v40  ;;  %v6644_v1 = vrot.slane %v7192_v14, 1 }
 0x2d3   : > { %v6646_v26 = vrot.slane %v7193_v29, 1  ;;  %6706 = vst.msk [vmem:[%s9988_s16] sm:$0xff] %vm6705_vm11, %v6689_v60  ;;  %v6640_v52 = vsel %vm2886_vm10, %v6638_v31, %v6639_v61  ;;  %v6559_v53 = vadd.f32 %v9971_v40, %v10895_v49  ;;  %v6643_v30 = vrot.slane %v7194_v46, 1  ;;  %v7202_v61 = vld [vmem:[%s7440_s12 + $0xa0] sm:$0x3]  ;;  %v7204_v31 = vld [vmem:[%s7440_s12 + $0xb0] sm:$0xff] }
 0x2d4   : > { %v5958_v25 = vadd.f32 %v5926_v45, %v5374_v21  ;;  %6709 = vst.msk [vmem:[%s9988_s16 + $0x18] sm:$0xff] %vm6705_vm11, %v6692_v59  ;;  %v6691_v9 = vadd.f32 %v6640_v52, %v6549_v28  ;;  %6622 = vst [vmem:[%s9988_s16 + $0x28] sm:$0xff] %v6564_v38  ;;  %v6649_v34 = vrot.slane %v7195_v22, 1  ;;  %v6651_v12 = vrot.slane %v7196_v43, 1 }
 0x2d5   : > { %v6647_v13 = vsel %vm2886_vm10, %v6644_v1, %v6646_v26  ;;  %6621 = vst [vmem:[%s9988_s16 + $0x20] sm:$0xff] %v6559_v53  ;;  %v6645_v19 = vsel %vm2886_vm10, %v6643_v30, %v6644_v1  ;;  %v6648_v6 = vrot.slane %v7197_v63, 1  ;;  %v6654_v44 = vrot.slane %v7198_v56, 1  ;;  %v7206_v1 = vld [vmem:[%s7440_s12 + $0xa8] sm:$0xff] }
 0x2d6   : > { %v6416_v18 = vadd.f32 %v6384_v47, %v5958_v25  ;;  %v6694_v2 = vadd.f32 %v6647_v13, %v6564_v38  ;;  %6708 = vst.msk [vmem:[%s9988_s16 + $0x10] sm:$0xff] %vm6705_vm11, %v6691_v9  ;;  %v6693_v62 = vadd.f32 %v6645_v19, %v6559_v53  ;;  %v6652_v10 = vsel %vm2886_vm10, %v6649_v34, %v6651_v12  ;;  %v7205_v38 = vld [vmem:[%s7440_s12 + $0xb8] sm:$0x3]  ;;  %v7207_v13 = vld [vmem:[%s7440_s12 + $0xc8] sm:$0xff] }
 0x2d7   : > { %v6650_v39 = vsel %vm2886_vm10, %v6648_v6, %v6649_v34  ;;  %v6656_v23 = vrot.slane %v7199_v51, 1  ;;  %v6653_v50 = vrot.slane %v7200_v3, 1  ;;  %v6659_v35 = vrot.slane %v7201_v32, 1 }
 0x2d8   : > { %v6432_v5 = vmax.f32 %v6416_v18, 0.0  ;;  %6711 = vst.msk [vmem:[%s9988_s16 + $0x28] sm:$0xff] %vm6705_vm11, %v6694_v2  ;;  %6710 = vst.msk [vmem:[%s9988_s16 + $0x20] sm:$0xff] %vm6705_vm11, %v6693_v62  ;;  %v6661_v24 = vrot.slane %v7202_v61, 1  ;;  %v6658_v47 = vrot.slane %v7203_v15, 1  ;;  %v6664_v59 = vrot.slane %v7204_v31, 1 }
 0x2d9   : > { %v6657_v4 = vsel %vm2886_vm10, %v6654_v44, %v6656_v23  ;;  %v6655_v57 = vsel %vm2886_vm10, %v6653_v50, %v6654_v44  ;;  %v6666_v14 = vrot.slane %v7205_v38, 1  ;;  %v6663_v29 = vrot.slane %v7206_v1, 1  ;;  %v7208_v2 = vld [vmem:[%s7440_s12 + $0xd0] sm:$0x3]  ;;  %v7209_v62 = vld [vmem:[%s7440_s12 + $0xc0] sm:$0xff] }
 0x2da   : > { %v6448_v42 = vmin.f32 %v6432_v5, 6.0  ;;  %v6662_v16 = vsel %vm2886_vm10, %v6659_v35, %v6661_v24  ;;  %v6660_v21 = vsel %vm2886_vm10, %v6658_v47, %v6659_v35  ;;  %v6669_v18 = vrot.slane %v7207_v13, 1 }
 0x2db   : > { %v6667_v25 = vsel %vm2886_vm10, %v6664_v59, %v6666_v14  ;;  %v6665_v53 = vsel %vm2886_vm10, %v6663_v29, %v6664_v59  ;;  %v6671_v19 = vrot.slane %v7208_v2, 1  ;;  %v6668_v5 = vrot.slane %v7209_v62, 1 }
 0x2dc   : > { %7052 = vmatmul.mubr.f32.gmra.mrb[14].mxu1 %v6448_v42  ;;  %v7041_v54 = vpop.f32.mrb[6].mxu1 }
 0x2dd   : > { %v6574_v37 = vadd.f32 %v7041_v54, %v9971_v40  ;;  %v6568_v48 = vpop.f32.mrb[7].mxu1  ;;  %v6672_v22 = vsel %vm2886_vm10, %v6669_v18, %v6671_v19  ;;  %v6670_v12 = vsel %vm2886_vm10, %v6668_v5, %v6669_v18 }
 0x2de   : > { %v6569_v27 = vadd.f32 %v9971_v40, %v6568_v48 }
 0x2df   : > { %6624 = vst [vmem:[%s9988_s16 + $0x38] sm:$0xff] %v6574_v37  ;;  %v6696_v45 = vadd.f32 %v6652_v10, %v6574_v37 }
 0x2e0   : > { %6623 = vst [vmem:[%s9988_s16 + $0x30] sm:$0xff] %v6569_v27  ;;  %v6695_v55 = vadd.f32 %v6650_v39, %v6569_v27 }
 0x2e1   : > { %6713 = vst.msk [vmem:[%s9988_s16 + $0x38] sm:$0xff] %vm6705_vm11, %v6696_v45 }
 0x2e2   : > { %6712 = vst.msk [vmem:[%s9988_s16 + $0x30] sm:$0xff] %vm6705_vm11, %v6695_v55 }
 0x31a   : > { %v7044_v41 = vpop.f32.mrb[8].mxu1 }
 0x31b   : > { %v6584_v36 = vadd.f32 %v7044_v41, %v9971_v40  ;;  %v6578_v0 = vpop.f32.mrb[9].mxu1 }
 0x31c   : > { %v6579_v33 = vadd.f32 %v9971_v40, %v6578_v0 }
 0x31d   : > { %6626 = vst [vmem:[%s9988_s16 + $0x48] sm:$0xff] %v6584_v36  ;;  %v6698_v17 = vadd.f32 %v6657_v4, %v6584_v36 }
 0x31e   : > { %6625 = vst [vmem:[%s9988_s16 + $0x40] sm:$0xff] %v6579_v33  ;;  %v6697_v11 = vadd.f32 %v6655_v57, %v6579_v33 }
 0x31f   : > { %6715 = vst.msk [vmem:[%s9988_s16 + $0x48] sm:$0xff] %vm6705_vm11, %v6698_v17 }
 0x320   : > { %6714 = vst.msk [vmem:[%s9988_s16 + $0x40] sm:$0xff] %vm6705_vm11, %v6697_v11 }
 0x34e   : > { %v7047_v7 = vpop.f32.mrb[10].mxu1 }
 0x34f   : > { %v6594_v58 = vadd.f32 %v7047_v7, %v9971_v40  ;;  %v6588_v28 = vpop.f32.mrb[11].mxu1 }
 0x350   : > { %v6589_v60 = vadd.f32 %v9971_v40, %v6588_v28 }
 0x351   : > { %6628 = vst [vmem:[%s9988_s16 + $0x58] sm:$0xff] %v6594_v58  ;;  %v6700_v20 = vadd.f32 %v6662_v16, %v6594_v58 }
 0x352   : > { %6627 = vst [vmem:[%s9988_s16 + $0x50] sm:$0xff] %v6589_v60  ;;  %v6699_v8 = vadd.f32 %v6660_v21, %v6589_v60 }
 0x353   : > { %6717 = vst.msk [vmem:[%s9988_s16 + $0x58] sm:$0xff] %vm6705_vm11, %v6700_v20 }
 0x354   : > { %6716 = vst.msk [vmem:[%s9988_s16 + $0x50] sm:$0xff] %vm6705_vm11, %v6699_v8 }
 0x380   : > { %v7050_v26 = vpop.f32.mrb[12].mxu1 }
 0x381   : > { %v6604_v52 = vadd.f32 %v7050_v26, %v9971_v40  ;;  %v6598_v49 = vpop.f32.mrb[13].mxu1 }
 0x382   : > { %v6599_v46 = vadd.f32 %v9971_v40, %v6598_v49 }
 0x383   : > { %6630 = vst [vmem:[%s9988_s16 + $0x68] sm:$0xff] %v6604_v52  ;;  %v6702_v30 = vadd.f32 %v6667_v25, %v6604_v52 }
 0x384   : > { %6629 = vst [vmem:[%s9988_s16 + $0x60] sm:$0xff] %v6599_v46  ;;  %v6701_v9 = vadd.f32 %v6665_v53, %v6599_v46 }
 0x385   : > { %6719 = vst.msk [vmem:[%s9988_s16 + $0x68] sm:$0xff] %vm6705_vm11, %v6702_v30 }
 0x386   : > { %6718 = vst.msk [vmem:[%s9988_s16 + $0x60] sm:$0xff] %vm6705_vm11, %v6701_v9 }
 0x3af   : > { %v7053_v42 = vpop.f32.mrb[14].mxu1 }
 0x3b0   : > { %v6614_v34 = vadd.f32 %v7053_v42, %v9971_v40  ;;  %v6608_v43 = vpop.f32.mrb[15].mxu1 }
 0x3b1   : > { %v6609_v63 = vadd.f32 %v9971_v40, %v6608_v43 }
 0x3b2   : > { %6632 = vst [vmem:[%s9988_s16 + $0x78] sm:$0xff] %v6614_v34  ;;  %v6704_v6 = vadd.f32 %v6672_v22, %v6614_v34 }
 0x3b3   : > { %6631 = vst [vmem:[%s9988_s16 + $0x70] sm:$0xff] %v6609_v63  ;;  %v6703_v54 = vadd.f32 %v6670_v12, %v6609_v63 }
 0x3b4   : > { %6721 = vst.msk [vmem:[%s9988_s16 + $0x78] sm:$0xff] %vm6705_vm11, %v6704_v6 }
 0x3b5   : > { %6720 = vst.msk [vmem:[%s9988_s16 + $0x70] sm:$0xff] %vm6705_vm11, %v6703_v54 }
 0x3b6   : > { %7231 = shalt.err (!%p7228_p6)
}
 0x3b7   : > { %s7232_s30 = scalar_lea.hbm %s10103_s29, 2048  ;;  %s7236_s24 = scalar_lea.hbm %s10169_s6, 8192 }
 0x3b8   : > { %p7233_p7 = scmp.ne.s32.totalorder %s10103_s29, %s7232_s30  ;;  %p7237_p11 = scmp.lt.u32.totalorder %s10103_s29, %s10169_s6 }
 0x3b9   : > { %p7238_p12 = scmp.lt.u32.totalorder %s7236_s24, %s7232_s30  ;;  %p7240_p0 = scmp.lt.u32.totalorder %s7232_s30, %s10103_s29 }
 0x3ba   : > { %p7234_p9 = pnand %p7233_p7, %p7406_p3 }
 0x3bb   : > { %p7239_p13 = por %p7238_p12, %p7237_p11 }
 0x3bc   : > { %p7235_p10 = pneg %p7234_p9 }
 0x3bd   : > { %p7241_p1 = por %p7240_p0, %p7239_p13 }
 0x3bf   : > { %p7242_p2 = pnand %p7241_p1, %p7235_p10 }
 0x3c1   : > { %7245 = shalt.err (!%p7242_p2)
}
 0x3c2   : > { %s7318_s13 = smov 128   ;;  %s7319_s14 = smov 8  }
 0x3c3   : > { %7087 = dma.vmem_to_hbm [thread:$0]  (%p7406_p3), %s10097_s20, 2048, %s10103_s29, %s10111_s9, %s7318_s13, %s7318_s13, %s7319_s14  }
 0x3c4 PF: > { %p7093_p4 = scmp.ge.s32.totalorder %s7312_s28, 2  ;;  %s6754_s17 = sand.u32 1, %s7284_s21  }
 0x3c5   : > { %s6755_s18 = scalar_lea.sflag [#allocation3], %s6754_s17 }
 0x3c6   : > { %p7090_p5 = pnand %p7093_p4, %p7415_p8 }
 0x3c8   : > { %7279 = dma.done.wait (!%p7090_p5), %s6755_s18, 2048  }
 0x3c9   : > { %7281 = vsyncadd (!%p7090_p5), %s6755_s18, 4294965248  ;;  %s19_s28 = sadd.s32 1, %s7312_s28   ;;  %s10896_s21 = smov %s7288_s22 }
 0x3ca   : > { %p16_p6 = scmp.ge.s32.totalorder %s19_s28, 6   ;;  %s10897_s22 = smov %s7292_s23 }
 0x3cb   : > { %s10898_s23 = smov %s7424_s15  ;;  %s10899_s24 = smov %s7304_s26 }
 0x3cc   : > { %s10900_s25 = smov %s7308_s27  ;;  %s10901_s26 = smov %s10904_s7 }
 0x3cd   : > { %s10902_s27 = smov %s10908_s8  ;;  %18 = sbr.rel (!%p16_p6) target bundleno = 5 (0x5), region = 80 }
 0x3d4   :  { %6760 = vsyncpa [#allocation3], 1 }
 0x3d5   :  { %6762 = vsyncpa [#allocation3 + $0x1], 1 }

</bundles_post_ra>
